<compile_context>
chip_gen: v7x
topology: tpu7x:2x2x1
jax: 0.10.0
libtpu: 0.0.40
codegen_flags: <defaults>
</compile_context>

<pallas_src>
import functools

import jax
import jax.numpy as jnp
from jax.experimental import pallas as pl
from jax.experimental.pallas import tpu as pltpu

LANE = 128


def _round_up(v, m):
    return (v + m - 1) // m * m


# ------------------------------ Pallas kernel ------------------------------ #

def _bottleneck_kernel(x_ref, w1_ref, b1_ref, w2_ref, b2_ref, o_ref, y1_ref,
                       *, H, W, C1, Cm, C2, margin, p_pad, pb, add):
    """Fused cv1 -> cv2 -> (+residual) for one image (one grid step).

    x_ref  : (C1, pb)       VMEM  zero-padded, spatially flattened input image
                                  (conv-padded plane of P=Hp*Wp pixels starts
                                  at lane offset `margin`)
    w1_ref : (Cm, 9*C1)     VMEM  cv1 weights, BN scale folded, [co, tap*C1+ci]
    b1_ref : (Cm, 1)        VMEM  cv1 folded BN bias
    w2_ref : (C2, 9*Cm)     VMEM  cv2 weights, BN scale folded
    b2_ref : (C2, 1)        VMEM  cv2 folded BN bias
    o_ref  : (C2, p_pad)    VMEM  output over the lane-padded conv plane
                                  (halo / pad lanes hold junk, sliced off in
                                  the wrapper)
    y1_ref : (Cm, pb)       VMEM scratch, intermediate activation (never HBM)
    """
    Wp = W + 2

    # Interior mask of the (lane-padded) flattened conv plane, built in-kernel
    # from an iota: 1.0 exactly on the HxW interior pixels, 0.0 on the conv
    # halo and on the lane-padding tail (>= Hp*Wp).  Float div-by-constant is
    # exact here (|q| < 400, constant error ~1e-8), avoids integer div/mod.
    q = jax.lax.broadcasted_iota(jnp.int32, (1, p_pad), 1).astype(jnp.float32)
    r = jnp.floor(q * (1.0 / Wp))
    c = q - r * Wp
    mask = ((r >= 1.0) & (r <= float(H)) & (c >= 1.0) & (c <= float(W))
            ).astype(jnp.float32)                                # (1, p_pad)

    # ---- cv1 = ReLU6(BN(conv3x3(x))): 9 shifted taps, fused-channel VPU MACs
    acc1 = jnp.zeros((Cm, p_pad), jnp.float32)
    for kh in range(3):
        for kw in range(3):
            start = margin + (kh - 1) * Wp + (kw - 1)
            tap = kh * 3 + kw
            for ci in range(C1):
                row = x_ref[ci:ci + 1, start:start + p_pad]        # (1, p_pad)
                j = tap * C1 + ci
                wcol = w1_ref[:, j:j + 1]                          # (Cm, 1)
                acc1 = acc1 + wcol * row                           # (Cm, p_pad)
    # +bias, ReLU6, zero the conv-halo/pad lanes so cv2 sees correct 'same'
    # zero padding of y1.
    y1 = jnp.clip(acc1 + b1_ref[...], 0.0, 6.0) * mask             # (Cm, p_pad)

    # One-off 128-wide aligned memsets of the two margins + ONE lane-aligned,
    # lane-dense interior store of all Cm channels at once.
    y1_ref[:, 0:margin] = jnp.zeros((Cm, margin), jnp.float32)
    y1_ref[:, margin + p_pad:pb] = jnp.zeros((Cm, pb - margin - p_pad),
                                             jnp.float32)
    y1_ref[:, margin:margin + p_pad] = y1

    # ---- cv2 = ReLU6(BN(conv3x3(y1)))  (+ residual), y1 read from VMEM ----
    acc2 = jnp.zeros((C2, p_pad), jnp.float32)
    for kh in range(3):
        for kw in range(3):
            start = margin + (kh - 1) * Wp + (kw - 1)
            tap = kh * 3 + kw
            for ci in range(Cm):
                row = y1_ref[ci:ci + 1, start:start + p_pad]       # (1, p_pad)
                j = tap * Cm + ci
                wcol = w2_ref[:, j:j + 1]                          # (C2, 1)
                acc2 = acc2 + wcol * row                           # (C2, p_pad)
    y2 = jnp.clip(acc2 + b2_ref[...], 0.0, 6.0)
    if add:                                            # residual after activation
        y2 = y2 + x_ref[:, margin:margin + p_pad]      # lane-aligned slice
    o_ref[...] = y2.astype(o_ref.dtype)                # single lane-dense store


# ------------------------- host-side (one-time) fold ------------------------ #

def fold_bottleneck_params(params):
    """Fold BN scale into conv weights and lay out the tiny VMEM tables.

    Runs once at parameter-load time (hoisted out of the forward pass).
    """
    w1, s1, b1 = params["w1"], params["s1"], params["b1"]   # w1: (3,3,C1,Cm) HWIO
    w2, s2, b2 = params["w2"], params["s2"], params["b2"]   # w2: (3,3,Cm,C2) HWIO
    C1, Cm = w1.shape[2], w1.shape[3]
    C2 = w2.shape[3]
    # table[co, tap*Cin + ci] = w[kh,kw,ci,co] * scale[co]
    w1_tab = jnp.transpose((w1 * s1).reshape(9 * C1, Cm)).astype(jnp.float32)
    w2_tab = jnp.transpose((w2 * s2).reshape(9 * Cm, C2)).astype(jnp.float32)
    b1_col = b1.reshape(Cm, 1).astype(jnp.float32)
    b2_col = b2.reshape(C2, 1).astype(jnp.float32)
    add = bool(params["add"]) and (C1 == C2)
    return w1_tab, b1_col, w2_tab, b2_col, add


# ------------------------------ jitted wrapper ------------------------------ #

@functools.partial(jax.jit, static_argnames=("add",))
def bottleneck_forward(x_nchw, w1_tab, b1_col, w2_tab, b2_col, *, add):
    """Bottleneck.forward: x + cv2(cv1(x))  (single fused pallas_call)."""
    N, C1, H, W = x_nchw.shape
    Cm = w1_tab.shape[0]
    C2 = w2_tab.shape[0]

    Hp, Wp = H + 2, W + 2
    P = Hp * Wp                                 # flattened conv-padded plane
    P_pad = _round_up(P, LANE)                  # lane-dense accumulator/output width
    margin = _round_up(Wp + 1, LANE)            # lane-aligned halo, covers +-(Wp+1) taps
    PB = margin + P_pad + margin                # full buffer width (multiple of 128)

    # One cheap zero-pad (conv halo + lane-aligned margins) and spatial flatten:
    # the kernel reads x exactly once from HBM (no 9x im2col inflation).
    x_flat = jnp.pad(x_nchw.astype(jnp.float32),
                     ((0, 0), (0, 0), (1, 1), (1, 1))).reshape(N, C1, P)
    x_buf = jnp.pad(x_flat, ((0, 0), (0, 0), (margin, PB - margin - P)))

    kernel = functools.partial(_bottleneck_kernel, H=H, W=W, C1=C1, Cm=Cm,
                               C2=C2, margin=margin, p_pad=P_pad, pb=PB, add=add)

    out_flat = pl.pallas_call(
        kernel,
        out_shape=jax.ShapeDtypeStruct((N, C2, P_pad), jnp.float32),
        grid_spec=pltpu.PrefetchScalarGridSpec(
            num_scalar_prefetch=0,
            grid=(N,),                                           # one image per step
            in_specs=[
                pl.BlockSpec((None, C1, PB), lambda n: (n, 0, 0)),   # x (this image)
                pl.BlockSpec((Cm, 9 * C1), lambda n: (0, 0)),        # w1 table (folded)
                pl.BlockSpec((Cm, 1), lambda n: (0, 0)),             # b1
                pl.BlockSpec((C2, 9 * Cm), lambda n: (0, 0)),        # w2 table (folded)
                pl.BlockSpec((C2, 1), lambda n: (0, 0)),             # b2
            ],
            out_specs=pl.BlockSpec((None, C2, P_pad), lambda n: (n, 0, 0)),
            scratch_shapes=[pltpu.VMEM((Cm, PB), jnp.float32)],      # y1 stays in VMEM
        ),
        compiler_params=pltpu.CompilerParams(
            dimension_semantics=("parallel",),     # batch -> v7x's 2 TensorCores
            vmem_limit_bytes=32 * 1024 * 1024,
        ),
    )(x_buf, w1_tab, b1_col, w2_tab, b2_col)

    # Drop lane padding + conv halo: output is already NCHW.
    return out_flat[:, :, :P].reshape(N, C2, Hp, Wp)[:, :, 1:1 + H, 1:1 + W]


# --------------------------- pure-JAX reference ----------------------------- #

def _ref_conv_bn_relu6(x_nhwc, w_hwio, scale, bias):
    y = jax.lax.conv_general_dilated(
        x_nhwc, w_hwio, window_strides=(1, 1), padding="SAME",
        dimension_numbers=("NHWC", "HWIO", "NHWC"))
    y = y * scale + bias
    return jnp.clip(y, 0.0, 6.0)


def bottleneck_ref(x_nchw, params):
    x = jnp.transpose(x_nchw, (0, 2, 3, 1))
    y = _ref_conv_bn_relu6(x, params["w1"], params["s1"], params["b1"])
    y = _ref_conv_bn_relu6(y, params["w2"], params["s2"], params["b2"])
    if params["add"]:
        y = x + y
    return jnp.transpose(y, (0, 3, 1, 2))


# ---------------------------------- main ----------------------------------- #

def _make_params(key, c1, c2, k=(3, 3), e=0.5, eps=1e-5):
    c_ = int(c2 * e)
    ks = jax.random.split(key, 10)

    def bn_fold(kg, kb, km, kv, c):
        gamma = 1.0 + 0.1 * jax.random.normal(kg, (c,), jnp.float32)
        beta = 0.1 * jax.random.normal(kb, (c,), jnp.float32)
        mean = 0.1 * jax.random.normal(km, (c,), jnp.float32)
        var = jax.random.uniform(kv, (c,), jnp.float32, 0.5, 1.5)
        scale = gamma / jnp.sqrt(var + eps)
        bias = beta - mean * scale
        return scale, bias

    w1 = 0.1 * jax.random.normal(ks[0], (k[0], k[0], c1, c_), jnp.float32)  # HWIO
    w2 = 0.1 * jax.random.normal(ks[1], (k[1], k[1], c_, c2), jnp.float32)  # HWIO
    s1, b1 = bn_fold(ks[2], ks[3], ks[4], ks[5], c_)
    s2, b2 = bn_fold(ks[6], ks[7], ks[8], ks[9], c2)
    return {"w1": w1, "s1": s1, "b1": b1,
            "w2": w2, "s2": s2, "b2": b2,
            "add": (c1 == c2)}          # shortcut=True and c1 == c2


if __name__ == "__main__":
    key = jax.random.PRNGKey(0)
    kx, kp = jax.random.split(key)

    # NCHW input implied by the module; c1 = c2 = 4 so the shortcut add is active.
    N, C, H, W = 2, 4, 16, 16
    x = jax.random.normal(kx, (N, C, H, W), jnp.float32)
    params = _make_params(kp, c1=C, c2=C)

    # One-time parameter fold (BN scale into weights, VMEM table layout).
    w1_tab, b1_col, w2_tab, b2_col, add = fold_bottleneck_params(params)

    out = jax.block_until_ready(
        bottleneck_forward(x, w1_tab, b1_col, w2_tab, b2_col, add=add))
    ref = jax.block_until_ready(bottleneck_ref(x, params))

    assert out.shape == (N, C, H, W) and out.dtype == jnp.float32
    err = float(jnp.max(jnp.abs(out - ref)))
    assert jnp.allclose(out, ref, atol=1e-3, rtol=1e-3), err

    print("KERNEL_OK")
</pallas_src>

<mosaic_0001>
module attributes {stable_mosaic.version = 11 : i64} {
  func.func @_bottleneck_kernel(%arg0: i32, %arg1: memref<1x4x640xf32, #tpu.memory_space<vmem>>, %arg2: memref<2x36xf32, #tpu.memory_space<vmem>>, %arg3: memref<2x1xf32, #tpu.memory_space<vmem>>, %arg4: memref<4x18xf32, #tpu.memory_space<vmem>>, %arg5: memref<4x1xf32, #tpu.memory_space<vmem>>, %arg6: memref<1x4x384xf32, #tpu.memory_space<vmem>>, %arg7: memref<2x640xf32, #tpu.memory_space<vmem>>) attributes {dimension_semantics = [#tpu.dimension_semantics<parallel>], iteration_bounds = array<i64: 2>, scalar_prefetch = 0 : i64, scratch_operands = 1 : i64, tpu.core_type = #tpu.core_type<tc>, window_params = [{transform_indices = @transform_0, window_bounds = array<i64: 1, 4, 640>}, {pipeline_mode = #tpu.pipeline_mode<synchronous>, transform_indices = @transform_1, window_bounds = array<i64: 2, 36>}, {pipeline_mode = #tpu.pipeline_mode<synchronous>, transform_indices = @transform_2, window_bounds = array<i64: 2, 1>}, {pipeline_mode = #tpu.pipeline_mode<synchronous>, transform_indices = @transform_3, window_bounds = array<i64: 4, 18>}, {pipeline_mode = #tpu.pipeline_mode<synchronous>, transform_indices = @transform_4, window_bounds = array<i64: 4, 1>}, {transform_indices = @transform_5, window_bounds = array<i64: 1, 4, 384>}]} {
    %0 = tpu.iota {dimensions = array<i32: 1>} : vector<1x384xi32>
    %1 = arith.sitofp %0 : vector<1x384xi32> to vector<1x384xf32>
    %cst = arith.constant 0.055555556 : f32
    %2 = vector.broadcast %cst : f32 to vector<1x384xf32>
    %3 = arith.mulf %1, %2 : vector<1x384xf32>
    %4 = math.floor %3 : vector<1x384xf32>
    %cst_0 = arith.constant 1.800000e+01 : f32
    %5 = vector.broadcast %cst_0 : f32 to vector<1x384xf32>
    %6 = arith.mulf %4, %5 : vector<1x384xf32>
    %7 = arith.subf %1, %6 : vector<1x384xf32>
    %cst_1 = arith.constant 1.000000e+00 : f32
    %8 = vector.broadcast %cst_1 : f32 to vector<1x384xf32>
    %9 = arith.cmpf oge, %4, %8 : vector<1x384xf32>
    %cst_2 = arith.constant 1.600000e+01 : f32
    %10 = vector.broadcast %cst_2 : f32 to vector<1x384xf32>
    %11 = arith.cmpf ole, %4, %10 : vector<1x384xf32>
    %12 = arith.andi %9, %11 : vector<1x384xi1>
    %cst_3 = arith.constant 1.000000e+00 : f32
    %13 = vector.broadcast %cst_3 : f32 to vector<1x384xf32>
    %14 = arith.cmpf oge, %7, %13 : vector<1x384xf32>
    %15 = arith.andi %12, %14 : vector<1x384xi1>
    %cst_4 = arith.constant 1.600000e+01 : f32
    %16 = vector.broadcast %cst_4 : f32 to vector<1x384xf32>
    %17 = arith.cmpf ole, %7, %16 : vector<1x384xf32>
    %18 = arith.andi %15, %17 : vector<1x384xi1>
    %19 = arith.extui %18 : vector<1x384xi1> to vector<1x384xi32>
    %20 = arith.sitofp %19 : vector<1x384xi32> to vector<1x384xf32>
    %cst_5 = arith.constant 0.000000e+00 : f32
    %21 = vector.broadcast %cst_5 : f32 to vector<2x384xf32>
    %c0 = arith.constant 0 : index
    %c0_6 = arith.constant 0 : index
    %c109 = arith.constant 109 : index
    %22 = vector.load %arg1[%c0, %c0_6, %c109] : memref<1x4x640xf32, #tpu.memory_space<vmem>>, vector<1x1x384xf32>
    %23 = vector.shape_cast %22 : vector<1x1x384xf32> to vector<1x384xf32>
    %c0_7 = arith.constant 0 : index
    %c0_8 = arith.constant 0 : index
    %24 = vector.load %arg2[%c0_7, %c0_8] : memref<2x36xf32, #tpu.memory_space<vmem>>, vector<2x1xf32>
    %25 = vector.broadcast %24 : vector<2x1xf32> to vector<2x384xf32>
    %26 = vector.broadcast %23 : vector<1x384xf32> to vector<2x384xf32>
    %27 = arith.mulf %25, %26 : vector<2x384xf32>
    %28 = arith.addf %21, %27 : vector<2x384xf32>
    %c0_9 = arith.constant 0 : index
    %c1 = arith.constant 1 : index
    %c109_10 = arith.constant 109 : index
    %29 = vector.load %arg1[%c0_9, %c1, %c109_10] : memref<1x4x640xf32, #tpu.memory_space<vmem>>, vector<1x1x384xf32>
    %30 = vector.shape_cast %29 : vector<1x1x384xf32> to vector<1x384xf32>
    %c0_11 = arith.constant 0 : index
    %c1_12 = arith.constant 1 : index
    %31 = vector.load %arg2[%c0_11, %c1_12] : memref<2x36xf32, #tpu.memory_space<vmem>>, vector<2x1xf32>
    %32 = vector.broadcast %31 : vector<2x1xf32> to vector<2x384xf32>
    %33 = vector.broadcast %30 : vector<1x384xf32> to vector<2x384xf32>
    %34 = arith.mulf %32, %33 : vector<2x384xf32>
    %35 = arith.addf %28, %34 : vector<2x384xf32>
    %c0_13 = arith.constant 0 : index
    %c2 = arith.constant 2 : index
    %c109_14 = arith.constant 109 : index
    %36 = vector.load %arg1[%c0_13, %c2, %c109_14] : memref<1x4x640xf32, #tpu.memory_space<vmem>>, vector<1x1x384xf32>
    %37 = vector.shape_cast %36 : vector<1x1x384xf32> to vector<1x384xf32>
    %c0_15 = arith.constant 0 : index
    %c2_16 = arith.constant 2 : index
    %38 = vector.load %arg2[%c0_15, %c2_16] : memref<2x36xf32, #tpu.memory_space<vmem>>, vector<2x1xf32>
    %39 = vector.broadcast %38 : vector<2x1xf32> to vector<2x384xf32>
    %40 = vector.broadcast %37 : vector<1x384xf32> to vector<2x384xf32>
    %41 = arith.mulf %39, %40 : vector<2x384xf32>
    %42 = arith.addf %35, %41 : vector<2x384xf32>
    %c0_17 = arith.constant 0 : index
    %c3 = arith.constant 3 : index
    %c109_18 = arith.constant 109 : index
    %43 = vector.load %arg1[%c0_17, %c3, %c109_18] : memref<1x4x640xf32, #tpu.memory_space<vmem>>, vector<1x1x384xf32>
    %44 = vector.shape_cast %43 : vector<1x1x384xf32> to vector<1x384xf32>
    %c0_19 = arith.constant 0 : index
    %c3_20 = arith.constant 3 : index
    %45 = vector.load %arg2[%c0_19, %c3_20] : memref<2x36xf32, #tpu.memory_space<vmem>>, vector<2x1xf32>
    %46 = vector.broadcast %45 : vector<2x1xf32> to vector<2x384xf32>
    %47 = vector.broadcast %44 : vector<1x384xf32> to vector<2x384xf32>
    %48 = arith.mulf %46, %47 : vector<2x384xf32>
    %49 = arith.addf %42, %48 : vector<2x384xf32>
    %c0_21 = arith.constant 0 : index
    %c0_22 = arith.constant 0 : index
    %c110 = arith.constant 110 : index
    %50 = vector.load %arg1[%c0_21, %c0_22, %c110] : memref<1x4x640xf32, #tpu.memory_space<vmem>>, vector<1x1x384xf32>
    %51 = vector.shape_cast %50 : vector<1x1x384xf32> to vector<1x384xf32>
    %c0_23 = arith.constant 0 : index
    %c4 = arith.constant 4 : index
    %52 = vector.load %arg2[%c0_23, %c4] : memref<2x36xf32, #tpu.memory_space<vmem>>, vector<2x1xf32>
    %53 = vector.broadcast %52 : vector<2x1xf32> to vector<2x384xf32>
    %54 = vector.broadcast %51 : vector<1x384xf32> to vector<2x384xf32>
    %55 = arith.mulf %53, %54 : vector<2x384xf32>
    %56 = arith.addf %49, %55 : vector<2x384xf32>
    %c0_24 = arith.constant 0 : index
    %c1_25 = arith.constant 1 : index
    %c110_26 = arith.constant 110 : index
    %57 = vector.load %arg1[%c0_24, %c1_25, %c110_26] : memref<1x4x640xf32, #tpu.memory_space<vmem>>, vector<1x1x384xf32>
    %58 = vector.shape_cast %57 : vector<1x1x384xf32> to vector<1x384xf32>
    %c0_27 = arith.constant 0 : index
    %c5 = arith.constant 5 : index
    %59 = vector.load %arg2[%c0_27, %c5] : memref<2x36xf32, #tpu.memory_space<vmem>>, vector<2x1xf32>
    %60 = vector.broadcast %59 : vector<2x1xf32> to vector<2x384xf32>
    %61 = vector.broadcast %58 : vector<1x384xf32> to vector<2x384xf32>
    %62 = arith.mulf %60, %61 : vector<2x384xf32>
    %63 = arith.addf %56, %62 : vector<2x384xf32>
    %c0_28 = arith.constant 0 : index
    %c2_29 = arith.constant 2 : index
    %c110_30 = arith.constant 110 : index
    %64 = vector.load %arg1[%c0_28, %c2_29, %c110_30] : memref<1x4x640xf32, #tpu.memory_space<vmem>>, vector<1x1x384xf32>
    %65 = vector.shape_cast %64 : vector<1x1x384xf32> to vector<1x384xf32>
    %c0_31 = arith.constant 0 : index
    %c6 = arith.constant 6 : index
    %66 = vector.load %arg2[%c0_31, %c6] : memref<2x36xf32, #tpu.memory_space<vmem>>, vector<2x1xf32>
    %67 = vector.broadcast %66 : vector<2x1xf32> to vector<2x384xf32>
    %68 = vector.broadcast %65 : vector<1x384xf32> to vector<2x384xf32>
    %69 = arith.mulf %67, %68 : vector<2x384xf32>
    %70 = arith.addf %63, %69 : vector<2x384xf32>
    %c0_32 = arith.constant 0 : index
    %c3_33 = arith.constant 3 : index
    %c110_34 = arith.constant 110 : index
    %71 = vector.load %arg1[%c0_32, %c3_33, %c110_34] : memref<1x4x640xf32, #tpu.memory_space<vmem>>, vector<1x1x384xf32>
    %72 = vector.shape_cast %71 : vector<1x1x384xf32> to vector<1x384xf32>
    %c0_35 = arith.constant 0 : index
    %c7 = arith.constant 7 : index
    %73 = vector.load %arg2[%c0_35, %c7] : memref<2x36xf32, #tpu.memory_space<vmem>>, vector<2x1xf32>
    %74 = vector.broadcast %73 : vector<2x1xf32> to vector<2x384xf32>
    %75 = vector.broadcast %72 : vector<1x384xf32> to vector<2x384xf32>
    %76 = arith.mulf %74, %75 : vector<2x384xf32>
    %77 = arith.addf %70, %76 : vector<2x384xf32>
    %c0_36 = arith.constant 0 : index
    %c0_37 = arith.constant 0 : index
    %c111 = arith.constant 111 : index
    %78 = vector.load %arg1[%c0_36, %c0_37, %c111] : memref<1x4x640xf32, #tpu.memory_space<vmem>>, vector<1x1x384xf32>
    %79 = vector.shape_cast %78 : vector<1x1x384xf32> to vector<1x384xf32>
    %c0_38 = arith.constant 0 : index
    %c8 = arith.constant 8 : index
    %80 = vector.load %arg2[%c0_38, %c8] : memref<2x36xf32, #tpu.memory_space<vmem>>, vector<2x1xf32>
    %81 = vector.broadcast %80 : vector<2x1xf32> to vector<2x384xf32>
    %82 = vector.broadcast %79 : vector<1x384xf32> to vector<2x384xf32>
    %83 = arith.mulf %81, %82 : vector<2x384xf32>
    %84 = arith.addf %77, %83 : vector<2x384xf32>
    %c0_39 = arith.constant 0 : index
    %c1_40 = arith.constant 1 : index
    %c111_41 = arith.constant 111 : index
    %85 = vector.load %arg1[%c0_39, %c1_40, %c111_41] : memref<1x4x640xf32, #tpu.memory_space<vmem>>, vector<1x1x384xf32>
    %86 = vector.shape_cast %85 : vector<1x1x384xf32> to vector<1x384xf32>
    %c0_42 = arith.constant 0 : index
    %c9 = arith.constant 9 : index
    %87 = vector.load %arg2[%c0_42, %c9] : memref<2x36xf32, #tpu.memory_space<vmem>>, vector<2x1xf32>
    %88 = vector.broadcast %87 : vector<2x1xf32> to vector<2x384xf32>
    %89 = vector.broadcast %86 : vector<1x384xf32> to vector<2x384xf32>
    %90 = arith.mulf %88, %89 : vector<2x384xf32>
    %91 = arith.addf %84, %90 : vector<2x384xf32>
    %c0_43 = arith.constant 0 : index
    %c2_44 = arith.constant 2 : index
    %c111_45 = arith.constant 111 : index
    %92 = vector.load %arg1[%c0_43, %c2_44, %c111_45] : memref<1x4x640xf32, #tpu.memory_space<vmem>>, vector<1x1x384xf32>
    %93 = vector.shape_cast %92 : vector<1x1x384xf32> to vector<1x384xf32>
    %c0_46 = arith.constant 0 : index
    %c10 = arith.constant 10 : index
    %94 = vector.load %arg2[%c0_46, %c10] : memref<2x36xf32, #tpu.memory_space<vmem>>, vector<2x1xf32>
    %95 = vector.broadcast %94 : vector<2x1xf32> to vector<2x384xf32>
    %96 = vector.broadcast %93 : vector<1x384xf32> to vector<2x384xf32>
    %97 = arith.mulf %95, %96 : vector<2x384xf32>
    %98 = arith.addf %91, %97 : vector<2x384xf32>
    %c0_47 = arith.constant 0 : index
    %c3_48 = arith.constant 3 : index
    %c111_49 = arith.constant 111 : index
    %99 = vector.load %arg1[%c0_47, %c3_48, %c111_49] : memref<1x4x640xf32, #tpu.memory_space<vmem>>, vector<1x1x384xf32>
    %100 = vector.shape_cast %99 : vector<1x1x384xf32> to vector<1x384xf32>
    %c0_50 = arith.constant 0 : index
    %c11 = arith.constant 11 : index
    %101 = vector.load %arg2[%c0_50, %c11] : memref<2x36xf32, #tpu.memory_space<vmem>>, vector<2x1xf32>
    %102 = vector.broadcast %101 : vector<2x1xf32> to vector<2x384xf32>
    %103 = vector.broadcast %100 : vector<1x384xf32> to vector<2x384xf32>
    %104 = arith.mulf %102, %103 : vector<2x384xf32>
    %105 = arith.addf %98, %104 : vector<2x384xf32>
    %c0_51 = arith.constant 0 : index
    %c0_52 = arith.constant 0 : index
    %c127 = arith.constant 127 : index
    %106 = vector.load %arg1[%c0_51, %c0_52, %c127] : memref<1x4x640xf32, #tpu.memory_space<vmem>>, vector<1x1x384xf32>
    %107 = vector.shape_cast %106 : vector<1x1x384xf32> to vector<1x384xf32>
    %c0_53 = arith.constant 0 : index
    %c12 = arith.constant 12 : index
    %108 = vector.load %arg2[%c0_53, %c12] : memref<2x36xf32, #tpu.memory_space<vmem>>, vector<2x1xf32>
    %109 = vector.broadcast %108 : vector<2x1xf32> to vector<2x384xf32>
    %110 = vector.broadcast %107 : vector<1x384xf32> to vector<2x384xf32>
    %111 = arith.mulf %109, %110 : vector<2x384xf32>
    %112 = arith.addf %105, %111 : vector<2x384xf32>
    %c0_54 = arith.constant 0 : index
    %c1_55 = arith.constant 1 : index
    %c127_56 = arith.constant 127 : index
    %113 = vector.load %arg1[%c0_54, %c1_55, %c127_56] : memref<1x4x640xf32, #tpu.memory_space<vmem>>, vector<1x1x384xf32>
    %114 = vector.shape_cast %113 : vector<1x1x384xf32> to vector<1x384xf32>
    %c0_57 = arith.constant 0 : index
    %c13 = arith.constant 13 : index
    %115 = vector.load %arg2[%c0_57, %c13] : memref<2x36xf32, #tpu.memory_space<vmem>>, vector<2x1xf32>
    %116 = vector.broadcast %115 : vector<2x1xf32> to vector<2x384xf32>
    %117 = vector.broadcast %114 : vector<1x384xf32> to vector<2x384xf32>
    %118 = arith.mulf %116, %117 : vector<2x384xf32>
    %119 = arith.addf %112, %118 : vector<2x384xf32>
    %c0_58 = arith.constant 0 : index
    %c2_59 = arith.constant 2 : index
    %c127_60 = arith.constant 127 : index
    %120 = vector.load %arg1[%c0_58, %c2_59, %c127_60] : memref<1x4x640xf32, #tpu.memory_space<vmem>>, vector<1x1x384xf32>
    %121 = vector.shape_cast %120 : vector<1x1x384xf32> to vector<1x384xf32>
    %c0_61 = arith.constant 0 : index
    %c14 = arith.constant 14 : index
    %122 = vector.load %arg2[%c0_61, %c14] : memref<2x36xf32, #tpu.memory_space<vmem>>, vector<2x1xf32>
    %123 = vector.broadcast %122 : vector<2x1xf32> to vector<2x384xf32>
    %124 = vector.broadcast %121 : vector<1x384xf32> to vector<2x384xf32>
    %125 = arith.mulf %123, %124 : vector<2x384xf32>
    %126 = arith.addf %119, %125 : vector<2x384xf32>
    %c0_62 = arith.constant 0 : index
    %c3_63 = arith.constant 3 : index
    %c127_64 = arith.constant 127 : index
    %127 = vector.load %arg1[%c0_62, %c3_63, %c127_64] : memref<1x4x640xf32, #tpu.memory_space<vmem>>, vector<1x1x384xf32>
    %128 = vector.shape_cast %127 : vector<1x1x384xf32> to vector<1x384xf32>
    %c0_65 = arith.constant 0 : index
    %c15 = arith.constant 15 : index
    %129 = vector.load %arg2[%c0_65, %c15] : memref<2x36xf32, #tpu.memory_space<vmem>>, vector<2x1xf32>
    %130 = vector.broadcast %129 : vector<2x1xf32> to vector<2x384xf32>
    %131 = vector.broadcast %128 : vector<1x384xf32> to vector<2x384xf32>
    %132 = arith.mulf %130, %131 : vector<2x384xf32>
    %133 = arith.addf %126, %132 : vector<2x384xf32>
    %c0_66 = arith.constant 0 : index
    %c0_67 = arith.constant 0 : index
    %c128 = arith.constant 128 : index
    %134 = vector.load %arg1[%c0_66, %c0_67, %c128] : memref<1x4x640xf32, #tpu.memory_space<vmem>>, vector<1x1x384xf32>
    %135 = vector.shape_cast %134 : vector<1x1x384xf32> to vector<1x384xf32>
    %c0_68 = arith.constant 0 : index
    %c16 = arith.constant 16 : index
    %136 = vector.load %arg2[%c0_68, %c16] : memref<2x36xf32, #tpu.memory_space<vmem>>, vector<2x1xf32>
    %137 = vector.broadcast %136 : vector<2x1xf32> to vector<2x384xf32>
    %138 = vector.broadcast %135 : vector<1x384xf32> to vector<2x384xf32>
    %139 = arith.mulf %137, %138 : vector<2x384xf32>
    %140 = arith.addf %133, %139 : vector<2x384xf32>
    %c0_69 = arith.constant 0 : index
    %c1_70 = arith.constant 1 : index
    %c128_71 = arith.constant 128 : index
    %141 = vector.load %arg1[%c0_69, %c1_70, %c128_71] : memref<1x4x640xf32, #tpu.memory_space<vmem>>, vector<1x1x384xf32>
    %142 = vector.shape_cast %141 : vector<1x1x384xf32> to vector<1x384xf32>
    %c0_72 = arith.constant 0 : index
    %c17 = arith.constant 17 : index
    %143 = vector.load %arg2[%c0_72, %c17] : memref<2x36xf32, #tpu.memory_space<vmem>>, vector<2x1xf32>
    %144 = vector.broadcast %143 : vector<2x1xf32> to vector<2x384xf32>
    %145 = vector.broadcast %142 : vector<1x384xf32> to vector<2x384xf32>
    %146 = arith.mulf %144, %145 : vector<2x384xf32>
    %147 = arith.addf %140, %146 : vector<2x384xf32>
    %c0_73 = arith.constant 0 : index
    %c2_74 = arith.constant 2 : index
    %c128_75 = arith.constant 128 : index
    %148 = vector.load %arg1[%c0_73, %c2_74, %c128_75] : memref<1x4x640xf32, #tpu.memory_space<vmem>>, vector<1x1x384xf32>
    %149 = vector.shape_cast %148 : vector<1x1x384xf32> to vector<1x384xf32>
    %c0_76 = arith.constant 0 : index
    %c18 = arith.constant 18 : index
    %150 = vector.load %arg2[%c0_76, %c18] : memref<2x36xf32, #tpu.memory_space<vmem>>, vector<2x1xf32>
    %151 = vector.broadcast %150 : vector<2x1xf32> to vector<2x384xf32>
    %152 = vector.broadcast %149 : vector<1x384xf32> to vector<2x384xf32>
    %153 = arith.mulf %151, %152 : vector<2x384xf32>
    %154 = arith.addf %147, %153 : vector<2x384xf32>
    %c0_77 = arith.constant 0 : index
    %c3_78 = arith.constant 3 : index
    %c128_79 = arith.constant 128 : index
    %155 = vector.load %arg1[%c0_77, %c3_78, %c128_79] : memref<1x4x640xf32, #tpu.memory_space<vmem>>, vector<1x1x384xf32>
    %156 = vector.shape_cast %155 : vector<1x1x384xf32> to vector<1x384xf32>
    %c0_80 = arith.constant 0 : index
    %c19 = arith.constant 19 : index
    %157 = vector.load %arg2[%c0_80, %c19] : memref<2x36xf32, #tpu.memory_space<vmem>>, vector<2x1xf32>
    %158 = vector.broadcast %157 : vector<2x1xf32> to vector<2x384xf32>
    %159 = vector.broadcast %156 : vector<1x384xf32> to vector<2x384xf32>
    %160 = arith.mulf %158, %159 : vector<2x384xf32>
    %161 = arith.addf %154, %160 : vector<2x384xf32>
    %c0_81 = arith.constant 0 : index
    %c0_82 = arith.constant 0 : index
    %c129 = arith.constant 129 : index
    %162 = vector.load %arg1[%c0_81, %c0_82, %c129] : memref<1x4x640xf32, #tpu.memory_space<vmem>>, vector<1x1x384xf32>
    %163 = vector.shape_cast %162 : vector<1x1x384xf32> to vector<1x384xf32>
    %c0_83 = arith.constant 0 : index
    %c20 = arith.constant 20 : index
    %164 = vector.load %arg2[%c0_83, %c20] : memref<2x36xf32, #tpu.memory_space<vmem>>, vector<2x1xf32>
    %165 = vector.broadcast %164 : vector<2x1xf32> to vector<2x384xf32>
    %166 = vector.broadcast %163 : vector<1x384xf32> to vector<2x384xf32>
    %167 = arith.mulf %165, %166 : vector<2x384xf32>
    %168 = arith.addf %161, %167 : vector<2x384xf32>
    %c0_84 = arith.constant 0 : index
    %c1_85 = arith.constant 1 : index
    %c129_86 = arith.constant 129 : index
    %169 = vector.load %arg1[%c0_84, %c1_85, %c129_86] : memref<1x4x640xf32, #tpu.memory_space<vmem>>, vector<1x1x384xf32>
    %170 = vector.shape_cast %169 : vector<1x1x384xf32> to vector<1x384xf32>
    %c0_87 = arith.constant 0 : index
    %c21 = arith.constant 21 : index
    %171 = vector.load %arg2[%c0_87, %c21] : memref<2x36xf32, #tpu.memory_space<vmem>>, vector<2x1xf32>
    %172 = vector.broadcast %171 : vector<2x1xf32> to vector<2x384xf32>
    %173 = vector.broadcast %170 : vector<1x384xf32> to vector<2x384xf32>
    %174 = arith.mulf %172, %173 : vector<2x384xf32>
    %175 = arith.addf %168, %174 : vector<2x384xf32>
    %c0_88 = arith.constant 0 : index
    %c2_89 = arith.constant 2 : index
    %c129_90 = arith.constant 129 : index
    %176 = vector.load %arg1[%c0_88, %c2_89, %c129_90] : memref<1x4x640xf32, #tpu.memory_space<vmem>>, vector<1x1x384xf32>
    %177 = vector.shape_cast %176 : vector<1x1x384xf32> to vector<1x384xf32>
    %c0_91 = arith.constant 0 : index
    %c22 = arith.constant 22 : index
    %178 = vector.load %arg2[%c0_91, %c22] : memref<2x36xf32, #tpu.memory_space<vmem>>, vector<2x1xf32>
    %179 = vector.broadcast %178 : vector<2x1xf32> to vector<2x384xf32>
    %180 = vector.broadcast %177 : vector<1x384xf32> to vector<2x384xf32>
    %181 = arith.mulf %179, %180 : vector<2x384xf32>
    %182 = arith.addf %175, %181 : vector<2x384xf32>
    %c0_92 = arith.constant 0 : index
    %c3_93 = arith.constant 3 : index
    %c129_94 = arith.constant 129 : index
    %183 = vector.load %arg1[%c0_92, %c3_93, %c129_94] : memref<1x4x640xf32, #tpu.memory_space<vmem>>, vector<1x1x384xf32>
    %184 = vector.shape_cast %183 : vector<1x1x384xf32> to vector<1x384xf32>
    %c0_95 = arith.constant 0 : index
    %c23 = arith.constant 23 : index
    %185 = vector.load %arg2[%c0_95, %c23] : memref<2x36xf32, #tpu.memory_space<vmem>>, vector<2x1xf32>
    %186 = vector.broadcast %185 : vector<2x1xf32> to vector<2x384xf32>
    %187 = vector.broadcast %184 : vector<1x384xf32> to vector<2x384xf32>
    %188 = arith.mulf %186, %187 : vector<2x384xf32>
    %189 = arith.addf %182, %188 : vector<2x384xf32>
    %c0_96 = arith.constant 0 : index
    %c0_97 = arith.constant 0 : index
    %c145 = arith.constant 145 : index
    %190 = vector.load %arg1[%c0_96, %c0_97, %c145] : memref<1x4x640xf32, #tpu.memory_space<vmem>>, vector<1x1x384xf32>
    %191 = vector.shape_cast %190 : vector<1x1x384xf32> to vector<1x384xf32>
    %c0_98 = arith.constant 0 : index
    %c24 = arith.constant 24 : index
    %192 = vector.load %arg2[%c0_98, %c24] : memref<2x36xf32, #tpu.memory_space<vmem>>, vector<2x1xf32>
    %193 = vector.broadcast %192 : vector<2x1xf32> to vector<2x384xf32>
    %194 = vector.broadcast %191 : vector<1x384xf32> to vector<2x384xf32>
    %195 = arith.mulf %193, %194 : vector<2x384xf32>
    %196 = arith.addf %189, %195 : vector<2x384xf32>
    %c0_99 = arith.constant 0 : index
    %c1_100 = arith.constant 1 : index
    %c145_101 = arith.constant 145 : index
    %197 = vector.load %arg1[%c0_99, %c1_100, %c145_101] : memref<1x4x640xf32, #tpu.memory_space<vmem>>, vector<1x1x384xf32>
    %198 = vector.shape_cast %197 : vector<1x1x384xf32> to vector<1x384xf32>
    %c0_102 = arith.constant 0 : index
    %c25 = arith.constant 25 : index
    %199 = vector.load %arg2[%c0_102, %c25] : memref<2x36xf32, #tpu.memory_space<vmem>>, vector<2x1xf32>
    %200 = vector.broadcast %199 : vector<2x1xf32> to vector<2x384xf32>
    %201 = vector.broadcast %198 : vector<1x384xf32> to vector<2x384xf32>
    %202 = arith.mulf %200, %201 : vector<2x384xf32>
    %203 = arith.addf %196, %202 : vector<2x384xf32>
    %c0_103 = arith.constant 0 : index
    %c2_104 = arith.constant 2 : index
    %c145_105 = arith.constant 145 : index
    %204 = vector.load %arg1[%c0_103, %c2_104, %c145_105] : memref<1x4x640xf32, #tpu.memory_space<vmem>>, vector<1x1x384xf32>
    %205 = vector.shape_cast %204 : vector<1x1x384xf32> to vector<1x384xf32>
    %c0_106 = arith.constant 0 : index
    %c26 = arith.constant 26 : index
    %206 = vector.load %arg2[%c0_106, %c26] : memref<2x36xf32, #tpu.memory_space<vmem>>, vector<2x1xf32>
    %207 = vector.broadcast %206 : vector<2x1xf32> to vector<2x384xf32>
    %208 = vector.broadcast %205 : vector<1x384xf32> to vector<2x384xf32>
    %209 = arith.mulf %207, %208 : vector<2x384xf32>
    %210 = arith.addf %203, %209 : vector<2x384xf32>
    %c0_107 = arith.constant 0 : index
    %c3_108 = arith.constant 3 : index
    %c145_109 = arith.constant 145 : index
    %211 = vector.load %arg1[%c0_107, %c3_108, %c145_109] : memref<1x4x640xf32, #tpu.memory_space<vmem>>, vector<1x1x384xf32>
    %212 = vector.shape_cast %211 : vector<1x1x384xf32> to vector<1x384xf32>
    %c0_110 = arith.constant 0 : index
    %c27 = arith.constant 27 : index
    %213 = vector.load %arg2[%c0_110, %c27] : memref<2x36xf32, #tpu.memory_space<vmem>>, vector<2x1xf32>
    %214 = vector.broadcast %213 : vector<2x1xf32> to vector<2x384xf32>
    %215 = vector.broadcast %212 : vector<1x384xf32> to vector<2x384xf32>
    %216 = arith.mulf %214, %215 : vector<2x384xf32>
    %217 = arith.addf %210, %216 : vector<2x384xf32>
    %c0_111 = arith.constant 0 : index
    %c0_112 = arith.constant 0 : index
    %c146 = arith.constant 146 : index
    %218 = vector.load %arg1[%c0_111, %c0_112, %c146] : memref<1x4x640xf32, #tpu.memory_space<vmem>>, vector<1x1x384xf32>
    %219 = vector.shape_cast %218 : vector<1x1x384xf32> to vector<1x384xf32>
    %c0_113 = arith.constant 0 : index
    %c28 = arith.constant 28 : index
    %220 = vector.load %arg2[%c0_113, %c28] : memref<2x36xf32, #tpu.memory_space<vmem>>, vector<2x1xf32>
    %221 = vector.broadcast %220 : vector<2x1xf32> to vector<2x384xf32>
    %222 = vector.broadcast %219 : vector<1x384xf32> to vector<2x384xf32>
    %223 = arith.mulf %221, %222 : vector<2x384xf32>
    %224 = arith.addf %217, %223 : vector<2x384xf32>
    %c0_114 = arith.constant 0 : index
    %c1_115 = arith.constant 1 : index
    %c146_116 = arith.constant 146 : index
    %225 = vector.load %arg1[%c0_114, %c1_115, %c146_116] : memref<1x4x640xf32, #tpu.memory_space<vmem>>, vector<1x1x384xf32>
    %226 = vector.shape_cast %225 : vector<1x1x384xf32> to vector<1x384xf32>
    %c0_117 = arith.constant 0 : index
    %c29 = arith.constant 29 : index
    %227 = vector.load %arg2[%c0_117, %c29] : memref<2x36xf32, #tpu.memory_space<vmem>>, vector<2x1xf32>
    %228 = vector.broadcast %227 : vector<2x1xf32> to vector<2x384xf32>
    %229 = vector.broadcast %226 : vector<1x384xf32> to vector<2x384xf32>
    %230 = arith.mulf %228, %229 : vector<2x384xf32>
    %231 = arith.addf %224, %230 : vector<2x384xf32>
    %c0_118 = arith.constant 0 : index
    %c2_119 = arith.constant 2 : index
    %c146_120 = arith.constant 146 : index
    %232 = vector.load %arg1[%c0_118, %c2_119, %c146_120] : memref<1x4x640xf32, #tpu.memory_space<vmem>>, vector<1x1x384xf32>
    %233 = vector.shape_cast %232 : vector<1x1x384xf32> to vector<1x384xf32>
    %c0_121 = arith.constant 0 : index
    %c30 = arith.constant 30 : index
    %234 = vector.load %arg2[%c0_121, %c30] : memref<2x36xf32, #tpu.memory_space<vmem>>, vector<2x1xf32>
    %235 = vector.broadcast %234 : vector<2x1xf32> to vector<2x384xf32>
    %236 = vector.broadcast %233 : vector<1x384xf32> to vector<2x384xf32>
    %237 = arith.mulf %235, %236 : vector<2x384xf32>
    %238 = arith.addf %231, %237 : vector<2x384xf32>
    %c0_122 = arith.constant 0 : index
    %c3_123 = arith.constant 3 : index
    %c146_124 = arith.constant 146 : index
    %239 = vector.load %arg1[%c0_122, %c3_123, %c146_124] : memref<1x4x640xf32, #tpu.memory_space<vmem>>, vector<1x1x384xf32>
    %240 = vector.shape_cast %239 : vector<1x1x384xf32> to vector<1x384xf32>
    %c0_125 = arith.constant 0 : index
    %c31 = arith.constant 31 : index
    %241 = vector.load %arg2[%c0_125, %c31] : memref<2x36xf32, #tpu.memory_space<vmem>>, vector<2x1xf32>
    %242 = vector.broadcast %241 : vector<2x1xf32> to vector<2x384xf32>
    %243 = vector.broadcast %240 : vector<1x384xf32> to vector<2x384xf32>
    %244 = arith.mulf %242, %243 : vector<2x384xf32>
    %245 = arith.addf %238, %244 : vector<2x384xf32>
    %c0_126 = arith.constant 0 : index
    %c0_127 = arith.constant 0 : index
    %c147 = arith.constant 147 : index
    %246 = vector.load %arg1[%c0_126, %c0_127, %c147] : memref<1x4x640xf32, #tpu.memory_space<vmem>>, vector<1x1x384xf32>
    %247 = vector.shape_cast %246 : vector<1x1x384xf32> to vector<1x384xf32>
    %c0_128 = arith.constant 0 : index
    %c32 = arith.constant 32 : index
    %248 = vector.load %arg2[%c0_128, %c32] : memref<2x36xf32, #tpu.memory_space<vmem>>, vector<2x1xf32>
    %249 = vector.broadcast %248 : vector<2x1xf32> to vector<2x384xf32>
    %250 = vector.broadcast %247 : vector<1x384xf32> to vector<2x384xf32>
    %251 = arith.mulf %249, %250 : vector<2x384xf32>
    %252 = arith.addf %245, %251 : vector<2x384xf32>
    %c0_129 = arith.constant 0 : index
    %c1_130 = arith.constant 1 : index
    %c147_131 = arith.constant 147 : index
    %253 = vector.load %arg1[%c0_129, %c1_130, %c147_131] : memref<1x4x640xf32, #tpu.memory_space<vmem>>, vector<1x1x384xf32>
    %254 = vector.shape_cast %253 : vector<1x1x384xf32> to vector<1x384xf32>
    %c0_132 = arith.constant 0 : index
    %c33 = arith.constant 33 : index
    %255 = vector.load %arg2[%c0_132, %c33] : memref<2x36xf32, #tpu.memory_space<vmem>>, vector<2x1xf32>
    %256 = vector.broadcast %255 : vector<2x1xf32> to vector<2x384xf32>
    %257 = vector.broadcast %254 : vector<1x384xf32> to vector<2x384xf32>
    %258 = arith.mulf %256, %257 : vector<2x384xf32>
    %259 = arith.addf %252, %258 : vector<2x384xf32>
    %c0_133 = arith.constant 0 : index
    %c2_134 = arith.constant 2 : index
    %c147_135 = arith.constant 147 : index
    %260 = vector.load %arg1[%c0_133, %c2_134, %c147_135] : memref<1x4x640xf32, #tpu.memory_space<vmem>>, vector<1x1x384xf32>
    %261 = vector.shape_cast %260 : vector<1x1x384xf32> to vector<1x384xf32>
    %c0_136 = arith.constant 0 : index
    %c34 = arith.constant 34 : index
    %262 = vector.load %arg2[%c0_136, %c34] : memref<2x36xf32, #tpu.memory_space<vmem>>, vector<2x1xf32>
    %263 = vector.broadcast %262 : vector<2x1xf32> to vector<2x384xf32>
    %264 = vector.broadcast %261 : vector<1x384xf32> to vector<2x384xf32>
    %265 = arith.mulf %263, %264 : vector<2x384xf32>
    %266 = arith.addf %259, %265 : vector<2x384xf32>
    %c0_137 = arith.constant 0 : index
    %c3_138 = arith.constant 3 : index
    %c147_139 = arith.constant 147 : index
    %267 = vector.load %arg1[%c0_137, %c3_138, %c147_139] : memref<1x4x640xf32, #tpu.memory_space<vmem>>, vector<1x1x384xf32>
    %268 = vector.shape_cast %267 : vector<1x1x384xf32> to vector<1x384xf32>
    %c0_140 = arith.constant 0 : index
    %c35 = arith.constant 35 : index
    %269 = vector.load %arg2[%c0_140, %c35] : memref<2x36xf32, #tpu.memory_space<vmem>>, vector<2x1xf32>
    %270 = vector.broadcast %269 : vector<2x1xf32> to vector<2x384xf32>
    %271 = vector.broadcast %268 : vector<1x384xf32> to vector<2x384xf32>
    %272 = arith.mulf %270, %271 : vector<2x384xf32>
    %273 = arith.addf %266, %272 : vector<2x384xf32>
    %c0_141 = arith.constant 0 : index
    %c0_142 = arith.constant 0 : index
    %274 = vector.load %arg3[%c0_141, %c0_142] : memref<2x1xf32, #tpu.memory_space<vmem>>, vector<2x1xf32>
    %275 = vector.broadcast %274 : vector<2x1xf32> to vector<2x384xf32>
    %276 = arith.addf %273, %275 : vector<2x384xf32>
    %cst_143 = arith.constant 0.000000e+00 : f32
    %cst_144 = arith.constant 6.000000e+00 : f32
    %277 = vector.broadcast %cst_143 : f32 to vector<2x384xf32>
    %278 = arith.maximumf %277, %276 : vector<2x384xf32>
    %279 = vector.broadcast %cst_144 : f32 to vector<2x384xf32>
    %280 = arith.minimumf %279, %278 : vector<2x384xf32>
    %281 = vector.broadcast %20 : vector<1x384xf32> to vector<2x384xf32>
    %282 = arith.mulf %280, %281 : vector<2x384xf32>
    %cst_145 = arith.constant 0.000000e+00 : f32
    %283 = vector.broadcast %cst_145 : f32 to vector<2x128xf32>
    %c0_146 = arith.constant 0 : index
    %c0_147 = arith.constant 0 : index
    %284 = vector.load %arg7[%c0_146, %c0_147] : memref<2x640xf32, #tpu.memory_space<vmem>>, vector<2x128xf32>
    tpu.vector_store %arg7[%c0_146, %c0_147], %283 {strides = array<i32>} : memref<2x640xf32, #tpu.memory_space<vmem>>, vector<2x128xf32>,
    %cst_148 = arith.constant 0.000000e+00 : f32
    %285 = vector.broadcast %cst_148 : f32 to vector<2x128xf32>
    %c0_149 = arith.constant 0 : index
    %c512 = arith.constant 512 : index
    %286 = vector.load %arg7[%c0_149, %c512] : memref<2x640xf32, #tpu.memory_space<vmem>>, vector<2x128xf32>
    tpu.vector_store %arg7[%c0_149, %c512], %285 {strides = array<i32>} : memref<2x640xf32, #tpu.memory_space<vmem>>, vector<2x128xf32>,
    %c0_150 = arith.constant 0 : index
    %c128_151 = arith.constant 128 : index
    %287 = vector.load %arg7[%c0_150, %c128_151] : memref<2x640xf32, #tpu.memory_space<vmem>>, vector<2x384xf32>
    tpu.vector_store %arg7[%c0_150, %c128_151], %282 {strides = array<i32>} : memref<2x640xf32, #tpu.memory_space<vmem>>, vector<2x384xf32>,
    %cst_152 = arith.constant 0.000000e+00 : f32
    %288 = vector.broadcast %cst_152 : f32 to vector<4x384xf32>
    %c0_153 = arith.constant 0 : index
    %c109_154 = arith.constant 109 : index
    %289 = vector.load %arg7[%c0_153, %c109_154] : memref<2x640xf32, #tpu.memory_space<vmem>>, vector<1x384xf32>
    %c0_155 = arith.constant 0 : index
    %c0_156 = arith.constant 0 : index
    %290 = vector.load %arg4[%c0_155, %c0_156] : memref<4x18xf32, #tpu.memory_space<vmem>>, vector<4x1xf32>
    %291 = vector.broadcast %290 : vector<4x1xf32> to vector<4x384xf32>
    %292 = vector.broadcast %289 : vector<1x384xf32> to vector<4x384xf32>
    %293 = arith.mulf %291, %292 : vector<4x384xf32>
    %294 = arith.addf %288, %293 : vector<4x384xf32>
    %c1_157 = arith.constant 1 : index
    %c109_158 = arith.constant 109 : index
    %295 = vector.load %arg7[%c1_157, %c109_158] : memref<2x640xf32, #tpu.memory_space<vmem>>, vector<1x384xf32>
    %c0_159 = arith.constant 0 : index
    %c1_160 = arith.constant 1 : index
    %296 = vector.load %arg4[%c0_159, %c1_160] : memref<4x18xf32, #tpu.memory_space<vmem>>, vector<4x1xf32>
    %297 = vector.broadcast %296 : vector<4x1xf32> to vector<4x384xf32>
    %298 = vector.broadcast %295 : vector<1x384xf32> to vector<4x384xf32>
    %299 = arith.mulf %297, %298 : vector<4x384xf32>
    %300 = arith.addf %294, %299 : vector<4x384xf32>
    %c0_161 = arith.constant 0 : index
    %c110_162 = arith.constant 110 : index
    %301 = vector.load %arg7[%c0_161, %c110_162] : memref<2x640xf32, #tpu.memory_space<vmem>>, vector<1x384xf32>
    %c0_163 = arith.constant 0 : index
    %c2_164 = arith.constant 2 : index
    %302 = vector.load %arg4[%c0_163, %c2_164] : memref<4x18xf32, #tpu.memory_space<vmem>>, vector<4x1xf32>
    %303 = vector.broadcast %302 : vector<4x1xf32> to vector<4x384xf32>
    %304 = vector.broadcast %301 : vector<1x384xf32> to vector<4x384xf32>
    %305 = arith.mulf %303, %304 : vector<4x384xf32>
    %306 = arith.addf %300, %305 : vector<4x384xf32>
    %c1_165 = arith.constant 1 : index
    %c110_166 = arith.constant 110 : index
    %307 = vector.load %arg7[%c1_165, %c110_166] : memref<2x640xf32, #tpu.memory_space<vmem>>, vector<1x384xf32>
    %c0_167 = arith.constant 0 : index
    %c3_168 = arith.constant 3 : index
    %308 = vector.load %arg4[%c0_167, %c3_168] : memref<4x18xf32, #tpu.memory_space<vmem>>, vector<4x1xf32>
    %309 = vector.broadcast %308 : vector<4x1xf32> to vector<4x384xf32>
    %310 = vector.broadcast %307 : vector<1x384xf32> to vector<4x384xf32>
    %311 = arith.mulf %309, %310 : vector<4x384xf32>
    %312 = arith.addf %306, %311 : vector<4x384xf32>
    %c0_169 = arith.constant 0 : index
    %c111_170 = arith.constant 111 : index
    %313 = vector.load %arg7[%c0_169, %c111_170] : memref<2x640xf32, #tpu.memory_space<vmem>>, vector<1x384xf32>
    %c0_171 = arith.constant 0 : index
    %c4_172 = arith.constant 4 : index
    %314 = vector.load %arg4[%c0_171, %c4_172] : memref<4x18xf32, #tpu.memory_space<vmem>>, vector<4x1xf32>
    %315 = vector.broadcast %314 : vector<4x1xf32> to vector<4x384xf32>
    %316 = vector.broadcast %313 : vector<1x384xf32> to vector<4x384xf32>
    %317 = arith.mulf %315, %316 : vector<4x384xf32>
    %318 = arith.addf %312, %317 : vector<4x384xf32>
    %c1_173 = arith.constant 1 : index
    %c111_174 = arith.constant 111 : index
    %319 = vector.load %arg7[%c1_173, %c111_174] : memref<2x640xf32, #tpu.memory_space<vmem>>, vector<1x384xf32>
    %c0_175 = arith.constant 0 : index
    %c5_176 = arith.constant 5 : index
    %320 = vector.load %arg4[%c0_175, %c5_176] : memref<4x18xf32, #tpu.memory_space<vmem>>, vector<4x1xf32>
    %321 = vector.broadcast %320 : vector<4x1xf32> to vector<4x384xf32>
    %322 = vector.broadcast %319 : vector<1x384xf32> to vector<4x384xf32>
    %323 = arith.mulf %321, %322 : vector<4x384xf32>
    %324 = arith.addf %318, %323 : vector<4x384xf32>
    %c0_177 = arith.constant 0 : index
    %c127_178 = arith.constant 127 : index
    %325 = vector.load %arg7[%c0_177, %c127_178] : memref<2x640xf32, #tpu.memory_space<vmem>>, vector<1x384xf32>
    %c0_179 = arith.constant 0 : index
    %c6_180 = arith.constant 6 : index
    %326 = vector.load %arg4[%c0_179, %c6_180] : memref<4x18xf32, #tpu.memory_space<vmem>>, vector<4x1xf32>
    %327 = vector.broadcast %326 : vector<4x1xf32> to vector<4x384xf32>
    %328 = vector.broadcast %325 : vector<1x384xf32> to vector<4x384xf32>
    %329 = arith.mulf %327, %328 : vector<4x384xf32>
    %330 = arith.addf %324, %329 : vector<4x384xf32>
    %c1_181 = arith.constant 1 : index
    %c127_182 = arith.constant 127 : index
    %331 = vector.load %arg7[%c1_181, %c127_182] : memref<2x640xf32, #tpu.memory_space<vmem>>, vector<1x384xf32>
    %c0_183 = arith.constant 0 : index
    %c7_184 = arith.constant 7 : index
    %332 = vector.load %arg4[%c0_183, %c7_184] : memref<4x18xf32, #tpu.memory_space<vmem>>, vector<4x1xf32>
    %333 = vector.broadcast %332 : vector<4x1xf32> to vector<4x384xf32>
    %334 = vector.broadcast %331 : vector<1x384xf32> to vector<4x384xf32>
    %335 = arith.mulf %333, %334 : vector<4x384xf32>
    %336 = arith.addf %330, %335 : vector<4x384xf32>
    %c0_185 = arith.constant 0 : index
    %c128_186 = arith.constant 128 : index
    %337 = vector.load %arg7[%c0_185, %c128_186] : memref<2x640xf32, #tpu.memory_space<vmem>>, vector<1x384xf32>
    %c0_187 = arith.constant 0 : index
    %c8_188 = arith.constant 8 : index
    %338 = vector.load %arg4[%c0_187, %c8_188] : memref<4x18xf32, #tpu.memory_space<vmem>>, vector<4x1xf32>
    %339 = vector.broadcast %338 : vector<4x1xf32> to vector<4x384xf32>
    %340 = vector.broadcast %337 : vector<1x384xf32> to vector<4x384xf32>
    %341 = arith.mulf %339, %340 : vector<4x384xf32>
    %342 = arith.addf %336, %341 : vector<4x384xf32>
    %c1_189 = arith.constant 1 : index
    %c128_190 = arith.constant 128 : index
    %343 = vector.load %arg7[%c1_189, %c128_190] : memref<2x640xf32, #tpu.memory_space<vmem>>, vector<1x384xf32>
    %c0_191 = arith.constant 0 : index
    %c9_192 = arith.constant 9 : index
    %344 = vector.load %arg4[%c0_191, %c9_192] : memref<4x18xf32, #tpu.memory_space<vmem>>, vector<4x1xf32>
    %345 = vector.broadcast %344 : vector<4x1xf32> to vector<4x384xf32>
    %346 = vector.broadcast %343 : vector<1x384xf32> to vector<4x384xf32>
    %347 = arith.mulf %345, %346 : vector<4x384xf32>
    %348 = arith.addf %342, %347 : vector<4x384xf32>
    %c0_193 = arith.constant 0 : index
    %c129_194 = arith.constant 129 : index
    %349 = vector.load %arg7[%c0_193, %c129_194] : memref<2x640xf32, #tpu.memory_space<vmem>>, vector<1x384xf32>
    %c0_195 = arith.constant 0 : index
    %c10_196 = arith.constant 10 : index
    %350 = vector.load %arg4[%c0_195, %c10_196] : memref<4x18xf32, #tpu.memory_space<vmem>>, vector<4x1xf32>
    %351 = vector.broadcast %350 : vector<4x1xf32> to vector<4x384xf32>
    %352 = vector.broadcast %349 : vector<1x384xf32> to vector<4x384xf32>
    %353 = arith.mulf %351, %352 : vector<4x384xf32>
    %354 = arith.addf %348, %353 : vector<4x384xf32>
    %c1_197 = arith.constant 1 : index
    %c129_198 = arith.constant 129 : index
    %355 = vector.load %arg7[%c1_197, %c129_198] : memref<2x640xf32, #tpu.memory_space<vmem>>, vector<1x384xf32>
    %c0_199 = arith.constant 0 : index
    %c11_200 = arith.constant 11 : index
    %356 = vector.load %arg4[%c0_199, %c11_200] : memref<4x18xf32, #tpu.memory_space<vmem>>, vector<4x1xf32>
    %357 = vector.broadcast %356 : vector<4x1xf32> to vector<4x384xf32>
    %358 = vector.broadcast %355 : vector<1x384xf32> to vector<4x384xf32>
    %359 = arith.mulf %357, %358 : vector<4x384xf32>
    %360 = arith.addf %354, %359 : vector<4x384xf32>
    %c0_201 = arith.constant 0 : index
    %c145_202 = arith.constant 145 : index
    %361 = vector.load %arg7[%c0_201, %c145_202] : memref<2x640xf32, #tpu.memory_space<vmem>>, vector<1x384xf32>
    %c0_203 = arith.constant 0 : index
    %c12_204 = arith.constant 12 : index
    %362 = vector.load %arg4[%c0_203, %c12_204] : memref<4x18xf32, #tpu.memory_space<vmem>>, vector<4x1xf32>
    %363 = vector.broadcast %362 : vector<4x1xf32> to vector<4x384xf32>
    %364 = vector.broadcast %361 : vector<1x384xf32> to vector<4x384xf32>
    %365 = arith.mulf %363, %364 : vector<4x384xf32>
    %366 = arith.addf %360, %365 : vector<4x384xf32>
    %c1_205 = arith.constant 1 : index
    %c145_206 = arith.constant 145 : index
    %367 = vector.load %arg7[%c1_205, %c145_206] : memref<2x640xf32, #tpu.memory_space<vmem>>, vector<1x384xf32>
    %c0_207 = arith.constant 0 : index
    %c13_208 = arith.constant 13 : index
    %368 = vector.load %arg4[%c0_207, %c13_208] : memref<4x18xf32, #tpu.memory_space<vmem>>, vector<4x1xf32>
    %369 = vector.broadcast %368 : vector<4x1xf32> to vector<4x384xf32>
    %370 = vector.broadcast %367 : vector<1x384xf32> to vector<4x384xf32>
    %371 = arith.mulf %369, %370 : vector<4x384xf32>
    %372 = arith.addf %366, %371 : vector<4x384xf32>
    %c0_209 = arith.constant 0 : index
    %c146_210 = arith.constant 146 : index
    %373 = vector.load %arg7[%c0_209, %c146_210] : memref<2x640xf32, #tpu.memory_space<vmem>>, vector<1x384xf32>
    %c0_211 = arith.constant 0 : index
    %c14_212 = arith.constant 14 : index
    %374 = vector.load %arg4[%c0_211, %c14_212] : memref<4x18xf32, #tpu.memory_space<vmem>>, vector<4x1xf32>
    %375 = vector.broadcast %374 : vector<4x1xf32> to vector<4x384xf32>
    %376 = vector.broadcast %373 : vector<1x384xf32> to vector<4x384xf32>
    %377 = arith.mulf %375, %376 : vector<4x384xf32>
    %378 = arith.addf %372, %377 : vector<4x384xf32>
    %c1_213 = arith.constant 1 : index
    %c146_214 = arith.constant 146 : index
    %379 = vector.load %arg7[%c1_213, %c146_214] : memref<2x640xf32, #tpu.memory_space<vmem>>, vector<1x384xf32>
    %c0_215 = arith.constant 0 : index
    %c15_216 = arith.constant 15 : index
    %380 = vector.load %arg4[%c0_215, %c15_216] : memref<4x18xf32, #tpu.memory_space<vmem>>, vector<4x1xf32>
    %381 = vector.broadcast %380 : vector<4x1xf32> to vector<4x384xf32>
    %382 = vector.broadcast %379 : vector<1x384xf32> to vector<4x384xf32>
    %383 = arith.mulf %381, %382 : vector<4x384xf32>
    %384 = arith.addf %378, %383 : vector<4x384xf32>
    %c0_217 = arith.constant 0 : index
    %c147_218 = arith.constant 147 : index
    %385 = vector.load %arg7[%c0_217, %c147_218] : memref<2x640xf32, #tpu.memory_space<vmem>>, vector<1x384xf32>
    %c0_219 = arith.constant 0 : index
    %c16_220 = arith.constant 16 : index
    %386 = vector.load %arg4[%c0_219, %c16_220] : memref<4x18xf32, #tpu.memory_space<vmem>>, vector<4x1xf32>
    %387 = vector.broadcast %386 : vector<4x1xf32> to vector<4x384xf32>
    %388 = vector.broadcast %385 : vector<1x384xf32> to vector<4x384xf32>
    %389 = arith.mulf %387, %388 : vector<4x384xf32>
    %390 = arith.addf %384, %389 : vector<4x384xf32>
    %c1_221 = arith.constant 1 : index
    %c147_222 = arith.constant 147 : index
    %391 = vector.load %arg7[%c1_221, %c147_222] : memref<2x640xf32, #tpu.memory_space<vmem>>, vector<1x384xf32>
    %c0_223 = arith.constant 0 : index
    %c17_224 = arith.constant 17 : index
    %392 = vector.load %arg4[%c0_223, %c17_224] : memref<4x18xf32, #tpu.memory_space<vmem>>, vector<4x1xf32>
    %393 = vector.broadcast %392 : vector<4x1xf32> to vector<4x384xf32>
    %394 = vector.broadcast %391 : vector<1x384xf32> to vector<4x384xf32>
    %395 = arith.mulf %393, %394 : vector<4x384xf32>
    %396 = arith.addf %390, %395 : vector<4x384xf32>
    %c0_225 = arith.constant 0 : index
    %c0_226 = arith.constant 0 : index
    %397 = vector.load %arg5[%c0_225, %c0_226] : memref<4x1xf32, #tpu.memory_space<vmem>>, vector<4x1xf32>
    %398 = vector.broadcast %397 : vector<4x1xf32> to vector<4x384xf32>
    %399 = arith.addf %396, %398 : vector<4x384xf32>
    %cst_227 = arith.constant 0.000000e+00 : f32
    %cst_228 = arith.constant 6.000000e+00 : f32
    %400 = vector.broadcast %cst_227 : f32 to vector<4x384xf32>
    %401 = arith.maximumf %400, %399 : vector<4x384xf32>
    %402 = vector.broadcast %cst_228 : f32 to vector<4x384xf32>
    %403 = arith.minimumf %402, %401 : vector<4x384xf32>
    %c0_229 = arith.constant 0 : index
    %c0_230 = arith.constant 0 : index
    %c128_231 = arith.constant 128 : index
    %404 = vector.load %arg1[%c0_229, %c0_230, %c128_231] : memref<1x4x640xf32, #tpu.memory_space<vmem>>, vector<1x4x384xf32>
    %405 = vector.shape_cast %404 : vector<1x4x384xf32> to vector<4x384xf32>
    %406 = arith.addf %403, %405 : vector<4x384xf32>
    %c0_232 = arith.constant 0 : index
    %c0_233 = arith.constant 0 : index
    %c0_234 = arith.constant 0 : index
    %407 = vector.load %arg6[%c0_232, %c0_233, %c0_234] : memref<1x4x384xf32, #tpu.memory_space<vmem>>, vector<1x4x384xf32>
    %408 = vector.shape_cast %407 : vector<1x4x384xf32> to vector<4x384xf32>
    %409 = vector.shape_cast %406 : vector<4x384xf32> to vector<1x4x384xf32>
    tpu.vector_store %arg6[%c0_232, %c0_233, %c0_234], %409 {strides = array<i32>} : memref<1x4x384xf32, #tpu.memory_space<vmem>>, vector<1x4x384xf32>,
    return
  }
  func.func @transform_0(%arg0: i32) -> (i32, i32, i32) {
    %c0_i32 = arith.constant 0 : i32
    %c0_i32_0 = arith.constant 0 : i32
    %c0_i32_1 = arith.constant 0 : i32
    return %arg0, %c0_i32, %c0_i32_0 : i32, i32, i32
  }
  func.func @transform_1(%arg0: i32) -> (i32, i32) {
    %c0_i32 = arith.constant 0 : i32
    %c0_i32_0 = arith.constant 0 : i32
    %c0_i32_1 = arith.constant 0 : i32
    return %c0_i32, %c0_i32_0 : i32, i32
  }
  func.func @transform_2(%arg0: i32) -> (i32, i32) {
    %c0_i32 = arith.constant 0 : i32
    %c0_i32_0 = arith.constant 0 : i32
    %c0_i32_1 = arith.constant 0 : i32
    return %c0_i32, %c0_i32_0 : i32, i32
  }
  func.func @transform_3(%arg0: i32) -> (i32, i32) {
    %c0_i32 = arith.constant 0 : i32
    %c0_i32_0 = arith.constant 0 : i32
    %c0_i32_1 = arith.constant 0 : i32
    return %c0_i32, %c0_i32_0 : i32, i32
  }
  func.func @transform_4(%arg0: i32) -> (i32, i32) {
    %c0_i32 = arith.constant 0 : i32
    %c0_i32_0 = arith.constant 0 : i32
    %c0_i32_1 = arith.constant 0 : i32
    return %c0_i32, %c0_i32_0 : i32, i32
  }
  func.func @transform_5(%arg0: i32) -> (i32, i32, i32) {
    %c0_i32 = arith.constant 0 : i32
    %c0_i32_0 = arith.constant 0 : i32
    %c0_i32_1 = arith.constant 0 : i32
    return %arg0, %c0_i32, %c0_i32_0 : i32, i32, i32
  }
}

</mosaic_0001>

<bundles_post_ra>
// kernel: bottleneck_forward.1
= control target key start
LH: loop header
LB: loop body
LE: loop exit
PB: predicated region body
PF: predicated region fallthrough
CT: control target
= control target key end

     0   :  { %s2602_s18 = smov 0   ;;  %s4010_s0 = inlined_call_operand.vmem [shape: f32[2,4,640], index: 0, kind: input, shape index: {}]   ;;  %s4011_s1 = inlined_call_operand.vmem [shape: f32[2,36], index: 1, kind: input, shape index: {}]   ;;  %s4012_s2 = inlined_call_operand.vmem [shape: f32[2,1], index: 2, kind: input, shape index: {}]   ;;  %s4013_s3 = inlined_call_operand.vmem [shape: f32[4,18], index: 3, kind: input, shape index: {}]   ;;  %s4014_s4 = inlined_call_operand.vmem [shape: f32[4,1], index: 4, kind: input, shape index: {}]   ;;  %s4015_s5 = inlined_call_operand.vmem [shape: f32[2,4,384], index: 5, kind: output, shape index: {}]  }
   0x1 LB: > { %s2376_s19 = sadd.s32 4294967295, %s2523_s18   ;;  %p2380_p0 = scmp.ge.s32.totalorder %s2523_s18, 1  ;;  %s2523_s18 = sphi %s2602_s18, %s15_s18  }
   0x2   : > { %p187_p1 = scmp.lt.s32.totalorder %s2523_s18, 3 }
   0x4   : > { %p188_p2 = pnand %p2380_p0, %p187_p1 }
   0x6   : > { %191 = sbr.rel (%p188_p2) target bundleno = 1917 (0x77d), region = 40 }
   0xd   : > { %v2613_v0 = vld [vmem:[%s4011_s1] sm:$0x3]  ;;  %v4033_v1 = vmov 2   ;;  %v4020_v2 = vmov 1   ;;  %v4031_v3 = vmov 3   ;;  %v4029_v4 = vmov 5  }
   0xe   : > { %2457 = vset.pattern.permute.xlu1 %v4033_v1  ;;  %2456 = vset.pattern.permute.xlu0 %v4020_v2  ;;  %v4030_v5 = vmov 4   ;;  %v4019_v6 = vmov 6   ;;  %v4028_v7 = vmov 7   ;;  %v4027_v8 = vmov 8   ;;  %p215_p3 = scmp.lt.s32.totalorder %s2376_s19, 1  ;;  %s2540_s26 = smov 127  }
   0xf   : > { %345 = vperm.xlu1 %2457, %v2613_v0   ;;  %310 = vperm.xlu0 %2456, %v2613_v0   ;;  %v4018_v9 = vmov 9   ;;  %v4026_v10 = vmov 10   ;;  %v4025_v11 = vmov 11   ;;  %v4017_v12 = vmov 12   ;;  %s2541_s27 = smov 126   ;;  %s2542_s28 = smov 110  }
  0x10   : > { %v4024_v13 = vmov 13   ;;  %v4023_v14 = vmov 14   ;;  %v4016_v15 = vmov 15   ;;  %s4232_s19 = smov (!%p215_p3, %s2376_s19), 1  ;;  %v4032_v16 = vlaneseq  ;;  %s2545_s29 = smov 109  }
  0x11   : > { %s2399_s22 = smul.u32 20, %s4232_s19  ;;  %s2551_s30 = smov 108  }
  0x12   : > { %v2656_v19 = vshrl.u32 %v4032_v16, 7  ;;  %v2546_v16 = vmov 18   ;;  %s2567_s6 = smov 92   ;;  %s2568_s7 = smov 91  }
  0x13   : > { %2458 = vset.pattern.permute.xlu1 %v4031_v3  ;;  %2460 = vset.pattern.permute.xlu0 %v4029_v4  ;;  %s2661_s25 = scalar_lea.vmem %s4010_s0, %s2399_s22  ;;  %s2569_s8 = smov 90  }
  0x14   : > { %380 = vperm.xlu1 %2458, %v2613_v0   ;;  %445 = vperm.xlu0 %2460, %v2613_v0   ;;  %4092 = vst [vmem:[#allocation3_spill] sm:$0xff] %v2656_v19  ;;  %v271_v20 = vld [vmem:[%s2661_s25] ss:$4 sm:$0xf]  ;;  %v2665_v21 = vsub.s32 0, %v2656_v19  ;;  %v2668_v22 = vsub.s32 1, %v2656_v19 }
  0x15   : > { %v2679_v27 = vsub.s32 2, %v2656_v19  ;;  %v2682_v28 = vsub.s32 3, %v2656_v19  ;;  %v2386_v35 = vld [vmem:[%s2661_s25 + $0x1] ss:$4 sm:$0xf]  ;;  %s2571_s13 = smov 19  }
  0x16   : > { %4093 = vst [vmem:[#allocation4_spill] sm:$0xff] %v2665_v21  ;;  %4094 = vst [vmem:[#allocation5_spill] sm:$0xff] %v2668_v22  ;;  %v2673_v25 = vrot.slane %v271_v20, %v2668_v22  ;;  %v2676_v26 = vrot.slane %v271_v20, %v2665_v21  ;;  %v2698_v39 = vrot.slane %v2386_v35, %v2665_v21  ;;  %v2387_v41 = vld [vmem:[%s2661_s25 + $0x2] ss:$4 sm:$0xf]  ;;  %s2400_s16 = smul.u32 12, %s4232_s19 }
  0x17   : > { %4095 = vst [vmem:[#allocation6_spill] sm:$0xff] %v2679_v27  ;;  %4096 = vst [vmem:[#allocation7_spill] sm:$0xff] %v2682_v28  ;;  %v2687_v33 = vrot.slane %v271_v20, %v2682_v28  ;;  %v2690_v34 = vrot.slane %v271_v20, %v2679_v27  ;;  %v2701_v40 = vrot.slane %v2386_v35, %v2679_v27  ;;  %v2388_v47 = vld [vmem:[%s2661_s25 + $0x3] ss:$4 sm:$0xf] }
  0x18   : > { %2459 = vset.pattern.permute.xlu1 %v4030_v5  ;;  %2461 = vset.pattern.permute.xlu0 %v4019_v6  ;;  %v2709_v45 = vrot.slane %v2387_v41, %v2679_v27  ;;  %v2712_v46 = vrot.slane %v2386_v35, %v2668_v22  ;;  %v2720_v50 = vrot.slane %v2386_v35, %v2682_v28  ;;  %v2389_v2 = vld [vmem:[%s2661_s25 + $0x4] ss:$4 sm:$0x7]  ;;  %s224_s21 = scalar_lea.vmem %s4015_s5, %s2400_s16 }
  0x19   : > { %413 = vperm.xlu1 %2459, %v2613_v0   ;;  %476 = vperm.xlu0 %2461, %v2613_v0   ;;  %v2723_v51 = vrot.slane %v2388_v47, %v2679_v27  ;;  %v2730_v55 = vrot.slane %v2387_v41, %v2665_v21  ;;  %v2737_v59 = vrot.slane %v2387_v41, %v2668_v22 }
  0x1a   : > { %v2744_v63 = vrot.slane %v2387_v41, %v2682_v28 }
  0x1d   : > { %2462 = vset.pattern.permute.xlu0 %v4028_v7  ;;  %v801_v7 = vrot.slane %v2389_v2, %v2668_v22 }
  0x1e   : > { %507 = vperm.xlu0 %2462, %v2613_v0  }
  0x22   : > { %2463 = vset.pattern.permute.xlu0 %v4027_v8 }
  0x23   : > { %538 = vperm.xlu0 %2463, %v2613_v0  }
  0x27   : > { %2464 = vset.pattern.permute.xlu0 %v4018_v9 }
  0x28   : > { %570 = vperm.xlu0 %2464, %v2613_v0  }
  0x2c   : > { %2465 = vset.pattern.permute.xlu0 %v4026_v10 }
  0x2d   : > { %601 = vperm.xlu0 %2465, %v2613_v0  }
  0x31   : > { %2466 = vset.pattern.permute.xlu0 %v4025_v11 }
  0x32   : > { %632 = vperm.xlu0 %2466, %v2613_v0  }
  0x36   : > { %2467 = vset.pattern.permute.xlu0 %v4017_v12 }
  0x37   : > { %663 = vperm.xlu0 %2467, %v2613_v0  }
  0x3b   : > { %2468 = vset.pattern.permute.xlu0 %v4024_v13 }
  0x3c   : > { %695 = vperm.xlu0 %2468, %v2613_v0  }
  0x40   : > { %2469 = vset.pattern.permute.xlu0 %v4023_v14  ;;  %v797_v14 = vrot.slane %v2389_v2, %v2665_v21 }
  0x41   : > { %726 = vperm.xlu0 %2469, %v2613_v0  }
  0x45   : > { %2470 = vset.pattern.permute.xlu0 %v4016_v15 }
  0x8e   : > { %v2651_v17 = vpop.permute.xlu1 %345  ;;  %v2653_v18 = vpop.permute.xlu0 %310 }
  0x93   : > { %v2670_v23 = vpop.permute.xlu1 %380  ;;  %v446_v24 = vpop.permute.xlu0 %445 }
  0x94   : > { %v448_v42 = vmul.f32 %v446_v24, %v2698_v39  ;;  %v450_v43 = vmul.f32 %v446_v24, %v2701_v40  ;;  %v449_v48 = vmul.f32 %v446_v24, %v2712_v46  ;;  %v451_v53 = vmul.f32 %v446_v24, %v2720_v50 }
  0x98   : > { %v414_v29 = vpop.permute.xlu1 %413  ;;  %v477_v30 = vpop.permute.xlu0 %476 }
  0x99   : > { %v417_v31 = vmul.f32 %v414_v29, %v2673_v25  ;;  %v416_v32 = vmul.f32 %v414_v29, %v2676_v26  ;;  %v419_v36 = vmul.f32 %v414_v29, %v2687_v33  ;;  %v418_v37 = vmul.f32 %v414_v29, %v2690_v34 }
  0x9a   : > { %v481_v49 = vmul.f32 %v477_v30, %v2709_v45  ;;  %v479_v57 = vmul.f32 %v477_v30, %v2730_v55  ;;  %v480_v60 = vmul.f32 %v477_v30, %v2737_v59  ;;  %v482_v20 = vmul.f32 %v477_v30, %v2744_v63 }
  0x9b   : > { %426 = vrot.lane.b32.xlu1 %v417_v31, %s2540_s26  ;;  %424 = vrot.lane.b32.xlu0 %v416_v32, %s2540_s26  ;;  %v2751_v31 = vrot.slane %v2388_v47, %v2665_v21 }
  0x9d   : > { %v508_v38 = vpop.permute.xlu0 %507 }
  0x9e   : > { %v512_v54 = vmul.f32 %v508_v38, %v2723_v51  ;;  %v510_v32 = vmul.f32 %v508_v38, %v2751_v31 }
  0x9f   : > { %430 = vrot.lane.b32.xlu1 %v419_v36, %s2540_s26  ;;  %428 = vrot.lane.b32.xlu0 %v418_v37, %s2540_s26  ;;  %v2758_v36 = vrot.slane %v2388_v47, %v2668_v22 }
  0xa1   : > { %v511_v37 = vmul.f32 %v508_v38, %v2758_v36 }
  0xa2   : > { %v539_v44 = vpop.permute.xlu0 %538 }
  0xa3   : > { %456 = vrot.lane.b32.xlu1 %v448_v42, %s2540_s26  ;;  %460 = vrot.lane.b32.xlu0 %v450_v43, %s2540_s26  ;;  %v543_v58 = vmul.f32 %v539_v44, %v2690_v34  ;;  %v2765_v42 = vrot.slane %v2388_v47, %v2682_v28  ;;  %v542_v47 = vmul.f32 %v539_v44, %v2673_v25 }
  0xa7   : > { %458 = vrot.lane.b32.xlu1 %v449_v48, %s2540_s26  ;;  %491 = vrot.lane.b32.xlu0 %v481_v49, %s2540_s26  ;;  %v571_v52 = vpop.permute.xlu0 %570  ;;  %v513_v49 = vmul.f32 %v508_v38, %v2765_v42  ;;  %v544_v38 = vmul.f32 %v539_v44, %v2687_v33 }
  0xa8   : > { %v575_v61 = vmul.f32 %v571_v52, %v2701_v40 }
  0xab   : > { %462 = vrot.lane.b32.xlu1 %v451_v53, %s2540_s26  ;;  %522 = vrot.lane.b32.xlu0 %v512_v54, %s2540_s26  ;;  %v541_v54 = vmul.f32 %v539_v44, %v2676_v26 }
  0xac   : > { %v602_v56 = vpop.permute.xlu0 %601 }
  0xad   : > { %v606_v24 = vmul.f32 %v602_v56, %v2709_v45  ;;  %v605_v44 = vmul.f32 %v602_v56, %v2737_v59 }
  0xaf   : > { %487 = vrot.lane.b32.xlu1 %v479_v57, %s2540_s26  ;;  %553 = vrot.lane.b32.xlu0 %v543_v58, %s2541_s27  ;;  %v4022_v57 = vmov 16   ;;  %v573_v58 = vmul.f32 %v571_v52, %v2698_v39 }
  0xb1   : > { %v633_v62 = vpop.permute.xlu0 %632 }
  0xb2   : > { %v637_v35 = vmul.f32 %v633_v62, %v2723_v51 }
  0xb3   : > { %489 = vrot.lane.b32.xlu1 %v480_v60, %s2540_s26  ;;  %585 = vrot.lane.b32.xlu0 %v575_v61, %s2541_s27  ;;  %v574_v60 = vmul.f32 %v571_v52, %v2712_v46  ;;  %v576_v61 = vmul.f32 %v571_v52, %v2720_v50  ;;  %v636_v52 = vmul.f32 %v633_v62, %v2758_v36 }
  0xb6   : > { %v664_v29 = vpop.permute.xlu0 %663 }
  0xb7   : > { %493 = vrot.lane.b32.xlu1 %v482_v20, %s2540_s26  ;;  %616 = vrot.lane.b32.xlu0 %v606_v24, %s2541_s27  ;;  %v668_v41 = vmul.f32 %v664_v29, %v2690_v34  ;;  %v604_v20 = vmul.f32 %v602_v56, %v2730_v55  ;;  %v607_v24 = vmul.f32 %v602_v56, %v2744_v63 }
  0xb8   : > { %v667_v56 = vmul.f32 %v664_v29, %v2673_v25 }
  0xbb   : > { %518 = vrot.lane.b32.xlu1 %v510_v32, %s2540_s26  ;;  %647 = vrot.lane.b32.xlu0 %v637_v35, %s2541_s27  ;;  %v696_v30 = vpop.permute.xlu0 %695  ;;  %v635_v32 = vmul.f32 %v633_v62, %v2751_v31  ;;  %v638_v35 = vmul.f32 %v633_v62, %v2765_v42 }
  0xbc   : > { %v700_v43 = vmul.f32 %v696_v30, %v2701_v40  ;;  %v699_v62 = vmul.f32 %v696_v30, %v2712_v46 }
  0xbf   : > { %520 = vrot.lane.b32.xlu1 %v511_v37, %s2540_s26  ;;  %678 = vrot.lane.b32.xlu0 %v668_v41, %s2542_s28  ;;  %v666_v37 = vmul.f32 %v664_v29, %v2676_v26  ;;  %v669_v41 = vmul.f32 %v664_v29, %v2687_v33 }
  0xc0   : > { %v727_v48 = vpop.permute.xlu0 %726 }
  0xc1   : > { %v731_v53 = vmul.f32 %v727_v48, %v2709_v45 }
  0xc3   : > { %524 = vrot.lane.b32.xlu1 %v513_v49, %s2540_s26  ;;  %710 = vrot.lane.b32.xlu0 %v700_v43, %s2542_s28  ;;  %v698_v43 = vmul.f32 %v696_v30, %v2698_v39  ;;  %v701_v49 = vmul.f32 %v696_v30, %v2720_v50 }
  0xc7   : > { %549 = vrot.lane.b32.xlu1 %v541_v54, %s2541_s27  ;;  %741 = vrot.lane.b32.xlu0 %v731_v53, %s2542_s28  ;;  %v729_v54 = vmul.f32 %v727_v48, %v2730_v55 }
  0xcb   : > { %551 = vrot.lane.b32.xlu1 %v542_v47, %s2541_s27  ;;  %757 = vperm.xlu0 %2470, %v2613_v0   ;;  %v730_v47 = vmul.f32 %v727_v48, %v2737_v59 }
  0xcf   : > { %555 = vrot.lane.b32.xlu1 %v544_v38, %s2541_s27  ;;  %2471 = vset.pattern.permute.xlu0 %v4022_v57  ;;  %v805_v57 = vrot.slane %v2389_v2, %v2679_v27 }
  0xd3   : > { %581 = vrot.lane.b32.xlu1 %v573_v58, %s2541_s27  ;;  %v732_v58 = vmul.f32 %v727_v48, %v2744_v63 }
  0xd7   : > { %583 = vrot.lane.b32.xlu1 %v574_v60, %s2541_s27 }
  0xdb   : > { %587 = vrot.lane.b32.xlu1 %v576_v61, %s2541_s27 }
  0xdf   : > { %612 = vrot.lane.b32.xlu1 %v604_v20, %s2541_s27 }
  0xe3   : > { %614 = vrot.lane.b32.xlu1 %v605_v44, %s2541_s27 }
  0xe7   : > { %618 = vrot.lane.b32.xlu1 %v607_v24, %s2541_s27 }
  0xeb   : > { %643 = vrot.lane.b32.xlu1 %v635_v32, %s2541_s27 }
  0xef   : > { %645 = vrot.lane.b32.xlu1 %v636_v52, %s2541_s27 }
  0xf3   : > { %649 = vrot.lane.b32.xlu1 %v638_v35, %s2541_s27 }
  0xf7   : > { %674 = vrot.lane.b32.xlu1 %v666_v37, %s2542_s28 }
  0xfb   : > { %676 = vrot.lane.b32.xlu1 %v667_v56, %s2542_s28 }
  0xff   : > { %680 = vrot.lane.b32.xlu1 %v669_v41, %s2542_s28 }
 0x103   : > { %706 = vrot.lane.b32.xlu1 %v698_v43, %s2542_s28 }
 0x107   : > { %708 = vrot.lane.b32.xlu1 %v699_v62, %s2542_s28  ;;  %v4021_v62 = vmov 17  }
 0x108   : > { %2472 = vset.pattern.permute.xlu1 %v4021_v62 }
 0x10b   : > { %712 = vrot.lane.b32.xlu1 %v701_v49, %s2542_s28 }
 0x10d   : > { %v2813_v53 = vpop.permute.xlu0 %424  ;;  %v2853_v49 = vpop.permute.xlu1 %426 }
 0x10f   : > { %737 = vrot.lane.b32.xlu1 %v729_v54, %s2542_s28 }
 0x111   : > { %v2817_v29 = vpop.permute.xlu0 %428  ;;  %v2855_v54 = vpop.permute.xlu1 %430 }
 0x113   : > { %739 = vrot.lane.b32.xlu1 %v730_v47, %s2542_s28 }
 0x115   : > { %v2821_v38 = vpop.permute.xlu0 %460  ;;  %v2857_v47 = vpop.permute.xlu1 %456 }
 0x117   : > { %743 = vrot.lane.b32.xlu1 %v732_v58, %s2542_s28 }
 0x119   : > { %v2825_v30 = vpop.permute.xlu0 %491  ;;  %v2859_v58 = vpop.permute.xlu1 %458 }
 0x11d   : > { %v2827_v60 = vpop.permute.xlu0 %522 }
 0x11e   : > { %4097 = vst [vmem:[#allocation8_spill] sm:$0xff] %v2827_v60 }
 0x121   : > { %v2829_v61 = vpop.permute.xlu0 %553 }
 0x122   : > { %4098 = vst [vmem:[#allocation9_spill] sm:$0xff] %v2829_v61 }
 0x125   : > { %v2831_v20 = vpop.permute.xlu0 %585 }
 0x126   : > { %4099 = vst [vmem:[#allocation10_spill] sm:$0xff] %v2831_v20 }
 0x129   : > { %v2833_v44 = vpop.permute.xlu0 %616 }
 0x12a   : > { %4100 = vst [vmem:[#allocation11_spill] sm:$0xff] %v2833_v44 }
 0x12d   : > { %v2835_v24 = vpop.permute.xlu0 %647 }
 0x12e   : > { %4101 = vst [vmem:[#allocation12_spill] sm:$0xff] %v2835_v24 }
 0x131   : > { %v2837_v32 = vpop.permute.xlu0 %678 }
 0x132   : > { %4102 = vst [vmem:[#allocation13_spill] sm:$0xff] %v2837_v32 }
 0x135   : > { %v2839_v52 = vpop.permute.xlu0 %710 }
 0x136   : > { %4103 = vst [vmem:[#allocation14_spill] sm:$0xff] %v2839_v52 }
 0x139   : > { %v2841_v35 = vpop.permute.xlu0 %741 }
 0x13a   : > { %4104 = vst [vmem:[#allocation15_spill] sm:$0xff] %v2841_v35 }
 0x14a   : > { %v758_v48 = vpop.permute.xlu0 %757 }
 0x14b   : > { %v762_v37 = vmul.f32 %v758_v48, %v2723_v51  ;;  %v760_v56 = vmul.f32 %v758_v48, %v2751_v31  ;;  %v761_v41 = vmul.f32 %v758_v48, %v2758_v36  ;;  %v763_v43 = vmul.f32 %v758_v48, %v2765_v42 }
 0x14d   : > { %772 = vrot.lane.b32.xlu0 %v762_v37, %s2542_s28  ;;  %768 = vrot.lane.b32.xlu1 %v760_v56, %s2542_s28  ;;  %v2861_v37 = vpop.permute.xlu1 %462 }
 0x151   : > { %790 = vperm.xlu0 %2471, %v2613_v0   ;;  %770 = vrot.lane.b32.xlu1 %v761_v41, %s2542_s28  ;;  %v2863_v56 = vpop.permute.xlu1 %487 }
 0x155   : > { %774 = vrot.lane.b32.xlu1 %v763_v43, %s2542_s28  ;;  %v2865_v41 = vpop.permute.xlu1 %489 }
 0x159   : > { %v2867_v48 = vpop.permute.xlu1 %493 }
 0x15a   : > { %4105 = vst [vmem:[#allocation16_spill] sm:$0xff] %v2867_v48 }
 0x15d   : > { %v2869_v43 = vpop.permute.xlu1 %518 }
 0x161   : > { %v2871_v15 = vpop.permute.xlu1 %520 }
 0x165   : > { %v2873_v12 = vpop.permute.xlu1 %524 }
 0x166   : > { %4106 = vst [vmem:[#allocation17_spill] sm:$0xff] %v2873_v12 }
 0x169   : > { %v2875_v9 = vpop.permute.xlu1 %549 }
 0x16a   : > { %4107 = vst [vmem:[#allocation18_spill] sm:$0xff] %v2875_v9 }
 0x16d   : > { %v2877_v6 = vpop.permute.xlu1 %551 }
 0x16e   : > { %4108 = vst [vmem:[#allocation19_spill] sm:$0xff] %v2877_v6 }
 0x171   : > { %v2884_v13 = vpop.permute.xlu1 %555 }
 0x172   : > { %4110 = vst [vmem:[#allocation21_spill] sm:$0xff] %v2884_v13  ;;  %v4073_v13 = vmov 0.0  }
 0x173   : > { %1593 = vst [vmem:[#allocation2] sm:$0x3] %v4073_v13  ;;  %1594 = vst [vmem:[#allocation2 + $0x8] sm:$0x3] %v4073_v13 }
 0x175   : > { %v2889_v5 = vpop.permute.xlu1 %581 }
 0x176   : > { %4111 = vst [vmem:[#allocation22_spill] sm:$0xff] %v2889_v5 }
 0x179   : > { %v2893_v3 = vpop.permute.xlu1 %583 }
 0x17a   : > { %4112 = vst [vmem:[#allocation23_spill] sm:$0xff] %v2893_v3 }
 0x1bf   : > { %v2880_v62 = vpop.permute.xlu0 %772 }
 0x1c0   : > { %4109 = vst [vmem:[#allocation20_spill] sm:$0xff] %v2880_v62 }
 0x1d0   : > { %v791_v11 = vpop.permute.xlu0 %790 }
 0x1d1   : > { %v811_v10 = vmul.f32 %v805_v57, %v791_v11  ;;  %v809_v8 = vmul.f32 %v797_v14, %v791_v11  ;;  %v810_v4 = vmul.f32 %v801_v7, %v791_v11  ;;  %v2895_v57 = vpop.permute.xlu1 %587 }
 0x1d2   : > { %4113 = vst [vmem:[#allocation24_spill] sm:$0xff] %v2895_v57 }
 0x1d3   : > { %819 = vrot.lane.b32.xlu0 %v811_v10, %s2545_s29  ;;  %815 = vrot.lane.b32.xlu1 %v809_v8, %s2545_s29 }
 0x1d5   : > { %v2897_v14 = vpop.permute.xlu1 %612 }
 0x1d6   : > { %4114 = vst [vmem:[#allocation25_spill] sm:$0xff] %v2897_v14 }
 0x1d7   : > { %817 = vrot.lane.b32.xlu1 %v810_v4, %s2545_s29 }
 0x1d9   : > { %v2899_v2 = vpop.permute.xlu1 %614 }
 0x1da   : > { %4115 = vst [vmem:[#allocation26_spill] sm:$0xff] %v2899_v2 }
 0x1db   : > { %835 = vperm.xlu1 %2472, %v2613_v0  }
 0x1dd   : > { %v2901_v10 = vpop.permute.xlu1 %618 }
 0x1de   : > { %4116 = vst [vmem:[#allocation27_spill] sm:$0xff] %v2901_v10 }
 0x1df   : > { %2473 = vset.pattern.permute.xlu1 %v2546_v16 }
 0x1e1   : > { %v2903_v8 = vpop.permute.xlu1 %643 }
 0x1e2   : > { %4117 = vst [vmem:[#allocation28_spill] sm:$0xff] %v2903_v8 }
 0x1e5   : > { %v2905_v7 = vpop.permute.xlu1 %645 }
 0x1e6   : > { %4118 = vst [vmem:[#allocation29_spill] sm:$0xff] %v2905_v7 }
 0x1e9   : > { %v2907_v4 = vpop.permute.xlu1 %649 }
 0x1ea   : > { %4119 = vst [vmem:[#allocation30_spill] sm:$0xff] %v2907_v4 }
 0x1ed   : > { %v2909_v11 = vpop.permute.xlu1 %674 }
 0x1ee   : > { %4120 = vst [vmem:[#allocation31_spill] sm:$0xff] %v2909_v11 }
 0x1f1   : > { %v2911_v1 = vpop.permute.xlu1 %676 }
 0x1f2   : > { %4121 = vst [vmem:[#allocation32_spill] sm:$0xff] %v2911_v1 }
 0x1f5   : > { %v2913_v16 = vpop.permute.xlu1 %680 }
 0x1f6   : > { %4122 = vst [vmem:[#allocation33_spill] sm:$0xff] %v2913_v16  ;;  %v2390_v16 = vld [vmem:[%s2661_s25 + $0x5] ss:$4 sm:$0x7] }
 0x1f9   : > { %v2915_v19 = vpop.permute.xlu1 %706 }
 0x1fa   : > { %4123 = vst [vmem:[#allocation34_spill] sm:$0xff] %v2915_v19 }
 0x1fd   : > { %v2917_v62 = vpop.permute.xlu1 %708 }
 0x1fe   : > { %4124 = vst [vmem:[#allocation35_spill] sm:$0xff] %v2917_v62 }
 0x201   : > { %v2919_v35 = vpop.permute.xlu1 %712 }
 0x202   : > { %4125 = vst [vmem:[#allocation36_spill] sm:$0xff] %v2919_v35  ;;  %v846_v35 = vrot.slane %v2390_v16, %v2668_v22 }
 0x205   : > { %v2921_v52 = vpop.permute.xlu1 %737 }
 0x206   : > { %4126 = vst [vmem:[#allocation37_spill] sm:$0xff] %v2921_v52  ;;  %v842_v52 = vrot.slane %v2390_v16, %v2665_v21 }
 0x209   : > { %v2923_v32 = vpop.permute.xlu1 %739 }
 0x20a   : > { %4127 = vst [vmem:[#allocation38_spill] sm:$0xff] %v2923_v32 }
 0x20d   : > { %v2925_v24 = vpop.permute.xlu1 %743 }
 0x20e   : > { %4128 = vst [vmem:[#allocation39_spill] sm:$0xff] %v2925_v24  ;;  %v850_v24 = vrot.slane %v2390_v16, %v2679_v27 }
 0x211   : > { %v2927_v10 = vpop.permute.xlu1 %768 }
 0x212   : > { %4129 = vst [vmem:[#allocation40_spill] sm:$0xff] %v2927_v10 }
 0x215   : > { %v2929_v4 = vpop.permute.xlu1 %770 }
 0x216   : > { %4130 = vst [vmem:[#allocation41_spill] sm:$0xff] %v2929_v4 }
 0x219   : > { %v2931_v11 = vpop.permute.xlu1 %774 }
 0x21a   : > { %4131 = vst [vmem:[#allocation42_spill] sm:$0xff] %v2931_v11 }
 0x245   : > { %v2933_v1 = vpop.permute.xlu1 %815 }
 0x246   : > { %4132 = vst [vmem:[#allocation43_spill] sm:$0xff] %v2933_v1  ;;  %v2547_v1 = vmov 19  }
 0x249   : > { %v2936_v19 = vpop.permute.xlu1 %817 }
 0x24a   : > { %4133 = vst [vmem:[#allocation44_spill] sm:$0xff] %v2936_v19  ;;  %v2391_v19 = vld [vmem:[%s2661_s25 + $0x6] ss:$4 sm:$0x7] }
 0x25a   : > { %v836_v62 = vpop.permute.xlu1 %835 }
 0x25b   : > { %v855_v32 = vmul.f32 %v846_v35, %v836_v62  ;;  %v854_v8 = vmul.f32 %v842_v52, %v836_v62  ;;  %v856_v11 = vmul.f32 %v850_v24, %v836_v62  ;;  %v890_v35 = vrot.slane %v2391_v19, %v2668_v22  ;;  %v2392_v62 = vld [vmem:[%s2661_s25 + $0x7] ss:$4 sm:$0x7] }
 0x25c   : > { %v886_v52 = vrot.slane %v2391_v19, %v2665_v21 }
 0x25d   : > { %862 = vrot.lane.b32.xlu1 %v855_v32, %s2545_s29  ;;  %860 = vrot.lane.b32.xlu0 %v854_v8, %s2545_s29  ;;  %v894_v8 = vrot.slane %v2391_v19, %v2679_v27 }
 0x261   : > { %879 = vperm.xlu1 %2473, %v2613_v0   ;;  %864 = vrot.lane.b32.xlu0 %v856_v11, %s2545_s29 }
 0x265   : > { %2474 = vset.pattern.permute.xlu1 %v2547_v1  ;;  %v2548_v1 = vmov 20  }
 0x2cf   : > { %v2946_v10 = vpop.permute.xlu1 %862 }
 0x2d0   : > { %4134 = vst [vmem:[#allocation45_spill] sm:$0xff] %v2946_v10 }
 0x2e0   : > { %v880_v16 = vpop.permute.xlu1 %879 }
 0x2e1   : > { %v899_v4 = vmul.f32 %v890_v35, %v880_v16  ;;  %v898_v32 = vmul.f32 %v886_v52, %v880_v16  ;;  %v900_v24 = vmul.f32 %v894_v8, %v880_v16  ;;  %v934_v35 = vrot.slane %v2392_v62, %v2668_v22 }
 0x2e2   : > { %v930_v52 = vrot.slane %v2392_v62, %v2665_v21  ;;  %v2549_v8 = vmov 21  }
 0x2e3   : > { %906 = vrot.lane.b32.xlu1 %v899_v4, %s2545_s29  ;;  %904 = vrot.lane.b32.xlu0 %v898_v32, %s2545_s29  ;;  %v938_v32 = vrot.slane %v2392_v62, %v2679_v27 }
 0x2e4   : > { %2476 = vset.pattern.permute.xlu0 %v2549_v8  ;;  %v2555_v8 = vmov 27  }
 0x2e7   : > { %923 = vperm.xlu1 %2474, %v2613_v0   ;;  %908 = vrot.lane.b32.xlu0 %v900_v24, %s2545_s29  ;;  %v2550_v24 = vmov 22  }
 0x2eb   : > { %2475 = vset.pattern.permute.xlu1 %v2548_v1  ;;  %v2393_v1 = vld [vmem:[%s2661_s25 + $0x4] ss:$4 sm:$0xf] }
 0x2ec   : > { %v2972_v62 = vrot.slane %v2393_v1, %v2665_v21 }
 0x355   : > { %v2956_v11 = vpop.permute.xlu1 %906 }
 0x356   : > { %4135 = vst [vmem:[#allocation46_spill] sm:$0xff] %v2956_v11 }
 0x366   : > { %v924_v19 = vpop.permute.xlu1 %923 }
 0x367   : > { %v943_v10 = vmul.f32 %v934_v35, %v924_v19  ;;  %v942_v4 = vmul.f32 %v930_v52, %v924_v19  ;;  %v944_v16 = vmul.f32 %v938_v32, %v924_v19  ;;  %v2969_v35 = vrot.slane %v2393_v1, %v2668_v22 }
 0x368   : > { %v2553_v32 = vmov 24  }
 0x369   : > { %950 = vrot.lane.b32.xlu1 %v943_v10, %s2545_s29  ;;  %948 = vrot.lane.b32.xlu0 %v942_v4, %s2545_s29  ;;  %v2552_v4 = vmov 23  }
 0x36d   : > { %967 = vperm.xlu1 %2475, %v2613_v0   ;;  %952 = vrot.lane.b32.xlu0 %v944_v16, %s2545_s29  ;;  %v2554_v16 = vmov 25  }
 0x371   : > { %2477 = vset.pattern.permute.xlu1 %v2550_v24  ;;  %v2556_v24 = vmov 26  }
 0x3db   : > { %v2966_v11 = vpop.permute.xlu1 %950 }
 0x3dc   : > { %4136 = vst [vmem:[#allocation47_spill] sm:$0xff] %v2966_v11 }
 0x3ec   : > { %v968_v10 = vpop.permute.xlu1 %967 }
 0x3ed   : > { %v992_v52 = vmul.f32 %v2969_v35, %v968_v10  ;;  %v991_v19 = vmul.f32 %v2972_v62, %v968_v10 }
 0x3ef   : > { %1001 = vrot.lane.b32.xlu1 %v992_v52, %s2551_s30  ;;  %999 = vrot.lane.b32.xlu0 %v991_v19, %s2551_s30  ;;  %v2557_v52 = vmov 30   ;;  %v2558_v19 = vmov 28  }
 0x3f3   : > { %1076 = vperm.xlu1 %2477, %v2613_v0   ;;  %1022 = vperm.xlu0 %2476, %v2613_v0  }
 0x3f7   : > { %2478 = vset.pattern.permute.xlu1 %v2552_v4  ;;  %2479 = vset.pattern.permute.xlu0 %v2553_v32  ;;  %v2559_v4 = vmov 33   ;;  %v2989_v32 = vrot.slane %v2393_v1, %v2679_v27 }
 0x3f8   : > { %1130 = vperm.xlu1 %2478, %v2613_v0   ;;  %1182 = vperm.xlu0 %2479, %v2613_v0  }
 0x3fc   : > { %2480 = vset.pattern.permute.xlu1 %v2554_v16  ;;  %2482 = vset.pattern.permute.xlu0 %v2555_v8  ;;  %v2560_v16 = vmov 29   ;;  %v4054_v8 = vmov 0  }
 0x3fd   : > { %1214 = vperm.xlu1 %2480, %v2613_v0   ;;  %1276 = vperm.xlu0 %2482, %v2613_v0  }
 0x401   : > { %2481 = vset.pattern.permute.xlu1 %v2556_v24  ;;  %2485 = vset.pattern.permute.xlu0 %v2557_v52  ;;  %v993_v24 = vmul.f32 %v2989_v32, %v968_v10  ;;  %v2562_v52 = vmov 31  }
 0x402   : > { %1245 = vperm.xlu1 %2481, %v2613_v0   ;;  %1370 = vperm.xlu0 %2485, %v2613_v0  }
 0x406   : > { %2483 = vset.pattern.permute.xlu1 %v2558_v19  ;;  %2488 = vset.pattern.permute.xlu0 %v2559_v4  ;;  %v2563_v19 = vmov 32   ;;  %v2564_v4 = vmov 34  }
 0x407   : > { %1307 = vperm.xlu1 %2483, %v2613_v0   ;;  %1464 = vperm.xlu0 %2488, %v2613_v0  }
 0x40b   : > { %2484 = vset.pattern.permute.xlu1 %v2560_v16  ;;  %2489 = vset.pattern.permute.xlu0 %v4054_v8  ;;  %v3000_v16 = vrot.slane %v2393_v1, %v2682_v28  ;;  %v2565_v8 = vmov 35  }
 0x40c   : > { %1339 = vperm.xlu1 %2484, %v2613_v0   ;;  %275 = vperm.xlu0 %2489, %v2613_v0  }
 0x410   : > { %2486 = vset.pattern.permute.xlu1 %v2562_v52  ;;  %1003 = vrot.lane.b32.xlu0 %v993_v24, %s2551_s30  ;;  %v994_v24 = vmul.f32 %v3000_v16, %v968_v10  ;;  %v4137_v52 = vmov 2   ;;  %v2394_v10 = vld [vmem:[%s2661_s25 + $0x5] ss:$4 sm:$0xf] }
 0x411   : > { %1401 = vperm.xlu1 %2486, %v2613_v0  }
 0x415   : > { %2487 = vset.pattern.permute.xlu1 %v2563_v19  ;;  %v3006_v19 = vpop.permute.xlu0 %819 }
 0x416   : > { %1432 = vperm.xlu1 %2487, %v2613_v0   ;;  %4138 = vst [vmem:[#allocation48_spill] sm:$0xff] %v3006_v19  ;;  %v2395_v19 = vld [vmem:[%s2661_s25 + $0x6] ss:$4 sm:$0xf] }
 0x417   : > { %v3058_v5 = vrot.slane %v2395_v19, %v2682_v28 }
 0x41a   : > { %2490 = vset.pattern.permute.xlu1 %v2564_v4  ;;  %v3008_v4 = vpop.permute.xlu0 %860 }
 0x41b   : > { %1495 = vperm.xlu1 %2490, %v2613_v0   ;;  %4139 = vst [vmem:[#allocation49_spill] sm:$0xff] %v3008_v4 }
 0x41e   : > { %v3010_v11 = vpop.permute.xlu0 %864 }
 0x41f   : > { %2491 = vset.pattern.permute.xlu1 %v2565_v8  ;;  %4140 = vst [vmem:[#allocation50_spill] sm:$0xff] %v3010_v11 }
 0x420   : > { %1526 = vperm.xlu1 %2491, %v2613_v0  }
 0x422   : > { %v3012_v7 = vpop.permute.xlu0 %904 }
 0x423   : > { %4141 = vst [vmem:[#allocation51_spill] sm:$0xff] %v3012_v7 }
 0x424   : > { %1005 = vrot.lane.b32.xlu1 %v994_v24, %s2551_s30  ;;  %v3024_v24 = vrot.slane %v2394_v10, %v2668_v22 }
 0x425   : > { %2497 = vset.pattern.permute.xlu1 %v4137_v52  ;;  %v3027_v52 = vrot.slane %v2394_v10, %v2665_v21 }
 0x426   : > { %v3014_v1 = vpop.permute.xlu0 %908 }
 0x427   : > { %4142 = vst [vmem:[#allocation52_spill] sm:$0xff] %v3014_v1  ;;  %v3043_v1 = vrot.slane %v2395_v19, %v2668_v22 }
 0x42a   : > { %v3016_v8 = vpop.permute.xlu0 %948 }
 0x42b   : > { %4143 = vst [vmem:[#allocation53_spill] sm:$0xff] %v3016_v8 }
 0x42e   : > { %v3018_v0 = vpop.permute.xlu0 %952 }
 0x42f   : > { %4144 = vst [vmem:[#allocation54_spill] sm:$0xff] %v3018_v0  ;;  %v3035_v0 = vrot.slane %v2394_v10, %v2682_v28 }
 0x461   : > { %v3021_v44 = vpop.permute.xlu0 %999  ;;  %v3029_v4 = vpop.permute.xlu1 %1001 }
 0x462   : > { %4145 = vst [vmem:[#allocation55_spill] sm:$0xff] %v3021_v44  ;;  %4146 = vst [vmem:[#allocation56_spill] sm:$0xff] %v3029_v4  ;;  %v3038_v44 = vrot.slane %v2394_v10, %v2679_v27  ;;  %v3046_v4 = vrot.slane %v2395_v19, %v2665_v21  ;;  %v2396_v10 = vld [vmem:[%s2661_s25 + $0x7] ss:$4 sm:$0xf] }
 0x472   : > { %v1023_v11 = vpop.permute.xlu0 %1022  ;;  %v1077_v57 = vpop.permute.xlu1 %1076 }
 0x473   : > { %v1047_v7 = vmul.f32 %v3024_v24, %v1023_v11  ;;  %v1046_v8 = vmul.f32 %v3027_v52, %v1023_v11  ;;  %v1049_v14 = vmul.f32 %v3035_v0, %v1023_v11  ;;  %v1048_v2 = vmul.f32 %v3038_v44, %v1023_v11 }
 0x474   : > { %v3061_v11 = vrot.slane %v2395_v19, %v2679_v27  ;;  %v1103_v13 = vmul.f32 %v3058_v5, %v1077_v57 }
 0x475   : > { %1056 = vrot.lane.b32.xlu1 %v1047_v7, %s2551_s30  ;;  %1054 = vrot.lane.b32.xlu0 %v1046_v8, %s2551_s30  ;;  %v1101_v7 = vmul.f32 %v3043_v1, %v1077_v57  ;;  %v1100_v8 = vmul.f32 %v3046_v4, %v1077_v57 }
 0x476   : > { %v1102_v61 = vmul.f32 %v3061_v11, %v1077_v57 }
 0x477   : > { %v1183_v20 = vpop.permute.xlu0 %1182  ;;  %v1131_v12 = vpop.permute.xlu1 %1130 }
 0x478   : > { %v1185_v9 = vmul.f32 %v1183_v20, %v2972_v62 }
 0x479   : > { %1060 = vrot.lane.b32.xlu1 %v1049_v14, %s2551_s30  ;;  %1058 = vrot.lane.b32.xlu0 %v1048_v2, %s2551_s30  ;;  %v3068_v14 = vrot.slane %v2396_v10, %v2668_v22  ;;  %v3071_v2 = vrot.slane %v2396_v10, %v2665_v21  ;;  %v3082_v22 = vrot.slane %v2396_v10, %v2682_v28 }
 0x47a   : > { %v3085_v21 = vrot.slane %v2396_v10, %v2679_v27  ;;  %v1186_v28 = vmul.f32 %v1183_v20, %v2969_v35  ;;  %v369_v10 = vmul.f32 %v2730_v55, %v2651_v17 }
 0x47c   : > { %v3063_v3 = vpop.permute.xlu0 %1276 }
 0x47d   : > { %1110 = vrot.lane.b32.xlu1 %v1101_v7, %s2551_s30  ;;  %1108 = vrot.lane.b32.xlu0 %v1100_v8, %s2551_s30  ;;  %v1155_v7 = vmul.f32 %v3068_v14, %v1131_v12  ;;  %v1154_v8 = vmul.f32 %v3071_v2, %v1131_v12 }
 0x481   : > { %1114 = vrot.lane.b32.xlu1 %v1103_v13, %s2551_s30  ;;  %1112 = vrot.lane.b32.xlu0 %v1102_v61, %s2551_s30  ;;  %v3077_v19 = vpop.permute.xlu0 %1370  ;;  %v1157_v13 = vmul.f32 %v3082_v22, %v1131_v12  ;;  %v1156_v61 = vmul.f32 %v3085_v21, %v1131_v12  ;;  %v336_v12 = vmul.f32 %v2701_v40, %v2653_v18 }
 0x482   : > { %v372_v40 = vmul.f32 %v2744_v63, %v2651_v17 }
 0x485   : > { %1164 = vrot.lane.b32.xlu1 %v1155_v7, %s2551_s30  ;;  %1162 = vrot.lane.b32.xlu0 %v1154_v8, %s2551_s30  ;;  %v334_v7 = vmul.f32 %v2698_v39, %v2653_v18  ;;  %v335_v8 = vmul.f32 %v2712_v46, %v2653_v18  ;;  %v370_v39 = vmul.f32 %v2737_v59, %v2651_v17  ;;  %v1215_v59 = vpop.permute.xlu1 %1214 }
 0x486   : > { %v3089_v57 = vpop.permute.xlu0 %1464  ;;  %v371_v46 = vmul.f32 %v2709_v45, %v2651_v17 }
 0x489   : > { %1168 = vrot.lane.b32.xlu1 %v1157_v13, %s2551_s30  ;;  %1166 = vrot.lane.b32.xlu0 %v1156_v61, %s2551_s30  ;;  %v337_v13 = vmul.f32 %v2720_v50, %v2653_v18  ;;  %v1187_v50 = vmul.f32 %v1183_v20, %v2989_v32  ;;  %v1246_v63 = vpop.permute.xlu1 %1245 }
 0x48b   : > { %v276_v61 = vpop.permute.xlu0 %275 }
 0x48c   : > { %v299_v27 = vmul.f32 %v2676_v26, %v276_v61  ;;  %v300_v6 = vmul.f32 %v2673_v25, %v276_v61  ;;  %v301_v60 = vmul.f32 %v2690_v34, %v276_v61  ;;  %v302_v55 = vmul.f32 %v2687_v33, %v276_v61 }
 0x48d   : > { %1195 = vrot.lane.b32.xlu1 %v1186_v28, %s2567_s6  ;;  %1193 = vrot.lane.b32.xlu0 %v1185_v9, %s2567_s6  ;;  %v1188_v33 = vmul.f32 %v1183_v20, %v3000_v16  ;;  %v1217_v9 = vmul.f32 %v1215_v59, %v3027_v52  ;;  %v1219_v28 = vmul.f32 %v1215_v59, %v3038_v44 }
 0x48e   : > { %v338_v18 = vadd.f32 %v334_v7, %v299_v27  ;;  %v339_v25 = vadd.f32 %v335_v8, %v300_v6  ;;  %v340_v26 = vadd.f32 %v336_v12, %v301_v60  ;;  %v341_v34 = vadd.f32 %v337_v13, %v302_v55 }
 0x48f   : > { %v1218_v6 = vmul.f32 %v1215_v59, %v3024_v24  ;;  %v1220_v27 = vmul.f32 %v1215_v59, %v3035_v0  ;;  %v1249_v60 = vmul.f32 %v1246_v63, %v3043_v1  ;;  %v1248_v20 = vmul.f32 %v1246_v63, %v3046_v4 }
 0x490   : > { %v3121_v61 = vadd.f32 %v369_v10, %v338_v18  ;;  %v3123_v45 = vadd.f32 %v370_v39, %v339_v25  ;;  %v3125_v48 = vadd.f32 %v371_v46, %v340_v26  ;;  %v3127_v17 = vadd.f32 %v372_v40, %v341_v34  ;;  %v1308_v39 = vpop.permute.xlu1 %1307 }
 0x491   : > { %1199 = vrot.lane.b32.xlu1 %v1188_v33, %s2567_s6  ;;  %1197 = vrot.lane.b32.xlu0 %v1187_v50, %s2567_s6  ;;  %v1251_v10 = vmul.f32 %v1246_v63, %v3058_v5  ;;  %v1250_v7 = vmul.f32 %v1246_v63, %v3061_v11  ;;  %v1280_v8 = vmul.f32 %v3063_v3, %v3068_v14  ;;  %v4147_v63 = vlaneseq }
 0x492   : > { %v1279_v12 = vmul.f32 %v3063_v3, %v3071_v2  ;;  %v1282_v13 = vmul.f32 %v3063_v3, %v3082_v22  ;;  %v1281_v55 = vmul.f32 %v3063_v3, %v3085_v21  ;;  %v1311_v46 = vmul.f32 %v1308_v39, %v2969_v35 }
 0x493   : > { %v1310_v40 = vmul.f32 %v1308_v39, %v2972_v62  ;;  %v1313_v18 = vmul.f32 %v1308_v39, %v3000_v16  ;;  %v1312_v25 = vmul.f32 %v1308_v39, %v2989_v32  ;;  %v1374_v59 = vmul.f32 %v3077_v19, %v3043_v1 }
 0x494   : > { %v1340_v26 = vpop.permute.xlu1 %1339 }
 0x495   : > { %1227 = vrot.lane.b32.xlu1 %v1218_v6, %s2567_s6  ;;  %1225 = vrot.lane.b32.xlu0 %v1217_v9, %s2567_s6  ;;  %v1343_v3 = vmul.f32 %v1340_v26, %v3024_v24  ;;  %v1342_v34 = vmul.f32 %v1340_v26, %v3027_v52  ;;  %v1345_v33 = vmul.f32 %v1340_v26, %v3035_v0 }
 0x496   : > { %v1344_v50 = vmul.f32 %v1340_v26, %v3038_v44  ;;  %v1373_v6 = vmul.f32 %v3077_v19, %v3046_v4  ;;  %v1376_v9 = vmul.f32 %v3077_v19, %v3058_v5 }
 0x499   : > { %1231 = vrot.lane.b32.xlu1 %v1220_v27, %s2567_s6  ;;  %1229 = vrot.lane.b32.xlu0 %v1219_v28, %s2567_s6  ;;  %v1375_v27 = vmul.f32 %v3077_v19, %v3061_v11  ;;  %v1402_v28 = vpop.permute.xlu1 %1401 }
 0x49a   : > { %v1406_v19 = vmul.f32 %v1402_v28, %v3085_v21 }
 0x49d   : > { %1258 = vrot.lane.b32.xlu1 %v1249_v60, %s2567_s6  ;;  %1256 = vrot.lane.b32.xlu0 %v1248_v20, %s2567_s6  ;;  %v226_v60 = vand.u32 127, %v4147_v63  ;;  %v1405_v20 = vmul.f32 %v1402_v28, %v3068_v14 }
 0x4a1   : > { %1262 = vrot.lane.b32.xlu1 %v1251_v10, %s2567_s6  ;;  %1260 = vrot.lane.b32.xlu0 %v1250_v7, %s2567_s6  ;;  %v1404_v10 = vmul.f32 %v1402_v28, %v3071_v2  ;;  %v227_v7 = vadd.s32 128, %v226_v60 }
 0x4a5   : > { %1289 = vrot.lane.b32.xlu1 %v1280_v8, %s2567_s6  ;;  %1287 = vrot.lane.b32.xlu0 %v1279_v12, %s2567_s6  ;;  %v1407_v8 = vmul.f32 %v1402_v28, %v3082_v22  ;;  %v1433_v12 = vpop.permute.xlu1 %1432 }
 0x4a6   : > { %v1436_v39 = vmul.f32 %v1433_v12, %v2969_v35  ;;  %v1438_v26 = vmul.f32 %v1433_v12, %v3000_v16  ;;  %v1468_v35 = vmul.f32 %v3089_v57, %v3024_v24 }
 0x4a9   : > { %1293 = vrot.lane.b32.xlu1 %v1282_v13, %s2567_s6  ;;  %1291 = vrot.lane.b32.xlu0 %v1281_v55, %s2567_s6  ;;  %v229_v13 = vcvt.s32.f32 %v226_v60  ;;  %v230_v55 = vcvt.s32.f32 %v227_v7  ;;  %v1496_v16 = vpop.permute.xlu1 %1495 }
 0x4ad   : > { %1320 = vrot.lane.b32.xlu1 %v1311_v46, %s2568_s7  ;;  %1318 = vrot.lane.b32.xlu0 %v1310_v40, %s2568_s7  ;;  %v1435_v46 = vmul.f32 %v1433_v12, %v2972_v62  ;;  %v232_v40 = vmul.f32 0.055555556, %v229_v13  ;;  %v1467_v62 = vmul.f32 %v3089_v57, %v3027_v52  ;;  %v1498_v52 = vmul.f32 %v1496_v16, %v3046_v4 }
 0x4b1   : > { %1324 = vrot.lane.b32.xlu1 %v1313_v18, %s2568_s7  ;;  %1322 = vrot.lane.b32.xlu0 %v1312_v25, %s2568_s7  ;;  %v233_v18 = vmul.f32 0.055555556, %v230_v55  ;;  %v228_v25 = vadd.s32 256, %v226_v60  ;;  %v1556_v60 = vld [vmem:[%s4012_s2] sm:$0x3] }
 0x4b5   : > { %1352 = vrot.lane.b32.xlu1 %v1343_v3, %s2568_s7  ;;  %1350 = vrot.lane.b32.xlu0 %v1342_v34, %s2568_s7  ;;  %v1437_v3 = vmul.f32 %v1433_v12, %v2989_v32  ;;  %v235_v34 = vfloor.f32 %v232_v40 }
 0x4b7   : > { %vm244_vm0 = vcmp.ge.f32.partialorder %v235_v34, 1.0  ;;  %vm247_vm1 = vcmp.le.f32.partialorder %v235_v34, 16.0 }
 0x4b8   : > { %vm250_vm4 = vmand %vm244_vm0, %vm247_vm1 }
 0x4b9   : > { %1356 = vrot.lane.b32.xlu1 %v1345_v33, %s2568_s7  ;;  %1354 = vrot.lane.b32.xlu0 %v1344_v50, %s2568_s7  ;;  %v236_v33 = vfloor.f32 %v233_v18  ;;  %v231_v50 = vcvt.s32.f32 %v228_v25 }
 0x4bb   : > { %v234_v32 = vmul.f32 0.055555556, %v231_v50  ;;  %vm245_vm2 = vcmp.ge.f32.partialorder %v236_v33, 1.0  ;;  %vm248_vm3 = vcmp.le.f32.partialorder %v236_v33, 16.0 }
 0x4bc   : > { %vm251_vm6 = vmand %vm245_vm2, %vm248_vm3 }
 0x4bd   : > { %1383 = vrot.lane.b32.xlu1 %v1374_v59, %s2568_s7  ;;  %1381 = vrot.lane.b32.xlu0 %v1373_v6, %s2568_s7  ;;  %v238_v59 = vmul.f32 18.0, %v235_v34  ;;  %v239_v6 = vmul.f32 18.0, %v236_v33  ;;  %v237_v63 = vfloor.f32 %v234_v32 }
 0x4bf   : > { %v241_v28 = vsub.f32 %v229_v13, %v238_v59  ;;  %v242_v24 = vsub.f32 %v230_v55, %v239_v6  ;;  %v240_v4 = vmul.f32 18.0, %v237_v63  ;;  %vm246_vm13 = vcmp.ge.f32.partialorder %v237_v63, 1.0 }
 0x4c0   : > { %vm249_vm14 = vcmp.le.f32.partialorder %v237_v63, 16.0  ;;  %v4152_v6 = vmov 5   ;;  %v4153_v63 = vmov 7  }
 0x4c1   : > { %1387 = vrot.lane.b32.xlu1 %v1376_v9, %s2568_s7  ;;  %1385 = vrot.lane.b32.xlu0 %v1375_v27, %s2568_s7  ;;  %v1470_v9 = vmul.f32 %v3089_v57, %v3035_v0  ;;  %v1469_v27 = vmul.f32 %v3089_v57, %v3038_v44  ;;  %vm253_vm5 = vcmp.ge.f32.partialorder %v241_v28, 1.0  ;;  %v1527_v44 = vpop.permute.xlu1 %1526  ;;  %v1499_v0 = vmul.f32 %v1496_v16, %v3043_v1  ;;  %vm252_vm0 = vmand %vm246_vm13, %vm249_vm14 }
 0x4c2   : > { %v1500_v57 = vmul.f32 %v1496_v16, %v3061_v11  ;;  %vm254_vm7 = vcmp.ge.f32.partialorder %v242_v24, 1.0  ;;  %vm256_vm8 = vmand %vm250_vm4, %vm253_vm5  ;;  %vm259_vm9 = vcmp.le.f32.partialorder %v241_v28, 16.0  ;;  %vm260_vm11 = vcmp.le.f32.partialorder %v242_v24, 16.0  ;;  %v3228_v11 = vpop.permute.xlu0 %1003 }
 0x4c3   : > { %vm257_vm10 = vmand %vm251_vm6, %vm254_vm7  ;;  %v243_v7 = vsub.f32 %v231_v50, %v240_v4  ;;  %v4148_v1 = vmov 3   ;;  %v1532_v40 = vmul.f32 %v1527_v44, %v3082_v22  ;;  %vm432_vm5 = vcmask 1039360  }
 0x4c4   : > { %vm262_vm12 = vmand %vm256_vm8, %vm259_vm9  ;;  %vm557_vm6 = vcmask 1031168   ;;  %vm682_vm7 = vcmask 900096   ;;  %vm821_vm8 = vcmask 891904   ;;  %vm1007_vm9 = vcmask 883712  }
 0x4c5   : > { %1414 = vrot.lane.b32.xlu1 %v1405_v20, %s2568_s7  ;;  %1412 = vrot.lane.b32.xlu0 %v1404_v10, %s2568_s7  ;;  %v1501_v20 = vmul.f32 %v1496_v16, %v3058_v5  ;;  %v1529_v10 = vmul.f32 %v1527_v44, %v3071_v2  ;;  %vm263_vm15 = vmand %vm257_vm10, %vm260_vm11  ;;  %v1531_v5 = vmul.f32 %v1527_v44, %v3085_v21  ;;  %vm255_vm1 = vcmp.ge.f32.partialorder %v243_v7, 1.0 }
 0x4c6   : > { %v4149_v2 = vmov 0.0   ;;  %vm258_vm2 = vmand %vm252_vm0, %vm255_vm1  ;;  %vm261_vm3 = vcmp.le.f32.partialorder %v243_v7, 16.0  ;;  %vm1201_vm10 = vcmask 752640   ;;  %vm1326_vm11 = vcmask 744448  }
 0x4c7   : > { %v2383_v12 = vsel %vm262_vm12, 1.0, %v4149_v2  ;;  %v2384_v13 = vsel %vm263_vm15, 1.0, %v4149_v2  ;;  %vm264_vm4 = vmand %vm258_vm2, %vm261_vm3  ;;  %vm1451_vm12 = vcmask 736256   ;;  %vm1619_vm13 = vcmask 154624  }
 0x4c8   : > { %v2385_v18 = vsel %vm264_vm4, 1.0, %v4149_v2  ;;  %vm2313_vm14 = vcmask 1043456  }
 0x4c9   : > { %1418 = vrot.lane.b32.xlu1 %v1407_v8, %s2568_s7  ;;  %1416 = vrot.lane.b32.xlu0 %v1406_v19, %s2568_s7  ;;  %v3230_v8 = vpop.permute.xlu1 %1005  ;;  %v1530_v19 = vmul.f32 %v1527_v44, %v3068_v14  ;;  %v406_v44 = vmul.f32 %v2723_v51, %v2670_v23 }
 0x4cb   : > { %v410_v4 = vadd.f32 %v406_v44, %v3125_v48  ;;  %v4160_v44 = vld [vmem:[#allocation18_spill] sm:$0xff] }
 0x4cd   : > { %1445 = vrot.lane.b32.xlu1 %v1436_v39, %s2569_s8  ;;  %1443 = vrot.lane.b32.xlu0 %v1435_v46, %s2569_s8  ;;  %v2492_v46 = vpack.i.bf16 %v2384_v13, %v2383_v12 }
 0x4d1   : > { %1449 = vrot.lane.b32.xlu1 %v1438_v26, %s2569_s8  ;;  %1447 = vrot.lane.b32.xlu0 %v1437_v3, %s2569_s8  ;;  %v3260_v3 = vld [vmem:[%s4013_s3] sm:$0xf] }
 0x4d2   : > { %4150 = vst [vmem:[#allocation57_spill] sm:$0xff] %v3260_v3 }
 0x4d5   : > { %1477 = vrot.lane.b32.xlu1 %v1468_v35, %s2569_s8  ;;  %1475 = vrot.lane.b32.xlu0 %v1467_v62, %s2569_s8  ;;  %v4151_v62 = vmov 4  }
 0x4d9   : > { %1481 = vrot.lane.b32.xlu1 %v1470_v9, %s2569_s8  ;;  %1479 = vrot.lane.b32.xlu0 %v1469_v27, %s2569_s8  ;;  %v404_v9 = vmul.f32 %v2751_v31, %v2670_v23  ;;  %v405_v27 = vmul.f32 %v2758_v36, %v2670_v23  ;;  %v407_v31 = vmul.f32 %v2765_v42, %v2670_v23 }
 0x4da   : > { %v433_v36 = vsel %vm432_vm5, %v2813_v53, %v2853_v49  ;;  %v464_v23 = vsel %vm432_vm5, %v2857_v47, %v2859_v58  ;;  %v435_v42 = vsel %vm432_vm5, %v2817_v29, %v2855_v54  ;;  %v465_v53 = vsel %vm432_vm5, %v2859_v58, %v2821_v38 }
 0x4db   : > { %v408_v28 = vadd.f32 %v404_v9, %v3121_v61  ;;  %v434_v61 = vsel %vm432_vm5, %v2853_v49, %v2817_v29  ;;  %v411_v51 = vadd.f32 %v407_v31, %v3127_v17  ;;  %v442_v7 = vadd.f32 %v435_v42, %v410_v4  ;;  %v4161_v31 = vld [vmem:[#allocation17_spill] sm:$0xff] }
 0x4dc   : > { %v495_v47 = vsel %vm432_vm5, %v2863_v56, %v2865_v41  ;;  %v466_v29 = vsel %vm432_vm5, %v2821_v38, %v2861_v37  ;;  %v496_v58 = vsel %vm432_vm5, %v2865_v41, %v2825_v30  ;;  %v526_v56 = vsel %vm432_vm5, %v2869_v43, %v2871_v15  ;;  %v4157_v38 = vld [vmem:[#allocation16_spill] sm:$0xff] }
 0x4dd   : > { %1506 = vrot.lane.b32.xlu1 %v1498_v52, %s2569_s8  ;;  %1559 = vperm.xlu0 %2489, %v1556_v60   ;;  %v409_v60 = vadd.f32 %v405_v27, %v3123_v45  ;;  %v473_v13 = vadd.f32 %v466_v29, %v442_v7  ;;  %v4158_v41 = vld [vmem:[#allocation8_spill] sm:$0xff] }
 0x4e1   : > { %1508 = vrot.lane.b32.xlu1 %v1499_v0, %s2569_s8  ;;  %1510 = vrot.lane.b32.xlu0 %v1500_v57, %s2569_s8  ;;  %v440_v0 = vadd.f32 %v433_v36, %v408_v28  ;;  %v4162_v36 = vld [vmem:[#allocation9_spill] sm:$0xff] }
 0x4e2   : > { %2498 = vset.pattern.permute.xlu0 %v4148_v1  ;;  %v443_v1 = vadd.f32 %v2855_v54, %v411_v51 }
 0x4e3   : > { %v471_v49 = vadd.f32 %v464_v23, %v440_v0 }
 0x4e5   : > { %1512 = vrot.lane.b32.xlu1 %v1501_v20, %s2569_s8  ;;  %1537 = vrot.lane.b32.xlu0 %v1529_v10, %s2569_s8  ;;  %v441_v20 = vadd.f32 %v434_v61, %v409_v60  ;;  %v4154_v10 = vmov 8   ;;  %v502_v2 = vadd.f32 %v495_v47, %v471_v49  ;;  %v4159_v60 = vld [vmem:[#allocation19_spill] sm:$0xff]  ;;  %v4165_v49 = vld [vmem:[#allocation22_spill] sm:$0xff] }
 0x4e6   : > { %v559_v61 = vsel %vm557_vm6, %v4159_v60, %v4162_v36 }
 0x4e7   : > { %v3238_v55 = vpop.permute.xlu1 %1056  ;;  %v3240_v39 = vpop.permute.xlu0 %1054  ;;  %v533_v9 = vadd.f32 %v526_v56, %v502_v2  ;;  %v4168_v56 = vmov 14  }
 0x4e9   : > { %1539 = vrot.lane.b32.xlu1 %v1530_v19, %s2569_s8  ;;  %1541 = vrot.lane.b32.xlu0 %v1531_v5, %s2569_s8  ;;  %v472_v19 = vadd.f32 %v465_v53, %v441_v20  ;;  %v4155_v5 = vmov 10   ;;  %v4163_v20 = vmov 13   ;;  %v4164_v53 = vld [vmem:[#allocation23_spill] sm:$0xff] }
 0x4ea   : > { %v589_v7 = vsel %vm557_vm6, %v4165_v49, %v4164_v53 }
 0x4eb   : > { %v3244_v14 = vpop.permute.xlu1 %1060  ;;  %v3246_v21 = vpop.permute.xlu0 %1058 }
 0x4ed   : > { %1543 = vrot.lane.b32.xlu1 %v1532_v40, %s2569_s8  ;;  %2493 = vrot.lane.b32.xlu0 %v2492_v46, %s2545_s29  ;;  %v474_v46 = vadd.f32 %v2861_v37, %v443_v1  ;;  %v503_v40 = vadd.f32 %v496_v58, %v472_v19  ;;  %v4166_v1 = vld [vmem:[#allocation21_spill] sm:$0xff] }
 0x4ee   : > { %v560_v19 = vsel %vm557_vm6, %v4162_v36, %v4166_v1  ;;  %v4174_v36 = vld [vmem:[#allocation29_spill] sm:$0xff] }
 0x4ef   : > { %v3252_v25 = vpop.permute.xlu1 %1110  ;;  %v3254_v26 = vpop.permute.xlu0 %1108  ;;  %v505_v43 = vadd.f32 %v4157_v38, %v474_v46 }
 0x4f1   : > { %1581 = vrot.lane.b32.xlu1 %v2385_v18, %s2545_s29  ;;  %v4156_v18 = vmov 11   ;;  %v536_v23 = vadd.f32 %v4161_v31, %v505_v43 }
 0x4f3   : > { %v3262_v34 = vpop.permute.xlu1 %1114  ;;  %v3264_v22 = vpop.permute.xlu0 %1112  ;;  %v568_v46 = vadd.f32 %v4166_v1, %v536_v23  ;;  %v4177_v23 = vld [vmem:[#allocation12_spill] sm:$0xff] }
 0x4f5   : > { %1695 = vperm.xlu1 %2497, %v3260_v3  }
 0x4f7   : > { %v3267_v33 = vpop.permute.xlu1 %1164  ;;  %v3269_v35 = vpop.permute.xlu0 %1162 }
 0x4f9   : > { %2499 = vset.pattern.permute.xlu1 %v4151_v62  ;;  %v497_v62 = vsel %vm432_vm5, %v2825_v30, %v4157_v38  ;;  %v558_v30 = vsel %vm557_vm6, %v4160_v44, %v4159_v60  ;;  %v4170_v38 = vld [vmem:[#allocation25_spill] sm:$0xff] }
 0x4fa   : > { %1757 = vperm.xlu1 %2499, %v3260_v3   ;;  %v504_v28 = vadd.f32 %v497_v62, %v473_v13  ;;  %v565_v0 = vadd.f32 %v558_v30, %v533_v9  ;;  %v4172_v9 = vld [vmem:[#allocation11_spill] sm:$0xff] }
 0x4fb   : > { %v3273_v50 = vpop.permute.xlu1 %1168  ;;  %v3275_v59 = vpop.permute.xlu0 %1166 }
 0x4fc   : > { %v596_v29 = vadd.f32 %v589_v7, %v565_v0 }
 0x4fe   : > { %2500 = vset.pattern.permute.xlu1 %v4152_v6  ;;  %v527_v6 = vsel %vm432_vm5, %v2871_v15, %v4158_v41  ;;  %v528_v15 = vsel %vm432_vm5, %v4158_v41, %v4161_v31  ;;  %v4171_v41 = vld [vmem:[#allocation24_spill] sm:$0xff] }
 0x4ff   : > { %v3278_v32 = vpop.permute.xlu1 %1195  ;;  %v3280_v16 = vpop.permute.xlu0 %1193  ;;  %1788 = vperm.xlu1 %2500, %v3260_v3   ;;  %v599_v30 = vadd.f32 %v4171_v41, %v568_v46  ;;  %v4180_v46 = vmov 17  }
 0x503   : > { %v3288_v24 = vpop.permute.xlu1 %1199  ;;  %v3290_v52 = vpop.permute.xlu0 %1197  ;;  %2502 = vset.pattern.permute.xlu1 %v4153_v63  ;;  %v534_v63 = vadd.f32 %v527_v6, %v503_v40 }
 0x504   : > { %1850 = vperm.xlu1 %2502, %v3260_v3  }
 0x505   : > { %v566_v42 = vadd.f32 %v559_v61, %v534_v63  ;;  %v4175_v61 = vld [vmem:[#allocation28_spill] sm:$0xff] }
 0x506   : > { %v651_v0 = vsel %vm557_vm6, %v4175_v61, %v4174_v36  ;;  %v4186_v61 = vld [vmem:[#allocation14_spill] sm:$0xff] }
 0x507   : > { %v3305_v57 = vpop.permute.xlu1 %1227  ;;  %v3307_v45 = vpop.permute.xlu0 %1225 }
 0x508   : > { %2503 = vset.pattern.permute.xlu1 %v4154_v10  ;;  %v535_v10 = vadd.f32 %v528_v15, %v504_v28  ;;  %v4173_v15 = vmov 16  }
 0x509   : > { %1883 = vperm.xlu1 %2503, %v3260_v3  }
 0x50a   : > { %v567_v13 = vadd.f32 %v560_v19, %v535_v10 }
 0x50b   : > { %v3322_v48 = vpop.permute.xlu1 %1231  ;;  %v3324_v17 = vpop.permute.xlu0 %1229 }
 0x50d   : > { %2505 = vset.pattern.permute.xlu1 %v4155_v5  ;;  %v4167_v5 = vld [vmem:[#allocation10_spill] sm:$0xff] }
 0x50e   : > { %1971 = vperm.xlu1 %2505, %v3260_v3   ;;  %v590_v47 = vsel %vm557_vm6, %v4164_v53, %v4167_v5  ;;  %v591_v6 = vsel %vm557_vm6, %v4167_v5, %v4171_v41 }
 0x50f   : > { %v3338_v12 = vpop.permute.xlu1 %1258  ;;  %v3340_v54 = vpop.permute.xlu0 %1256  ;;  %v597_v40 = vadd.f32 %v590_v47, %v566_v42  ;;  %v598_v44 = vadd.f32 %v591_v6, %v567_v13  ;;  %v652_v42 = vsel %vm557_vm6, %v4174_v36, %v4177_v23  ;;  %v4178_v47 = vld [vmem:[#allocation32_spill] sm:$0xff] }
 0x512   : > { %2506 = vset.pattern.permute.xlu1 %v4156_v18  ;;  %v4169_v18 = vld [vmem:[#allocation26_spill] sm:$0xff] }
 0x513   : > { %v3353_v27 = vpop.permute.xlu1 %1262  ;;  %v3355_v37 = vpop.permute.xlu0 %1260  ;;  %2025 = vperm.xlu1 %2506, %v3260_v3   ;;  %v620_v62 = vsel %vm557_vm6, %v4170_v38, %v4169_v18  ;;  %v621_v28 = vsel %vm557_vm6, %v4169_v18, %v4172_v9  ;;  %v4182_v18 = vld [vmem:[#allocation13_spill] sm:$0xff] }
 0x514   : > { %v627_v43 = vadd.f32 %v620_v62, %v596_v29  ;;  %v628_v31 = vadd.f32 %v621_v28, %v597_v40  ;;  %v4179_v29 = vld [vmem:[#allocation31_spill] sm:$0xff]  ;;  %v4181_v40 = vld [vmem:[#allocation30_spill] sm:$0xff]  ;;  %v684_v38 = vsel %vm682_vm7, %v4178_v47, %v4182_v18 }
 0x515   : > { %v683_v13 = vsel %vm682_vm7, %v4179_v29, %v4178_v47  ;;  %v4189_v47 = vld [vmem:[#allocation37_spill] sm:$0xff] }
 0x516   : > { %v658_v53 = vadd.f32 %v651_v0, %v627_v43  ;;  %v659_v5 = vadd.f32 %v652_v42, %v628_v31  ;;  %v4187_v42 = vmov 1  }
 0x517   : > { %v3368_v4 = vpop.permute.xlu1 %1289  ;;  %v3370_v51 = vpop.permute.xlu0 %1287  ;;  %2508 = vset.pattern.permute.xlu1 %v4163_v20  ;;  %v4176_v20 = vld [vmem:[#allocation27_spill] sm:$0xff] }
 0x518   : > { %2108 = vperm.xlu1 %2508, %v3260_v3   ;;  %v622_v10 = vsel %vm557_vm6, %v4172_v9, %v4176_v20  ;;  %v630_v19 = vadd.f32 %v4176_v20, %v599_v30  ;;  %v690_v62 = vadd.f32 %v683_v13, %v658_v53  ;;  %v691_v43 = vadd.f32 %v684_v38, %v659_v5  ;;  %v4184_v30 = vld [vmem:[#allocation34_spill] sm:$0xff]  ;;  %v4190_v13 = vld [vmem:[#allocation36_spill] sm:$0xff] }
 0x519   : > { %v629_v1 = vadd.f32 %v622_v10, %v598_v44  ;;  %v4183_v44 = vld [vmem:[#allocation35_spill] sm:$0xff]  ;;  %v4188_v5 = vld [vmem:[#allocation38_spill] sm:$0xff] }
 0x51a   : > { %v661_v28 = vadd.f32 %v4181_v40, %v630_v19  ;;  %v714_v31 = vsel %vm682_vm7, %v4184_v30, %v4183_v44  ;;  %v715_v0 = vsel %vm682_vm7, %v4183_v44, %v4186_v61  ;;  %v745_v29 = vsel %vm682_vm7, %v4189_v47, %v4188_v5  ;;  %v4193_v30 = vld [vmem:[#allocation41_spill] sm:$0xff] }
 0x51b   : > { %v3384_v58 = vpop.permute.xlu1 %1293  ;;  %v3386_v2 = vpop.permute.xlu0 %1291  ;;  %v721_v20 = vadd.f32 %v714_v31, %v690_v62  ;;  %v722_v19 = vadd.f32 %v715_v0, %v691_v43  ;;  %v4192_v44 = vmov 0   ;;  %v4194_v31 = vld [vmem:[#allocation40_spill] sm:$0xff] }
 0x51c   : > { %2509 = vset.pattern.permute.xlu1 %v4168_v56  ;;  %v653_v56 = vsel %vm557_vm6, %v4177_v23, %v4181_v40  ;;  %v4191_v40 = vld [vmem:[#allocation15_spill] sm:$0xff]  ;;  %v4196_v0 = vld [vmem:[#allocation20_spill] sm:$0xff] }
 0x51d   : > { %2139 = vperm.xlu1 %2509, %v3260_v3   ;;  %v660_v9 = vadd.f32 %v653_v56, %v629_v1  ;;  %v746_v56 = vsel %vm682_vm7, %v4188_v5, %v4191_v40 }
 0x51e   : > { %v753_v43 = vadd.f32 %v746_v56, %v722_v19 }
 0x51f   : > { %v3400_v63 = vpop.permute.xlu1 %1320  ;;  %v3402_v60 = vpop.permute.xlu0 %1318 }
 0x521   : > { %2511 = vset.pattern.permute.xlu1 %v4173_v15  ;;  %v4185_v15 = vld [vmem:[#allocation33_spill] sm:$0xff] }
 0x522   : > { %2201 = vperm.xlu1 %2511, %v3260_v3   ;;  %v685_v36 = vsel %vm682_vm7, %v4182_v18, %v4185_v15  ;;  %v693_v1 = vadd.f32 %v4185_v15, %v661_v28  ;;  %v752_v18 = vadd.f32 %v745_v29, %v721_v20  ;;  %v776_v15 = vsel %vm682_vm7, %v4194_v31, %v4193_v30  ;;  %v4199_v29 = vld [vmem:[#allocation42_spill] sm:$0xff] }
 0x523   : > { %v3416_v49 = vpop.permute.xlu1 %1324  ;;  %v3418_v7 = vpop.permute.xlu0 %1322  ;;  %v692_v53 = vadd.f32 %v685_v36, %v660_v9  ;;  %v4195_v36 = vld [vmem:[#allocation39_spill] sm:$0xff]  ;;  %v777_v20 = vsel %vm682_vm7, %v4193_v30, %v4196_v0 }
 0x524   : > { %v724_v28 = vadd.f32 %v4190_v13, %v693_v1  ;;  %v784_v19 = vadd.f32 %v777_v20, %v753_v43  ;;  %v4202_v43 = vld [vmem:[#allocation48_spill] sm:$0xff] }
 0x526   : > { %2512 = vset.pattern.permute.xlu1 %v4180_v46  ;;  %v716_v46 = vsel %vm682_vm7, %v4186_v61, %v4190_v13  ;;  %v747_v61 = vsel %vm682_vm7, %v4191_v40, %v4195_v36  ;;  %v755_v1 = vadd.f32 %v4195_v36, %v724_v28  ;;  %v778_v13 = vsel %vm682_vm7, %v4196_v0, %v4199_v29  ;;  %v4201_v40 = vld [vmem:[#allocation43_spill] sm:$0xff]  ;;  %v4204_v0 = vld [vmem:[#allocation49_spill] sm:$0xff] }
 0x527   : > { %v3431_v41 = vpop.permute.xlu1 %1352  ;;  %v3433_v6 = vpop.permute.xlu0 %1350  ;;  %2232 = vperm.xlu1 %2512, %v3260_v3   ;;  %v723_v9 = vadd.f32 %v716_v46, %v692_v53  ;;  %v4200_v46 = vld [vmem:[#allocation44_spill] sm:$0xff] }
 0x528   : > { %v822_v56 = vsel %vm821_vm8, %v4201_v40, %v4200_v46  ;;  %v823_v36 = vsel %vm821_vm8, %v4200_v46, %v4202_v43 }
 0x529   : > { %v754_v53 = vadd.f32 %v747_v61, %v723_v9  ;;  %v786_v9 = vadd.f32 %v4199_v29, %v755_v1  ;;  %v4203_v61 = vld [vmem:[#allocation45_spill] sm:$0xff]  ;;  %v4206_v1 = vld [vmem:[#allocation50_spill] sm:$0xff] }
 0x52a   : > { %v866_v20 = vsel %vm821_vm8, %v4204_v0, %v4203_v61  ;;  %v4207_v29 = vld [vmem:[#allocation46_spill] sm:$0xff] }
 0x52b   : > { %v3446_v10 = vpop.permute.xlu1 %1356  ;;  %v3448_v23 = vpop.permute.xlu0 %1354  ;;  %2514 = vset.pattern.permute.xlu1 %v4187_v42  ;;  %v783_v42 = vadd.f32 %v776_v15, %v752_v18  ;;  %v785_v31 = vadd.f32 %v778_v13, %v754_v53  ;;  %v829_v15 = vadd.f32 %v822_v56, %v784_v19  ;;  %v831_v53 = vadd.f32 %v4202_v43, %v786_v9  ;;  %v4210_v9 = vld [vmem:[#allocation52_spill] sm:$0xff]  ;;  %v4211_v43 = vld [vmem:[#allocation47_spill] sm:$0xff] }
 0x52c   : > { %1662 = vperm.xlu1 %2514, %v3260_v3   ;;  %v867_v19 = vsel %vm821_vm8, %v4203_v61, %v4206_v1 }
 0x52d   : > { %v828_v30 = vadd.f32 %v4201_v40, %v783_v42  ;;  %v830_v42 = vadd.f32 %v823_v36, %v785_v31  ;;  %v873_v13 = vadd.f32 %v866_v20, %v829_v15  ;;  %v4208_v40 = vld [vmem:[#allocation51_spill] sm:$0xff]  ;;  %v911_v15 = vsel %vm821_vm8, %v4207_v29, %v4210_v9  ;;  %v4212_v36 = vld [vmem:[#allocation53_spill] sm:$0xff] }
 0x52e   : > { %v910_v46 = vsel %vm821_vm8, %v4208_v40, %v4207_v29  ;;  %v954_v61 = vsel %vm821_vm8, %v4212_v36, %v4211_v43  ;;  %v4214_v29 = vld [vmem:[#allocation56_spill] sm:$0xff] }
 0x52f   : > { %v3462_v38 = vpop.permute.xlu1 %1383  ;;  %v3464_v62 = vpop.permute.xlu0 %1381 }
 0x530   : > { %2515 = vset.pattern.permute.xlu1 %v4192_v44  ;;  %v872_v44 = vadd.f32 %v4204_v0, %v828_v30  ;;  %v875_v30 = vadd.f32 %v4206_v1, %v831_v53  ;;  %v917_v0 = vadd.f32 %v910_v46, %v873_v13  ;;  %v4213_v1 = vld [vmem:[#allocation54_spill] sm:$0xff] }
 0x532   : > { %v916_v56 = vadd.f32 %v4208_v40, %v872_v44  ;;  %v961_v53 = vadd.f32 %v954_v61, %v917_v0  ;;  %v4215_v40 = vld [vmem:[#allocation55_spill] sm:$0xff]  ;;  %v1010_v61 = vsel %vm1007_vm9, %v3228_v11, %v3230_v8 }
 0x533   : > { %v3477_v5 = vpop.permute.xlu1 %1387  ;;  %v3480_v47 = vpop.permute.xlu0 %1385  ;;  %v1008_v46 = vsel %vm1007_vm9, %v4215_v40, %v4214_v29 }
 0x534   : > { %4197 = vst [vmem:[#allocation16_spill] sm:$0xff] %v3477_v5  ;;  %4198 = vst [vmem:[#allocation8_spill] sm:$0xff] %v3480_v47  ;;  %v874_v47 = vadd.f32 %v867_v19, %v830_v42  ;;  %v960_v20 = vadd.f32 %v4212_v36, %v916_v56  ;;  %v919_v42 = vadd.f32 %v4210_v9, %v875_v30 }
 0x535   : > { %v955_v19 = vsel %vm821_vm8, %v4211_v43, %v4213_v1  ;;  %v1062_v56 = vsel %vm1007_vm9, %v3240_v39, %v3238_v55  ;;  %v1016_v9 = vadd.f32 %v1008_v46, %v961_v53  ;;  %v1116_v43 = vsel %vm1007_vm9, %v3254_v26, %v3252_v25 }
 0x536   : > { %v918_v44 = vadd.f32 %v911_v15, %v874_v47  ;;  %v963_v0 = vadd.f32 %v4213_v1, %v919_v42  ;;  %v1009_v36 = vsel %vm1007_vm9, %v4214_v29, %v3228_v11  ;;  %v1170_v42 = vsel %vm1007_vm9, %v3269_v35, %v3267_v33 }
 0x537   : > { %v3489_v18 = vpop.permute.xlu1 %1414  ;;  %v3492_v28 = vpop.permute.xlu0 %1412 }
 0x538   : > { %v962_v30 = vadd.f32 %v955_v19, %v918_v44  ;;  %v1063_v44 = vsel %vm1007_vm9, %v3238_v55, %v3246_v21  ;;  %v1018_v11 = vadd.f32 %v1010_v61, %v963_v0  ;;  %v1117_v55 = vsel %vm1007_vm9, %v3252_v25, %v3264_v22 }
 0x539   : > { %v1172_v25 = vsel %vm1007_vm9, %v3275_v59, %v3273_v50 }
 0x53a   : > { %v1017_v1 = vadd.f32 %v1009_v36, %v962_v30 }
 0x53b   : > { %v3501_v3 = vpop.permute.xlu1 %1418  ;;  %v3514_v31 = vpop.permute.xlu0 %1416 }
 0x53c   : > { %4205 = vst [vmem:[#allocation19_spill] sm:$0xff] %v3501_v3  ;;  %4209 = vst [vmem:[#allocation18_spill] sm:$0xff] %v3514_v31  ;;  %v1015_v31 = vadd.f32 %v4215_v40, %v960_v20  ;;  %v1070_v20 = vadd.f32 %v1062_v56, %v1016_v9  ;;  %v1071_v29 = vadd.f32 %v1063_v44, %v1017_v1 }
 0x53d   : > { %v1171_v56 = vsel %vm1007_vm9, %v3267_v33, %v3275_v59  ;;  %v1204_v33 = vsel %vm1201_vm10, %v3290_v52, %v3288_v24  ;;  %v1264_v59 = vsel %vm1201_vm10, %v3340_v54, %v3338_v12 }
 0x53e   : > { %v1069_v15 = vadd.f32 %v3240_v39, %v1015_v31  ;;  %v1064_v39 = vsel %vm1007_vm9, %v3246_v21, %v3244_v14  ;;  %v1124_v8 = vadd.f32 %v1116_v43, %v1070_v20  ;;  %v1118_v14 = vsel %vm1007_vm9, %v3264_v22, %v3262_v34 }
 0x53f   : > { %v3511_v5 = vpop.permute.xlu1 %1445  ;;  %v3526_v13 = vpop.permute.xlu0 %1443  ;;  %v1072_v40 = vadd.f32 %v1064_v39, %v1018_v11  ;;  %v1233_v34 = vsel %vm1201_vm10, %v3307_v45, %v3305_v57  ;;  %v1125_v22 = vadd.f32 %v1117_v55, %v1071_v29  ;;  %v1234_v20 = vsel %vm1201_vm10, %v3305_v57, %v3324_v17 }
 0x540   : > { %v1123_v31 = vadd.f32 %v3254_v26, %v1069_v15  ;;  %v1202_v26 = vsel %vm1201_vm10, %v3280_v16, %v3278_v32  ;;  %v1178_v46 = vadd.f32 %v1170_v42, %v1124_v8  ;;  %v1203_v15 = vsel %vm1201_vm10, %v3278_v32, %v3290_v52 }
 0x541   : > { %v1235_v32 = vsel %vm1201_vm10, %v3324_v17, %v3322_v48  ;;  %v1295_v52 = vsel %vm1201_vm10, %v3370_v51, %v3368_v4  ;;  %v1266_v57 = vsel %vm1201_vm10, %v3355_v37, %v3353_v27  ;;  %v1327_v48 = vsel %vm1326_vm11, %v3402_v60, %v3400_v63 }
 0x542   : > { %v1177_v21 = vadd.f32 %v3269_v35, %v1123_v31  ;;  %v1126_v35 = vadd.f32 %v1118_v14, %v1072_v40  ;;  %v1210_v0 = vadd.f32 %v1202_v26, %v1178_v46  ;;  %v1265_v31 = vsel %vm1201_vm10, %v3338_v12, %v3355_v37 }
 0x543   : > { %v3523_v3 = vpop.permute.xlu1 %1449  ;;  %v3563_v19 = vpop.permute.xlu0 %1447  ;;  %v1296_v8 = vsel %vm1201_vm10, %v3368_v4, %v3386_v2  ;;  %v1297_v12 = vsel %vm1201_vm10, %v3386_v2, %v3384_v58  ;;  %v1358_v37 = vsel %vm1326_vm11, %v3433_v6, %v3431_v41  ;;  %v1328_v26 = vsel %vm1326_vm11, %v3400_v63, %v3418_v7 }
 0x544   : > { %v1209_v30 = vadd.f32 %v3280_v16, %v1177_v21  ;;  %v1179_v16 = vadd.f32 %v1171_v56, %v1125_v22  ;;  %v1180_v43 = vadd.f32 %v1172_v25, %v1126_v35  ;;  %v1241_v36 = vadd.f32 %v1233_v34, %v1210_v0  ;;  %v4216_v22 = vld [vmem:[#allocation8_spill] sm:$0xff] }
 0x545   : > { %v1329_v4 = vsel %vm1326_vm11, %v3418_v7, %v3416_v49  ;;  %v1389_v2 = vsel %vm1326_vm11, %v3464_v62, %v3462_v38  ;;  %v1359_v46 = vsel %vm1326_vm11, %v3431_v41, %v3448_v23  ;;  %v1360_v63 = vsel %vm1326_vm11, %v3448_v23, %v3446_v10  ;;  %v4217_v41 = vld [vmem:[#allocation16_spill] sm:$0xff] }
 0x546   : > { %v1240_v50 = vadd.f32 %v3307_v45, %v1209_v30  ;;  %v1211_v45 = vadd.f32 %v1203_v15, %v1179_v16  ;;  %v1212_v44 = vadd.f32 %v1204_v33, %v1180_v43  ;;  %v1272_v39 = vadd.f32 %v1264_v59, %v1241_v36  ;;  %v4219_v16 = vld [vmem:[#allocation19_spill] sm:$0xff] }
 0x547   : > { %v3538_v47 = vpop.permute.xlu1 %1477  ;;  %v1476_v61 = vpop.permute.xlu0 %1475  ;;  %v1420_v7 = vsel %vm1326_vm11, %v3492_v28, %v3489_v18  ;;  %v1390_v35 = vsel %vm1326_vm11, %v3462_v38, %v4216_v22  ;;  %v1391_v0 = vsel %vm1326_vm11, %v4216_v22, %v4217_v41  ;;  %v1452_v23 = vsel %vm1451_vm12, %v3526_v13, %v3511_v5 }
 0x548   : > { %v1271_v24 = vadd.f32 %v3340_v54, %v1240_v50  ;;  %v1242_v17 = vadd.f32 %v1234_v20, %v1211_v45  ;;  %v1243_v54 = vadd.f32 %v1235_v32, %v1212_v44  ;;  %v1303_v1 = vadd.f32 %v1295_v52, %v1272_v39  ;;  %v4218_v50 = vld [vmem:[#allocation18_spill] sm:$0xff] }
 0x549   : > { %v1421_v59 = vsel %vm1326_vm11, %v3489_v18, %v4218_v50  ;;  %v1422_v38 = vsel %vm1326_vm11, %v4218_v50, %v4219_v16  ;;  %v1453_v52 = vsel %vm1451_vm12, %v3511_v5, %v3563_v19  ;;  %v1454_v18 = vsel %vm1451_vm12, %v3563_v19, %v3523_v3  ;;  %v4220_v50 = vld [vmem:[#allocation3_spill] sm:$0xff] }
 0x54a   : > { %v1302_v42 = vadd.f32 %v3370_v51, %v1271_v24  ;;  %v1273_v51 = vadd.f32 %v1265_v31, %v1242_v17  ;;  %v1274_v55 = vadd.f32 %v1266_v57, %v1243_v54  ;;  %v1335_v14 = vadd.f32 %v1327_v48, %v1303_v1 }
 0x54b   : > { %v3561_v53 = vpop.permute.xlu1 %1481  ;;  %v1480_v21 = vpop.permute.xlu0 %1479 }
 0x54c   : > { %v1334_v27 = vadd.f32 %v3402_v60, %v1302_v42  ;;  %v1304_v60 = vadd.f32 %v1296_v8, %v1273_v51  ;;  %v1305_v29 = vadd.f32 %v1297_v12, %v1274_v55  ;;  %v1366_v40 = vadd.f32 %v1358_v37, %v1335_v14 }
 0x54d   : > { %v1484_v42 = vsel %vm1451_vm12, %v3538_v47, %v1480_v21  ;;  %v1485_v48 = vsel %vm1451_vm12, %v1480_v21, %v3561_v53 }
 0x54e   : > { %v1365_v58 = vadd.f32 %v3433_v6, %v1334_v27  ;;  %v1336_v6 = vadd.f32 %v1328_v26, %v1304_v60  ;;  %v1337_v56 = vadd.f32 %v1329_v4, %v1305_v29  ;;  %v1397_v25 = vadd.f32 %v1389_v2, %v1366_v40 }
 0x54f   : > { %v3585_v9 = vpop.permute.xlu1 %1506  ;;  %v2570_v29 = vmov 1983009808  }
 0x550   : > { %v1396_v49 = vadd.f32 %v3464_v62, %v1365_v58  ;;  %v1367_v62 = vadd.f32 %v1359_v46, %v1336_v6  ;;  %v1368_v15 = vadd.f32 %v1360_v63, %v1337_v56  ;;  %v1428_v33 = vadd.f32 %v1420_v7, %v1397_v25 }
 0x551   : > { %v1602_v40 = vunpack.c.l.s4 %v2570_v29 }
 0x552   : > { %v1427_v10 = vadd.f32 %v3492_v28, %v1396_v49  ;;  %v1483_v28 = vsel %vm1451_vm12, %v1476_v61, %v3538_v47  ;;  %v1398_v36 = vadd.f32 %v1390_v35, %v1367_v62  ;;  %v1399_v20 = vadd.f32 %v1391_v0, %v1368_v15 }
 0x553   : > { %v1509_v11 = vpop.permute.xlu1 %1508  ;;  %v1460_v32 = vadd.f32 %v1452_v23, %v1428_v33  ;;  %v1603_v22 = vunpack.c.0.s8 %v1602_v40 }
 0x554   : > { %v1459_v43 = vadd.f32 %v3526_v13, %v1427_v10  ;;  %v1514_v44 = vsel %vm1451_vm12, %v3585_v9, %v1509_v11  ;;  %v1429_v13 = vadd.f32 %v1421_v59, %v1398_v36  ;;  %v1430_v39 = vadd.f32 %v1422_v38, %v1399_v20 }
 0x555   : > { %v1491_v31 = vadd.f32 %v1483_v28, %v1460_v32  ;;  %v1606_v59 = vsub.s32 %v1603_v22, %v4220_v50  ;;  %v4221_v32 = vld [vmem:[#allocation57_spill] sm:$0xff] }
 0x556   : > { %v1490_v45 = vadd.f32 %v1476_v61, %v1459_v43  ;;  %v1461_v17 = vadd.f32 %v1453_v52, %v1429_v13  ;;  %v1462_v54 = vadd.f32 %v1454_v18, %v1430_v39  ;;  %v4223_v52 = vmov 9  }
 0x557   : > { %v1513_v30 = vpop.permute.xlu1 %1512  ;;  %v1522_v1 = vadd.f32 %v1514_v44, %v1491_v31  ;;  %v4224_v18 = vmov 12   ;;  %v4226_v44 = vmov 0  }
 0x558   : > { %v1521_v5 = vadd.f32 %v3585_v9, %v1490_v45  ;;  %v1492_v27 = vadd.f32 %v1484_v42, %v1461_v17  ;;  %v1493_v37 = vadd.f32 %v1485_v48, %v1462_v54  ;;  %v4225_v45 = vmov 15  }
 0x55b   : > { %v1540_v57 = vpop.permute.xlu1 %1539 }
 0x55c   : > { %v1560_v34 = vpop.permute.xlu0 %1559 }
 0x55f   : > { %v1544_v55 = vpop.permute.xlu1 %1543 }
 0x560   : > { %v1511_v24 = vpop.permute.xlu0 %1510 }
 0x561   : > { %v1515_v19 = vsel %vm1451_vm12, %v1509_v11, %v1511_v24  ;;  %v1516_v61 = vsel %vm1451_vm12, %v1511_v24, %v1513_v30  ;;  %v4222_v24 = vmov 6  }
 0x562   : > { %v1523_v14 = vadd.f32 %v1515_v19, %v1492_v27  ;;  %v1524_v53 = vadd.f32 %v1516_v61, %v1493_v37  ;;  %v4227_v61 = vld [vmem:[#allocation5_spill] sm:$0xff]  ;;  %v4228_v27 = vld [vmem:[#allocation4_spill] sm:$0xff] }
 0x563   : > { %v1582_v49 = vpop.permute.xlu1 %1581 }
 0x564   : > { %v1538_v3 = vpop.permute.xlu0 %1537 }
 0x565   : > { %v1545_v8 = vsel %vm1451_vm12, %v1538_v3, %v1540_v57  ;;  %v1552_v12 = vadd.f32 %v1538_v3, %v1521_v5 }
 0x566   : > { %v1553_v51 = vadd.f32 %v1545_v8, %v1522_v1 }
 0x567   : > { %v1562_v47 = vadd.f32 %v1560_v34, %v1552_v12 }
 0x568   : > { %v1563_v21 = vadd.f32 %v1560_v34, %v1553_v51  ;;  %v1542_v9 = vpop.permute.xlu0 %1541 }
 0x569   : > { %v1566_v26 = vmax.f32 %v1562_v47, 0.0  ;;  %v1546_v4 = vsel %vm1451_vm12, %v1540_v57, %v1542_v9  ;;  %v1547_v58 = vsel %vm1451_vm12, %v1542_v9, %v1544_v55  ;;  %v4229_v47 = vld [vmem:[#allocation7_spill] sm:$0xff] }
 0x56a   : > { %v1567_v11 = vmax.f32 %v1563_v21, 0.0  ;;  %v1554_v2 = vadd.f32 %v1546_v4, %v1523_v14  ;;  %v1555_v60 = vadd.f32 %v1547_v58, %v1524_v53  ;;  %v4230_v21 = vld [vmem:[#allocation6_spill] sm:$0xff] }
 0x56b   : > { %v1570_v6 = vmin.f32 %v1566_v26, 6.0 }
 0x56c   : > { %v1564_v46 = vadd.f32 %v1560_v34, %v1554_v2  ;;  %v2494_v63 = vpop.permute.xlu0 %2493  ;;  %v1565_v7 = vadd.f32 %v1560_v34, %v1555_v60  ;;  %v1571_v30 = vmin.f32 %v1567_v11, 6.0 }
 0x56d   : > { %v2496_v56 = vunpack.i.h.bf16 %v2494_v63  ;;  %v2495_v25 = vunpack.i.l.bf16 %v2494_v63 }
 0x56e   : > { %v1568_v35 = vmax.f32 %v1564_v46, 0.0  ;;  %v1569_v41 = vmax.f32 %v1565_v7, 0.0 }
 0x56f   : > { %v1583_v0 = vsel %vm821_vm8, %v2495_v25, %v2496_v56  ;;  %v1589_v10 = vmul.f32 %v2495_v25, %v1570_v6  ;;  %v1584_v23 = vsel %vm821_vm8, %v2496_v56, %v1582_v49 }
 0x570   : > { %v1590_v62 = vmul.f32 %v1583_v0, %v1571_v30  ;;  %v1572_v15 = vmin.f32 %v1568_v35, 6.0  ;;  %v1573_v33 = vmin.f32 %v1569_v41, 6.0 }
 0x572   : > { %v1599_v16 = vcombine.low %v1589_v10, %v1590_v62  ;;  %v1591_v38 = vmul.f32 %v1584_v23, %v1572_v15  ;;  %v1592_v34 = vmul.f32 %v1582_v49, %v1573_v33 }
 0x574   : > { %v1600_v43 = vcombine.low %v1591_v38, %v1592_v34  ;;  %v1607_v28 = vrot.slane %v1599_v16, %v1606_v59  ;;  %v1696_v13 = vpop.permute.xlu1 %1695 }
 0x576   : > { %v1614_v36 = vrot.slane %v1600_v43, %v1606_v59 }
 0x578   : > { %v1615_v20 = vcombine.low %v1607_v28, %v1614_v36 }
 0x579   : > { %v1758_v39 = vpop.permute.xlu1 %1757 }
 0x57a   : > { %1616 = vrot.lane.b32.xlu0 %v1615_v20, %s2571_s13 }
 0x57e   : > { %1726 = vperm.xlu0 %2498, %v4221_v32   ;;  %v3699_v31 = vpop.permute.xlu1 %1788 }
 0x582   : > { %2501 = vset.pattern.permute.xlu0 %v4222_v24 }
 0x583   : > { %1819 = vperm.xlu0 %2501, %v4221_v32   ;;  %v3701_v57 = vpop.permute.xlu1 %1850 }
 0x587   : > { %2504 = vset.pattern.permute.xlu0 %v4223_v52 }
 0x588   : > { %1927 = vperm.xlu0 %2504, %v4221_v32   ;;  %v3703_v42 = vpop.permute.xlu1 %1883 }
 0x58c   : > { %2507 = vset.pattern.permute.xlu0 %v4224_v18 }
 0x58d   : > { %2077 = vperm.xlu0 %2507, %v4221_v32   ;;  %v3705_v17 = vpop.permute.xlu1 %1971 }
 0x591   : > { %2510 = vset.pattern.permute.xlu0 %v4225_v45 }
 0x592   : > { %2170 = vperm.xlu0 %2510, %v4221_v32   ;;  %v3708_v1 = vpop.permute.xlu1 %2025 }
 0x596   : > { %2513 = vset.pattern.permute.xlu0 %v4226_v44 }
 0x597   : > { %1627 = vperm.xlu0 %2513, %v4221_v32   ;;  %v3710_v3 = vpop.permute.xlu1 %2108 }
 0x59c   : > { %v3720_v14 = vpop.permute.xlu1 %2139 }
 0x5a1   : > { %v3728_v60 = vpop.permute.xlu1 %2201 }
 0x5a6   : > { %v3738_v56 = vpop.permute.xlu1 %2232 }
 0x5ab   : > { %v1663_v0 = vpop.permute.xlu1 %1662 }
 0x5ec   : > { %v1617_v48 = vpop.permute.xlu0 %1616 }
 0x5ed   : > { %v1618_v5 = vrot.slane %v1617_v48, 2 }
 0x5ef   : > { %v1620_v54 = vsel %vm1619_vm13, %v1617_v48, %v1618_v5 }
 0x5f0   : > { %1622 = vst [vmem:[#allocation2 + $0x2] sm:$0x3f] %v1620_v54 }
 0x5f7   : > { %v1623_v19 = vld [vmem:[#allocation2] ss:$2 sm:$0xf]  ;;  %v1660_v26 = vld [vmem:[#allocation2 + $0x1] ss:$2 sm:$0xf] }
 0x5f8   : > { %v3713_v8 = vrot.slane %v1623_v19, %v4227_v61  ;;  %v1634_v37 = vrot.slane %v1623_v19, %v4228_v27  ;;  %v3718_v55 = vrot.slane %v1623_v19, %v4229_v47  ;;  %v1642_v9 = vrot.slane %v1623_v19, %v4230_v21  ;;  %v1881_v54 = vld [vmem:[#allocation2 + $0x2] ss:$2 sm:$0x7] }
 0x5f9   : > { %v1673_v2 = vrot.slane %v1660_v26, %v4227_v61  ;;  %v1669_v29 = vrot.slane %v1660_v26, %v4228_v27  ;;  %v1681_v49 = vrot.slane %v1660_v26, %v4229_v47  ;;  %v1677_v7 = vrot.slane %v1660_v26, %v4230_v21 }
 0x5fa   : > { %v1699_v51 = vmul.f32 %v1696_v13, %v3713_v8  ;;  %v1698_v53 = vmul.f32 %v1696_v13, %v1634_v37  ;;  %v1701_v58 = vmul.f32 %v1696_v13, %v3718_v55  ;;  %v1700_v11 = vmul.f32 %v1696_v13, %v1642_v9 }
 0x5fb   : > { %v1761_v22 = vmul.f32 %v1758_v39, %v3713_v8  ;;  %v1760_v35 = vmul.f32 %v1758_v39, %v1634_v37  ;;  %v1763_v10 = vmul.f32 %v1758_v39, %v3718_v55  ;;  %v1762_v23 = vmul.f32 %v1758_v39, %v1642_v9 }
 0x5fc   : > { %1708 = vrot.lane.b32.xlu0 %v1699_v51, %s2540_s26  ;;  %1706 = vrot.lane.b32.xlu1 %v1698_v53, %s2540_s26  ;;  %v1686_v62 = vmul.f32 %v1669_v29, %v1663_v0  ;;  %v1687_v15 = vmul.f32 %v1673_v2, %v1663_v0  ;;  %v1688_v33 = vmul.f32 %v1677_v7, %v1663_v0  ;;  %v1925_v51 = vld [vmem:[#allocation2 + $0x3] ss:$2 sm:$0x7] }
 0x5fd   : > { %v1727_v12 = vpop.permute.xlu0 %1726  ;;  %v1792_v50 = vmul.f32 %v3699_v31, %v1673_v2  ;;  %v1689_v16 = vmul.f32 %v1681_v49, %v1663_v0  ;;  %v1791_v36 = vmul.f32 %v3699_v31, %v1669_v29  ;;  %v1794_v18 = vmul.f32 %v3699_v31, %v1681_v49 }
 0x5fe   : > { %v1730_v40 = vmul.f32 %v1727_v12, %v1673_v2  ;;  %v1729_v63 = vmul.f32 %v1727_v12, %v1669_v29  ;;  %v1732_v6 = vmul.f32 %v1727_v12, %v1681_v49  ;;  %v1731_v25 = vmul.f32 %v1727_v12, %v1677_v7 }
 0x5ff   : > { %v1793_v45 = vmul.f32 %v3699_v31, %v1677_v7  ;;  %v1854_v31 = vmul.f32 %v3701_v57, %v1673_v2  ;;  %v1853_v5 = vmul.f32 %v3701_v57, %v1669_v29  ;;  %v1856_v19 = vmul.f32 %v3701_v57, %v1681_v49 }
 0x600   : > { %1712 = vrot.lane.b32.xlu0 %v1701_v58, %s2540_s26  ;;  %1710 = vrot.lane.b32.xlu1 %v1700_v11, %s2540_s26  ;;  %v1855_v12 = vmul.f32 %v3701_v57, %v1677_v7  ;;  %v1934_v26 = vrot.slane %v1925_v51, %v4228_v27  ;;  %v1942_v11 = vrot.slane %v1925_v51, %v4230_v21 }
 0x601   : > { %v1938_v2 = vrot.slane %v1925_v51, %v4227_v61 }
 0x602   : > { %v1820_v4 = vpop.permute.xlu0 %1819 }
 0x603   : > { %v1823_v44 = vmul.f32 %v1820_v4, %v3713_v8  ;;  %v1822_v13 = vmul.f32 %v1820_v4, %v1634_v37  ;;  %v1825_v39 = vmul.f32 %v1820_v4, %v3718_v55  ;;  %v1824_v48 = vmul.f32 %v1820_v4, %v1642_v9  ;;  %v1969_v4 = vld [vmem:[#allocation2 + $0x2] ss:$2 sm:$0xf] }
 0x604   : > { %1739 = vrot.lane.b32.xlu0 %v1730_v40, %s2540_s26  ;;  %1737 = vrot.lane.b32.xlu1 %v1729_v63, %s2540_s26  ;;  %v3799_v29 = vrot.slane %v1969_v4, %v4227_v61  ;;  %v1978_v63 = vrot.slane %v1969_v4, %v4228_v27 }
 0x606   : > { %v1996_v7 = vmul.f32 %v3799_v29, %v3705_v17 }
 0x607   : > { %v3732_v46 = vpop.permute.xlu0 %1927 }
 0x608   : > { %1743 = vrot.lane.b32.xlu0 %v1732_v6, %s2540_s26  ;;  %1741 = vrot.lane.b32.xlu1 %v1731_v25, %s2540_s26  ;;  %v1946_v57 = vmul.f32 %v1934_v26, %v3732_v46  ;;  %v1948_v40 = vmul.f32 %v1942_v11, %v3732_v46  ;;  %v1947_v49 = vmul.f32 %v1938_v2, %v3732_v46  ;;  %v2023_v25 = vld [vmem:[#allocation2 + $0x3] ss:$2 sm:$0xf] }
 0x609   : > { %v1986_v6 = vrot.slane %v1969_v4, %v4230_v21  ;;  %v3816_v46 = vrot.slane %v2023_v25, %v4227_v61  ;;  %v2032_v0 = vrot.slane %v2023_v25, %v4228_v27  ;;  %v2280_v26 = vld [vmem:[%s2661_s25 + $0x4] sm:$0xff] }
 0x60a   : > { %v2284_v2 = vcombine.high %v2280_v26, %v2280_v26 }
 0x60c   : > { %v3740_v30 = vpop.permute.xlu0 %2077  ;;  %1770 = vrot.lane.b32.xlu0 %v1761_v22, %s2541_s27  ;;  %1768 = vrot.lane.b32.xlu1 %v1760_v35, %s2541_s27  ;;  %v1995_v22 = vmul.f32 %v1978_v63, %v3705_v17 }
 0x610   : > { %1774 = vrot.lane.b32.xlu0 %v1763_v10, %s2541_s27  ;;  %1772 = vrot.lane.b32.xlu1 %v1762_v23, %s2541_s27  ;;  %v1997_v10 = vmul.f32 %v1986_v6, %v3705_v17  ;;  %v3825_v23 = vrot.slane %v2023_v25, %v4229_v47 }
 0x611   : > { %v3746_v41 = vpop.permute.xlu0 %2170 }
 0x614   : > { %1801 = vrot.lane.b32.xlu0 %v1792_v50, %s2541_s27  ;;  %1799 = vrot.lane.b32.xlu1 %v1791_v36, %s2541_s27  ;;  %v2082_v50 = vmul.f32 %v3740_v30, %v1986_v6  ;;  %v2173_v36 = vmul.f32 %v3746_v41, %v2032_v0 }
 0x616   : > { %v1628_v59 = vpop.permute.xlu0 %1627 }
 0x617   : > { %v1651_v38 = vmul.f32 %v1634_v37, %v1628_v59  ;;  %v1652_v34 = vmul.f32 %v3713_v8, %v1628_v59  ;;  %v1653_v43 = vmul.f32 %v1642_v9, %v1628_v59  ;;  %v1654_v28 = vmul.f32 %v3718_v55, %v1628_v59 }
 0x618   : > { %1805 = vrot.lane.b32.xlu0 %v1794_v18, %s2541_s27  ;;  %1803 = vrot.lane.b32.xlu1 %v1793_v45, %s2541_s27  ;;  %v1894_v8 = vrot.slane %v1881_v54, %v4227_v61  ;;  %v1890_v37 = vrot.slane %v1881_v54, %v4228_v27  ;;  %v1898_v9 = vrot.slane %v1881_v54, %v4230_v21 }
 0x619   : > { %v3757_v20 = vadd.f32 %v1686_v62, %v1651_v38  ;;  %v3759_v32 = vadd.f32 %v1687_v15, %v1652_v34  ;;  %v3761_v24 = vadd.f32 %v1688_v33, %v1653_v43  ;;  %v3763_v52 = vadd.f32 %v1689_v16, %v1654_v28 }
 0x61a   : > { %v1903_v55 = vmul.f32 %v1894_v8, %v3703_v42  ;;  %v1902_v53 = vmul.f32 %v1890_v37, %v3703_v42  ;;  %v1904_v58 = vmul.f32 %v1898_v9, %v3703_v42  ;;  %v3807_v42 = vrot.slane %v1969_v4, %v4229_v47 }
 0x61b   : > { %v2050_v62 = vmul.f32 %v3816_v46, %v3708_v1  ;;  %v2040_v61 = vrot.slane %v2023_v25, %v4230_v21  ;;  %v2049_v15 = vmul.f32 %v2032_v0, %v3708_v1  ;;  %v2081_v47 = vmul.f32 %v3740_v30, %v3799_v29 }
 0x61c   : > { %1832 = vrot.lane.b32.xlu0 %v1823_v44, %s2542_s28  ;;  %1830 = vrot.lane.b32.xlu1 %v1822_v13, %s2542_s28  ;;  %v1998_v35 = vmul.f32 %v3807_v42, %v3705_v17  ;;  %v2052_v17 = vmul.f32 %v3825_v23, %v3708_v1  ;;  %v2080_v21 = vmul.f32 %v3740_v30, %v1978_v63  ;;  %v2262_v44 = vld [vmem:[%s4014_s4] sm:$0xf] }
 0x61d   : > { %v2051_v27 = vmul.f32 %v2040_v61, %v3708_v1  ;;  %v2083_v33 = vmul.f32 %v3740_v30, %v3807_v42  ;;  %v2112_v1 = vmul.f32 %v3710_v3, %v3816_v46  ;;  %v2111_v59 = vmul.f32 %v3710_v3, %v2032_v0 }
 0x61e   : > { %v2114_v16 = vmul.f32 %v3710_v3, %v3825_v23  ;;  %v2113_v38 = vmul.f32 %v3710_v3, %v2040_v61  ;;  %v2143_v30 = vmul.f32 %v3720_v14, %v3799_v29  ;;  %v2142_v34 = vmul.f32 %v3720_v14, %v1978_v63 }
 0x61f   : > { %v2145_v43 = vmul.f32 %v3720_v14, %v3807_v42  ;;  %v2144_v28 = vmul.f32 %v3720_v14, %v1986_v6  ;;  %v2174_v3 = vmul.f32 %v3746_v41, %v3816_v46  ;;  %v2176_v18 = vmul.f32 %v3746_v41, %v3825_v23 }
 0x620   : > { %1836 = vrot.lane.b32.xlu0 %v1825_v39, %s2542_s28  ;;  %1834 = vrot.lane.b32.xlu1 %v1824_v48, %s2542_s28  ;;  %v2175_v45 = vmul.f32 %v3746_v41, %v2040_v61  ;;  %v2204_v14 = vmul.f32 %v3728_v60, %v1978_v63  ;;  %v2206_v13 = vmul.f32 %v3728_v60, %v1986_v6 }
 0x621   : > { %v2205_v39 = vmul.f32 %v3728_v60, %v3799_v29  ;;  %v2235_v41 = vmul.f32 %v3738_v56, %v2032_v0  ;;  %v2237_v8 = vmul.f32 %v3738_v56, %v2040_v61  ;;  %v2236_v37 = vmul.f32 %v3738_v56, %v3816_v46  ;;  %v2281_v29 = vld [vmem:[%s2661_s25 + $0xc] sm:$0xf] }
 0x622   : > { %v2238_v4 = vmul.f32 %v3738_v56, %v3825_v23 }
 0x624   : > { %1863 = vrot.lane.b32.xlu0 %v1854_v31, %s2542_s28  ;;  %1861 = vrot.lane.b32.xlu1 %v1853_v5, %s2542_s28  ;;  %v2207_v31 = vmul.f32 %v3728_v60, %v3807_v42 }
 0x628   : > { %1867 = vrot.lane.b32.xlu0 %v1856_v19, %s2542_s28  ;;  %1865 = vrot.lane.b32.xlu1 %v1855_v12, %s2542_s28 }
 0x62c   : > { %1910 = vrot.lane.b32.xlu0 %v1903_v55, %s2545_s29  ;;  %1908 = vrot.lane.b32.xlu1 %v1902_v53, %s2545_s29 }
 0x630   : > { %1952 = vrot.lane.b32.xlu0 %v1946_v57, %s2545_s29  ;;  %1912 = vrot.lane.b32.xlu1 %v1904_v58, %s2545_s29 }
 0x634   : > { %1956 = vrot.lane.b32.xlu0 %v1948_v40, %s2545_s29  ;;  %1954 = vrot.lane.b32.xlu1 %v1947_v49, %s2545_s29 }
 0x638   : > { %2005 = vrot.lane.b32.xlu0 %v1996_v7, %s2551_s30  ;;  %2003 = vrot.lane.b32.xlu1 %v1995_v22, %s2551_s30 }
 0x63c   : > { %2009 = vrot.lane.b32.xlu0 %v1998_v35, %s2551_s30  ;;  %2007 = vrot.lane.b32.xlu1 %v1997_v10, %s2551_s30 }
 0x640   : > { %2059 = vrot.lane.b32.xlu0 %v2050_v62, %s2551_s30  ;;  %2057 = vrot.lane.b32.xlu1 %v2049_v15, %s2551_s30 }
 0x644   : > { %2063 = vrot.lane.b32.xlu0 %v2052_v17, %s2551_s30  ;;  %2061 = vrot.lane.b32.xlu1 %v2051_v27, %s2551_s30 }
 0x648   : > { %2090 = vrot.lane.b32.xlu0 %v2081_v47, %s2567_s6  ;;  %2088 = vrot.lane.b32.xlu1 %v2080_v21, %s2567_s6 }
 0x64c   : > { %2094 = vrot.lane.b32.xlu0 %v2083_v33, %s2567_s6  ;;  %2092 = vrot.lane.b32.xlu1 %v2082_v50, %s2567_s6 }
 0x650   : > { %2121 = vrot.lane.b32.xlu0 %v2112_v1, %s2567_s6  ;;  %2119 = vrot.lane.b32.xlu1 %v2111_v59, %s2567_s6 }
 0x654   : > { %2125 = vrot.lane.b32.xlu0 %v2114_v16, %s2567_s6  ;;  %2123 = vrot.lane.b32.xlu1 %v2113_v38, %s2567_s6 }
 0x658   : > { %2152 = vrot.lane.b32.xlu0 %v2143_v30, %s2568_s7  ;;  %2150 = vrot.lane.b32.xlu1 %v2142_v34, %s2568_s7 }
 0x65c   : > { %2156 = vrot.lane.b32.xlu0 %v2145_v43, %s2568_s7  ;;  %2154 = vrot.lane.b32.xlu1 %v2144_v28, %s2568_s7 }
 0x660   : > { %2183 = vrot.lane.b32.xlu0 %v2174_v3, %s2568_s7  ;;  %2181 = vrot.lane.b32.xlu1 %v2173_v36, %s2568_s7 }
 0x664   : > { %2187 = vrot.lane.b32.xlu0 %v2176_v18, %s2568_s7  ;;  %2185 = vrot.lane.b32.xlu1 %v2175_v45, %s2568_s7 }
 0x668   : > { %2212 = vrot.lane.b32.xlu0 %v2204_v14, %s2569_s8  ;;  %2265 = vperm.xlu1 %2515, %v2262_v44  }
 0x66c   : > { %2216 = vrot.lane.b32.xlu0 %v2206_v13, %s2569_s8  ;;  %2214 = vrot.lane.b32.xlu1 %v2205_v39, %s2569_s8 }
 0x66e   : > { %v1709_v48 = vpop.permute.xlu0 %1708  ;;  %v1707_v5 = vpop.permute.xlu1 %1706 }
 0x66f   : > { %v1714_v54 = vsel %vm432_vm5, %v1707_v5, %v1709_v48 }
 0x670   : > { %2243 = vrot.lane.b32.xlu0 %v2235_v41, %s2569_s8  ;;  %v1721_v19 = vadd.f32 %v1714_v54, %v3757_v20  ;;  %2218 = vrot.lane.b32.xlu1 %v2207_v31, %s2569_s8 }
 0x672   : > { %v1713_v12 = vpop.permute.xlu0 %1712  ;;  %v1711_v51 = vpop.permute.xlu1 %1710 }
 0x673   : > { %v1724_v55 = vadd.f32 %v1713_v12, %v3763_v52  ;;  %v1715_v60 = vsel %vm432_vm5, %v1709_v48, %v1711_v51  ;;  %v1716_v53 = vsel %vm432_vm5, %v1711_v51, %v1713_v12 }
 0x674   : > { %2247 = vrot.lane.b32.xlu0 %v2237_v8, %s2569_s8  ;;  %v1722_v20 = vadd.f32 %v1715_v60, %v3759_v32  ;;  %v1723_v9 = vadd.f32 %v1716_v53, %v3761_v24  ;;  %2245 = vrot.lane.b32.xlu1 %v2236_v37, %s2569_s8 }
 0x676   : > { %v1740_v57 = vpop.permute.xlu0 %1739  ;;  %v1738_v58 = vpop.permute.xlu1 %1737 }
 0x677   : > { %v1745_v52 = vsel %vm432_vm5, %v1738_v58, %v1740_v57 }
 0x678   : > { %2285 = vrot.lane.b32.xlu0 %v2280_v26, %s2545_s29  ;;  %v1752_v11 = vadd.f32 %v1745_v52, %v1721_v19  ;;  %2249 = vrot.lane.b32.xlu1 %v2238_v4, %s2569_s8 }
 0x67a   : > { %v1744_v32 = vpop.permute.xlu0 %1743  ;;  %v1742_v40 = vpop.permute.xlu1 %1741 }
 0x67b   : > { %v1755_v24 = vadd.f32 %v1744_v32, %v1724_v55  ;;  %v1746_v63 = vsel %vm432_vm5, %v1740_v57, %v1742_v40  ;;  %v1747_v49 = vsel %vm432_vm5, %v1742_v40, %v1744_v32 }
 0x67c   : > { %2289 = vrot.lane.b32.xlu0 %v2281_v29, %s2545_s29  ;;  %v1753_v56 = vadd.f32 %v1746_v63, %v1722_v20  ;;  %v1754_v42 = vadd.f32 %v1747_v49, %v1723_v9  ;;  %2287 = vrot.lane.b32.xlu1 %v2284_v2, %s2545_s29 }
 0x67e   : > { %v1771_v7 = vpop.permute.xlu0 %1770  ;;  %v1769_v6 = vpop.permute.xlu1 %1768 }
 0x67f   : > { %v1776_v25 = vsel %vm557_vm6, %v1769_v6, %v1771_v7 }
 0x680   : > { %v1783_v22 = vadd.f32 %v1776_v25, %v1752_v11 }
 0x682   : > { %v1775_v46 = vpop.permute.xlu0 %1774  ;;  %v1773_v35 = vpop.permute.xlu1 %1772 }
 0x683   : > { %v1786_v0 = vadd.f32 %v1775_v46, %v1755_v24  ;;  %v1777_v10 = vsel %vm557_vm6, %v1771_v7, %v1773_v35  ;;  %v1778_v23 = vsel %vm557_vm6, %v1773_v35, %v1775_v46 }
 0x684   : > { %v1784_v62 = vadd.f32 %v1777_v10, %v1753_v56  ;;  %v1785_v61 = vadd.f32 %v1778_v23, %v1754_v42 }
 0x686   : > { %v1802_v15 = vpop.permute.xlu0 %1801  ;;  %v1800_v17 = vpop.permute.xlu1 %1799 }
 0x687   : > { %v1807_v27 = vsel %vm557_vm6, %v1800_v17, %v1802_v15 }
 0x688   : > { %v1814_v47 = vadd.f32 %v1807_v27, %v1783_v22 }
 0x68a   : > { %v1806_v21 = vpop.permute.xlu0 %1805  ;;  %v1804_v33 = vpop.permute.xlu1 %1803 }
 0x68b   : > { %v3920_v50 = vadd.f32 %v1806_v21, %v1786_v0  ;;  %v1808_v1 = vsel %vm557_vm6, %v1802_v15, %v1804_v33  ;;  %v1809_v59 = vsel %vm557_vm6, %v1804_v33, %v1806_v21 }
 0x68c   : > { %v1815_v16 = vadd.f32 %v1808_v1, %v1784_v62  ;;  %v1816_v38 = vadd.f32 %v1809_v59, %v1785_v61 }
 0x68e   : > { %v1833_v30 = vpop.permute.xlu0 %1832  ;;  %v1831_v34 = vpop.permute.xlu1 %1830 }
 0x68f   : > { %v1838_v43 = vsel %vm682_vm7, %v1831_v34, %v1833_v30 }
 0x690   : > { %v1845_v28 = vadd.f32 %v1838_v43, %v1814_v47 }
 0x692   : > { %v1837_v3 = vpop.permute.xlu0 %1836  ;;  %v1835_v36 = vpop.permute.xlu1 %1834 }
 0x693   : > { %v1840_v18 = vsel %vm682_vm7, %v1835_v36, %v1837_v3  ;;  %v1839_v7 = vsel %vm682_vm7, %v1833_v30, %v1835_v36  ;;  %v1848_v21 = vadd.f32 %v1837_v3, %v3920_v50 }
 0x694   : > { %v1847_v45 = vadd.f32 %v1840_v18, %v1816_v38  ;;  %v1846_v35 = vadd.f32 %v1839_v7, %v1815_v16 }
 0x696   : > { %v1864_v14 = vpop.permute.xlu0 %1863  ;;  %v1862_v44 = vpop.permute.xlu1 %1861 }
 0x697   : > { %v1869_v49 = vsel %vm682_vm7, %v1862_v44, %v1864_v14 }
 0x698   : > { %v1876_v42 = vadd.f32 %v1869_v49, %v1845_v28 }
 0x69a   : > { %v1868_v13 = vpop.permute.xlu0 %1867  ;;  %v1866_v39 = vpop.permute.xlu1 %1865 }
 0x69b   : > { %v1870_v22 = vsel %vm682_vm7, %v1864_v14, %v1866_v39  ;;  %v1871_v46 = vsel %vm682_vm7, %v1866_v39, %v1868_v13  ;;  %v1879_v34 = vadd.f32 %v1868_v13, %v1848_v21 }
 0x69c   : > { %v1877_v61 = vadd.f32 %v1870_v22, %v1846_v35  ;;  %v1878_v15 = vadd.f32 %v1871_v46, %v1847_v45 }
 0x69e   : > { %v1911_v41 = vpop.permute.xlu0 %1910  ;;  %v1909_v48 = vpop.permute.xlu1 %1908 }
 0x69f   : > { %v1920_v6 = vadd.f32 %v1909_v48, %v1876_v42  ;;  %v1914_v10 = vsel %vm821_vm8, %v1909_v48, %v1911_v41 }
 0x6a0   : > { %v1921_v33 = vadd.f32 %v1914_v10, %v1877_v61 }
 0x6a2   : > { %v1953_v31 = vpop.permute.xlu0 %1952  ;;  %v1913_v5 = vpop.permute.xlu1 %1912 }
 0x6a3   : > { %v1964_v0 = vadd.f32 %v1953_v31, %v1920_v6  ;;  %v1915_v23 = vsel %vm821_vm8, %v1911_v41, %v1913_v5  ;;  %v1923_v44 = vadd.f32 %v1913_v5, %v1879_v34 }
 0x6a4   : > { %v1922_v1 = vadd.f32 %v1915_v23, %v1878_v15 }
 0x6a6   : > { %v3926_v54 = vpop.permute.xlu0 %1956  ;;  %v1955_v19 = vpop.permute.xlu1 %1954 }
 0x6a7   : > { %v1958_v27 = vsel %vm821_vm8, %v1953_v31, %v1955_v19  ;;  %v1959_v47 = vsel %vm821_vm8, %v1955_v19, %v3926_v54  ;;  %v1967_v19 = vadd.f32 %v3926_v54, %v1923_v44 }
 0x6a8   : > { %v1965_v43 = vadd.f32 %v1958_v27, %v1921_v33  ;;  %v1966_v28 = vadd.f32 %v1959_v47, %v1922_v1 }
 0x6aa   : > { %v2006_v8 = vpop.permute.xlu0 %2005  ;;  %v2004_v12 = vpop.permute.xlu1 %2003 }
 0x6ab   : > { %v2018_v17 = vadd.f32 %v2004_v12, %v1964_v0  ;;  %v2011_v38 = vsel %vm1007_vm9, %v2004_v12, %v2006_v8 }
 0x6ac   : > { %v2019_v39 = vadd.f32 %v2011_v38, %v1965_v43 }
 0x6ae   : > { %v2010_v37 = vpop.permute.xlu0 %2009  ;;  %v2008_v51 = vpop.permute.xlu1 %2007 }
 0x6af   : > { %v2012_v30 = vsel %vm1007_vm9, %v2006_v8, %v2008_v51  ;;  %v2013_v48 = vsel %vm1007_vm9, %v2008_v51, %v2010_v37 }
 0x6b0   : > { %v2020_v50 = vadd.f32 %v2012_v30, %v1966_v28  ;;  %v2021_v42 = vadd.f32 %v2013_v48, %v1967_v19 }
 0x6b2   : > { %v2060_v55 = vpop.permute.xlu0 %2059  ;;  %v2058_v60 = vpop.permute.xlu1 %2057 }
 0x6b3   : > { %v2072_v59 = vadd.f32 %v2058_v60, %v2018_v17  ;;  %v2065_v18 = vsel %vm1007_vm9, %v2058_v60, %v2060_v55 }
 0x6b4   : > { %v2073_v8 = vadd.f32 %v2065_v18, %v2019_v39 }
 0x6b6   : > { %v2064_v53 = vpop.permute.xlu0 %2063  ;;  %v2062_v20 = vpop.permute.xlu1 %2061 }
 0x6b7   : > { %v2066_v45 = vsel %vm1007_vm9, %v2060_v55, %v2062_v20  ;;  %v2067_v55 = vsel %vm1007_vm9, %v2062_v20, %v2064_v53 }
 0x6b8   : > { %v2074_v12 = vadd.f32 %v2066_v45, %v2020_v50  ;;  %v2075_v20 = vadd.f32 %v2067_v55, %v2021_v42 }
 0x6ba   : > { %v2091_v9 = vpop.permute.xlu0 %2090  ;;  %v2089_v26 = vpop.permute.xlu1 %2088 }
 0x6bb   : > { %v2103_v36 = vadd.f32 %v2089_v26, %v2072_v59  ;;  %v2096_v31 = vsel %vm1201_vm10, %v2089_v26, %v2091_v9 }
 0x6bc   : > { %v2104_v7 = vadd.f32 %v2096_v31, %v2073_v8 }
 0x6be   : > { %v3928_v57 = vpop.permute.xlu0 %2094  ;;  %v3930_v4 = vpop.permute.xlu1 %2092 }
 0x6bf   : > { %v2097_v13 = vsel %vm1201_vm10, %v2091_v9, %v3930_v4  ;;  %v2098_v9 = vsel %vm1201_vm10, %v3930_v4, %v3928_v57 }
 0x6c0   : > { %v2105_v37 = vadd.f32 %v2097_v13, %v2074_v12  ;;  %v2106_v4 = vadd.f32 %v2098_v9, %v2075_v20 }
 0x6c2   : > { %v2122_v58 = vpop.permute.xlu0 %2121  ;;  %v2120_v52 = vpop.permute.xlu1 %2119 }
 0x6c3   : > { %v2134_v3 = vadd.f32 %v2120_v52, %v2103_v36  ;;  %v2127_v5 = vsel %vm1201_vm10, %v2120_v52, %v2122_v58 }
 0x6c4   : > { %v2135_v52 = vadd.f32 %v2127_v5, %v2104_v7 }
 0x6c6   : > { %v3932_v11 = vpop.permute.xlu0 %2125  ;;  %v3934_v29 = vpop.permute.xlu1 %2123 }
 0x6c7   : > { %v2128_v49 = vsel %vm1201_vm10, %v2122_v58, %v3934_v29  ;;  %v2129_v58 = vsel %vm1201_vm10, %v3934_v29, %v3932_v11 }
 0x6c8   : > { %v2136_v22 = vadd.f32 %v2128_v49, %v2105_v37  ;;  %v2137_v11 = vadd.f32 %v2129_v58, %v2106_v4 }
 0x6ca   : > { %v2153_v2 = vpop.permute.xlu0 %2152  ;;  %v2151_v40 = vpop.permute.xlu1 %2150 }
 0x6cb   : > { %v2165_v60 = vadd.f32 %v2151_v40, %v2134_v3  ;;  %v2158_v54 = vsel %vm1326_vm11, %v2151_v40, %v2153_v2 }
 0x6cc   : > { %v2166_v40 = vadd.f32 %v2158_v54, %v2135_v52 }
 0x6ce   : > { %v3936_v32 = vpop.permute.xlu0 %2156  ;;  %v3940_v63 = vpop.permute.xlu1 %2154 }
 0x6cf   : > { %v2159_v6 = vsel %vm1326_vm11, %v2153_v2, %v3940_v63  ;;  %v2160_v23 = vsel %vm1326_vm11, %v3940_v63, %v3936_v32 }
 0x6d0   : > { %v2167_v0 = vadd.f32 %v2159_v6, %v2136_v22  ;;  %v2168_v27 = vadd.f32 %v2160_v23, %v2137_v11 }
 0x6d2   : > { %v3938_v24 = vpop.permute.xlu0 %2183  ;;  %v2182_v25 = vpop.permute.xlu1 %2181 }
 0x6d3   : > { %v2196_v51 = vadd.f32 %v2182_v25, %v2165_v60  ;;  %v2189_v35 = vsel %vm1326_vm11, %v2182_v25, %v3938_v24 }
 0x6d4   : > { %v2197_v29 = vadd.f32 %v2189_v35, %v2166_v40 }
 0x6d6   : > { %v3943_v56 = vpop.permute.xlu0 %2187  ;;  %v2186_v16 = vpop.permute.xlu1 %2185 }
 0x6d7   : > { %v2190_v57 = vsel %vm1326_vm11, %v3938_v24, %v2186_v16  ;;  %v2191_v24 = vsel %vm1326_vm11, %v2186_v16, %v3943_v56 }
 0x6d8   : > { %v2198_v17 = vadd.f32 %v2190_v57, %v2167_v0 }
 0x6da   : > { %v2213_v62 = vpop.permute.xlu0 %2212 }
 0x6db   : > { %v2227_v46 = vadd.f32 %v2213_v62, %v2196_v51 }
 0x6de   : > { %v2217_v14 = vpop.permute.xlu0 %2216 }
 0x6e2   : > { %v2244_v53 = vpop.permute.xlu0 %2243 }
 0x6e3   : > { %v2258_v10 = vadd.f32 %v2244_v53, %v2227_v46 }
 0x6e6   : > { %v2248_v47 = vpop.permute.xlu0 %2247 }
 0x6e7   : > { %v3958_v41 = vpop.permute.xlu1 %2265 }
 0x6e8   : > { %v2268_v25 = vadd.f32 %v3958_v41, %v2258_v10 }
 0x6ea   : > { %v2272_v38 = vmax.f32 %v2268_v25, 0.0  ;;  %v2286_v43 = vpop.permute.xlu0 %2285 }
 0x6eb   : > { %v2215_v26 = vpop.permute.xlu1 %2214 }
 0x6ec   : > { %v2220_v61 = vsel %vm1451_vm12, %v2213_v62, %v2215_v26  ;;  %v2221_v15 = vsel %vm1451_vm12, %v2215_v26, %v2217_v14  ;;  %v2199_v62 = vadd.f32 %v2191_v24, %v2168_v27  ;;  %v2276_v45 = vmin.f32 %v2272_v38, 6.0 }
 0x6ed   : > { %v2228_v21 = vadd.f32 %v2220_v61, %v2197_v29  ;;  %v2229_v33 = vadd.f32 %v2221_v15, %v2198_v17 }
 0x6ee   : > { %v2290_v31 = vpop.permute.xlu0 %2289  ;;  %v2297_v19 = vadd.f32 %v2286_v43, %v2276_v45 }
 0x6ef   : > { %v2219_v2 = vpop.permute.xlu1 %2218 }
 0x6f0   : > { %v2222_v59 = vsel %vm1451_vm12, %v2217_v14, %v2219_v2 }
 0x6f1   : > { %v2230_v28 = vadd.f32 %v2222_v59, %v2199_v62 }
 0x6f3   : > { %v2246_v1 = vpop.permute.xlu1 %2245 }
 0x6f4   : > { %v2251_v32 = vsel %vm1451_vm12, %v2244_v53, %v2246_v1  ;;  %v2252_v63 = vsel %vm1451_vm12, %v2246_v1, %v2248_v47 }
 0x6f5   : > { %v2259_v30 = vadd.f32 %v2251_v32, %v2228_v21  ;;  %v2260_v34 = vadd.f32 %v2252_v63, %v2229_v33 }
 0x6f7   : > { %v2269_v36 = vadd.f32 %v3958_v41, %v2259_v30  ;;  %v2270_v56 = vadd.f32 %v3958_v41, %v2260_v34  ;;  %v2250_v16 = vpop.permute.xlu1 %2249 }
 0x6f8   : > { %v2253_v18 = vsel %vm1451_vm12, %v2248_v47, %v2250_v16 }
 0x6f9   : > { %v2261_v44 = vadd.f32 %v2253_v18, %v2230_v28  ;;  %v2273_v14 = vmax.f32 %v2269_v36, 0.0  ;;  %v2274_v39 = vmax.f32 %v2270_v56, 0.0 }
 0x6fb   : > { %v2288_v50 = vpop.permute.xlu1 %2287  ;;  %v2277_v3 = vmin.f32 %v2273_v14, 6.0  ;;  %v2271_v48 = vadd.f32 %v3958_v41, %v2261_v44  ;;  %v2278_v60 = vmin.f32 %v2274_v39, 6.0 }
 0x6fc   : > { %v2291_v13 = vsel %vm821_vm8, %v2286_v43, %v2288_v50  ;;  %v2292_v55 = vsel %vm821_vm8, %v2288_v50, %v2290_v31 }
 0x6fd   : > { %v2298_v8 = vadd.f32 %v2291_v13, %v2277_v3  ;;  %v2275_v12 = vmax.f32 %v2271_v48, 0.0  ;;  %v2299_v42 = vadd.f32 %v2292_v55, %v2278_v60 }
 0x6ff   : > { %v2305_v5 = vcombine.low %v2297_v19, %v2298_v8  ;;  %v2279_v49 = vmin.f32 %v2275_v12, 6.0 }
 0x701   : > { %v2300_v7 = vadd.f32 %v2290_v31, %v2279_v49  ;;  %2307 = vrot.lane.b32.xlu1 %v2305_v5, %s2571_s13 }
 0x703   : > { %v2306_v37 = vcombine.low %v2299_v42, %v2300_v7 }
 0x705   : > { %2309 = vrot.lane.b32.xlu0 %v2306_v37, %s2571_s13 }
 0x773   : > { %v2308_v41 = vpop.permute.xlu1 %2307 }
 0x774   : > { %v2311_v26 = vrot.slane %v2308_v41, 4 }
 0x777   : > { %v2310_v51 = vpop.permute.xlu0 %2309 }
 0x778   : > { %v2312_v9 = vrot.slane %v2310_v51, 4 }
 0x77a   : > { %v2314_v54 = vsel %vm2313_vm14, %v2311_v26, %v2312_v9  ;;  %v2316_v6 = vsel %vm1619_vm13, %v2310_v51, %v2312_v9 }
 0x77b   : > { %v2315_v53 = vsel %vm1619_vm13, %v2308_v41, %v2314_v54  ;;  %2320 = vst [vmem:[%s224_s21 + $0x8] sm:$0xf] %v2316_v6 }
 0x77c   : > { %2319 = vst [vmem:[%s224_s21] sm:$0xff] %v2315_v53 }
 0x77d PF: > { %s15_s18 = sadd.s32 1, %s2523_s18  }
 0x77e   : > { %p12_p4 = scmp.ge.s32.totalorder %s15_s18, 4  }
 0x780   :  { %14 = sbr.rel (!%p12_p4) target bundleno = 1 (0x1), region = 86 }

</bundles_post_ra>
